<compile_context>
chip_gen: v7x
topology: tpu7x:2x2x1
jax: 0.10.0
libtpu: 0.0.40
codegen_flags: <defaults>
</compile_context>

<pallas_src>
import functools

import numpy as np

import jax
import jax.numpy as jnp
from jax.experimental import pallas as pl
from jax.experimental.pallas import tpu as pltpu

_LN_EPS = 1e-5


# ----------------------------------------------------------------------------
# Fused decoder-layer kernel (one grid step == one batch item)
# ----------------------------------------------------------------------------
def _decoder_layer_kernel(dec_ref, enc_ref,
                          wqkv_ref, bqkv_ref, wo_ref, bo_ref, ln1_g_ref, ln1_b_ref,
                          w1_ref, b1_ref, w2_ref, b2_ref, ln2_g_ref, ln2_b_ref,
                          rowdup_ref, rowdup_t_ref, headsel_t_ref, blockmask_ref,
                          out_ref, self_attn_ref, ctx_attn_ref,
                          *, num_heads, scale, eps):
    H = num_heads
    dec = dec_ref[...]                       # (L, M) f32
    enc = enc_ref[...]                       # (L, M) f32
    dec_bf = dec.astype(jnp.bfloat16)
    enc_bf = enc.astype(jnp.bfloat16)
    mask = blockmask_ref[...]                # (H*L, H*L) f32, 0 on head-diagonal blocks
    bo = bo_ref[...]                         # (1, M) f32
    ln1_g = ln1_g_ref[...]
    ln1_b = ln1_b_ref[...]

    def to_heads(x_bf, base):
        # (x @ W_t + b_t) followed by the reference's quirky `.view(H, -1, D)` head split.
        # Row-major view: X32[r, d] = X[r // H, (r % H) * D + d]; the column split is folded
        # into pre-chunked weights (wqkv_ref[base + j]), the row interleave is a 0/1 matmul.
        acc = None
        for j in range(H):
            a = jnp.dot(x_bf, wqkv_ref[base + j],
                        preferred_element_type=jnp.float32) + bqkv_ref[base + j]   # (L, D)
            piece = jnp.dot(rowdup_ref[j], a, preferred_element_type=jnp.float32)  # (H*L, D)
            acc = piece if acc is None else acc + piece
        return acc                                   # (H*L, D) f32; head h = rows [h*L, (h+1)*L)

    def attention(q32, k32, v32, attn_out_ref):
        # All heads at once: one (H*L, H*L) score matrix with a block-diagonal additive
        # mask; off-head entries get probability exactly 0, so full-row softmax equals the
        # per-head softmax and P @ V32 is the per-head context (ScaledDotProductAttention).
        s = jnp.einsum("qd,kd->qk",
                       q32.astype(jnp.bfloat16), k32.astype(jnp.bfloat16),
                       preferred_element_type=jnp.float32)
        if scale:                                    # mirrors `if scale:` in the reference
            s = s * scale
        s = s + mask
        s_max = jnp.max(s, axis=-1, keepdims=True)
        p = jnp.exp(s - s_max)
        p = p / jnp.sum(p, axis=-1, keepdims=True)   # exact softmax (attention maps are returned)
        # Gather each query row's own head block of key columns -> (H*L, L) attention maps
        # (rows ordered head-major, exactly the (B*H, Lq, Lk) layout after a free reshape).
        amap = None
        for h in range(H):
            sel_t = headsel_t_ref[h]                                 # (H*L, L) 0/1
            row_mask = jnp.sum(sel_t, axis=1, keepdims=True)         # 1.0 on head h's rows
            piece = row_mask * jnp.dot(p, sel_t, preferred_element_type=jnp.float32)
            amap = piece if amap is None else amap + piece
        attn_out_ref[...] = amap
        ctx = jnp.dot(p.astype(jnp.bfloat16), v32.astype(jnp.bfloat16),
                      preferred_element_type=jnp.float32)            # (H*L, D)
        return ctx

    def out_proj(ctx32):
        # `context.view(B, -1, H*D)` merge fused into the final linear:
        #   ctx_flat @ Wo == sum_j  ctx32[l*H + j, :] @ Wo[j*D:(j+1)*D, :]
        acc = None
        for j in range(H):
            rows_j = jnp.dot(rowdup_t_ref[j], ctx32,
                             preferred_element_type=jnp.float32)     # (L, D)
            term = jnp.dot(rows_j.astype(jnp.bfloat16), wo_ref[j],
                           preferred_element_type=jnp.float32)       # (L, M)
            acc = term if acc is None else acc + term
        return acc + bo

    def layernorm(z, g, b):
        mu = jnp.mean(z, axis=-1, keepdims=True)
        c = z - mu
        var = jnp.mean(c * c, axis=-1, keepdims=True)
        return c * jax.lax.rsqrt(var + eps) * g + b

    # ---- stage 1: self-attention (key = value = query = dec_inputs) ----
    q1 = to_heads(dec_bf, 0)
    k1 = to_heads(dec_bf, H)
    v1 = to_heads(dec_bf, 2 * H)
    ctx1 = attention(q1, k1, v1, self_attn_ref)
    y1 = layernorm(dec + out_proj(ctx1), ln1_g, ln1_b)               # residual = query

    # ---- stage 2: context attention (key = value = enc_outputs, query = stage-1 output) ----
    q2 = to_heads(y1.astype(jnp.bfloat16), 0)
    k2 = to_heads(enc_bf, H)
    v2 = to_heads(enc_bf, 2 * H)
    ctx2 = attention(q2, k2, v2, ctx_attn_ref)
    y2 = layernorm(y1 + out_proj(ctx2), ln1_g, ln1_b)                # shared attention module

    # ---- stage 3: position-wise FFN (Conv1d k=1 == linear); dropout(p=0) is identity ----
    hmid = jnp.maximum(jnp.dot(y2.astype(jnp.bfloat16), w1_ref[...],
                               preferred_element_type=jnp.float32) + b1_ref[...], 0.0)
    ffn = jnp.dot(hmid.astype(jnp.bfloat16), w2_ref[...],
                  preferred_element_type=jnp.float32) + b2_ref[...]
    out_ref[...] = layernorm(y2 + ffn, ln2_g_ref[...], ln2_b_ref[...]).astype(out_ref.dtype)


# ----------------------------------------------------------------------------
# Parameter packing (done ONCE, outside jit / outside the kernel): bf16 weights,
# per-chunk layout so the quirky head split folds into the weight columns.
# ----------------------------------------------------------------------------
def pack_decoder_params(params, num_heads):
    pa, pf = params["attn"], params["ffn"]
    M = pa["wq"].shape[0]
    D = M // num_heads

    def col_chunks(w):                                  # (R, M) -> (H, R, D)
        return jnp.stack([w[:, j * D:(j + 1) * D] for j in range(num_heads)], axis=0)

    wqkv_chunks = jnp.concatenate(
        [col_chunks(pa["wq"]), col_chunks(pa["wk"]), col_chunks(pa["wv"])],
        axis=0).astype(jnp.bfloat16)                    # (3H, M, D)
    bqkv_chunks = jnp.concatenate(
        [col_chunks(pa["bq"]), col_chunks(pa["bk"]), col_chunks(pa["bv"])],
        axis=0).astype(jnp.float32)                     # (3H, 1, D)
    wo_chunks = jnp.stack(
        [pa["wo"][j * D:(j + 1) * D, :] for j in range(num_heads)],
        axis=0).astype(jnp.bfloat16)                    # (H, D, M)

    return {
        "wqkv_chunks": wqkv_chunks, "bqkv_chunks": bqkv_chunks,
        "wo_chunks": wo_chunks, "bo": pa["bo"],
        "ln1_g": pa["ln_g"], "ln1_b": pa["ln_b"],
        "w1": pf["w1"].astype(jnp.bfloat16), "b1": pf["b1"],
        "w2": pf["w2"].astype(jnp.bfloat16), "b2": pf["b2"],
        "ln2_g": pf["ln_g"], "ln2_b": pf["ln_b"],
    }


# ----------------------------------------------------------------------------
# Decoder layer: ONE pallas_call, grid over batch (parallel -> both v7x TCs busy)
# ----------------------------------------------------------------------------
def decoder_layer(dec_inputs, enc_outputs, packed, num_heads):
    B, L, M = dec_inputs.shape
    Be, Le, Me = enc_outputs.shape
    assert (B, M) == (Be, Me) and L == Le, "kernel assumes matching enc/dec shapes"
    H = num_heads
    D = M // H
    HL = H * L
    F = packed["w1"].shape[1]

    # Constant 0/1 selection matrices emulating the reference's `.view(B*H, -1, D)`
    # row-major head split/merge (built at trace time; embedded as constants).
    rowdup = np.zeros((H, HL, L), np.float32)          # rowdup[j][l*H + j, l] = 1
    headsel_t = np.zeros((H, HL, L), np.float32)       # headsel_t[h][h*L + i, i] = 1
    for j in range(H):
        for l in range(L):
            rowdup[j, l * H + j, l] = 1.0
    for h in range(H):
        for i in range(L):
            headsel_t[h, h * L + i, i] = 1.0
    rowdup_t = np.ascontiguousarray(rowdup.transpose(0, 2, 1))       # (H, L, HL)
    blockmask = np.full((HL, HL), -1e30, np.float32)
    for h in range(H):
        blockmask[h * L:(h + 1) * L, h * L:(h + 1) * L] = 0.0

    dec2d = dec_inputs.reshape(B * L, M)
    enc2d = enc_outputs.reshape(B * L, M)
    # Reference quirk preserved: scale = (dim_per_head // num_heads) ** -0.5 (integer division).
    scale = (D // num_heads) ** -0.5

    kernel = functools.partial(_decoder_layer_kernel,
                               num_heads=H, scale=scale, eps=_LN_EPS)

    operands = (dec2d, enc2d,
                packed["wqkv_chunks"], packed["bqkv_chunks"],
                packed["wo_chunks"], packed["bo"],
                packed["ln1_g"], packed["ln1_b"],
                packed["w1"], packed["b1"], packed["w2"], packed["b2"],
                packed["ln2_g"], packed["ln2_b"],
                jnp.asarray(rowdup), jnp.asarray(rowdup_t),
                jnp.asarray(headsel_t), jnp.asarray(blockmask))

    row_spec = pl.BlockSpec((L, M), lambda b: (b, 0))

    def full_spec(arr):
        nd = len(arr.shape)
        return pl.BlockSpec(tuple(arr.shape), lambda b, _nd=nd: (0,) * _nd)

    in_specs = [row_spec, row_spec] + [full_spec(x) for x in operands[2:]]

    # Advisory cost estimate (matmul flops; selections included approximately).
    flops = 2 * B * (6 * H * (L * M * D + HL * L * D)       # q/k/v chunk proj + head interleave
                     + 2 * 2 * HL * HL * D                  # scores + context, both stages
                     + 2 * H * HL * HL * L                  # attention-map gathers
                     + 2 * H * (L * HL * D + L * D * M)     # head merge + output projections
                     + 2 * L * M * F)                       # FFN
    transcendentals = B * (2 * HL * HL + 3 * L)
    bytes_accessed = sum(int(np.prod(x.shape)) * x.dtype.itemsize for x in operands)
    bytes_accessed += (B * L * M + 2 * B * HL * L) * 4

    out2d, sa_flat, ca_flat = pl.pallas_call(
        kernel,
        out_shape=(jax.ShapeDtypeStruct((B * L, M), jnp.float32),
                   jax.ShapeDtypeStruct((B * HL, L), jnp.float32),
                   jax.ShapeDtypeStruct((B * HL, L), jnp.float32)),
        grid=(B,),
        in_specs=in_specs,
        out_specs=(pl.BlockSpec((L, M), lambda b: (b, 0)),
                   pl.BlockSpec((HL, L), lambda b: (b, 0)),
                   pl.BlockSpec((HL, L), lambda b: (b, 0))),
        compiler_params=pltpu.CompilerParams(dimension_semantics=("parallel",)),
        cost_estimate=pl.CostEstimate(flops=int(flops),
                                      transcendentals=int(transcendentals),
                                      bytes_accessed=int(bytes_accessed)),
    )(*operands)

    dec_output = out2d.reshape(B, L, M)
    self_attention = sa_flat.reshape(B * H, L, L)        # free leading-dim regroup
    context_attention = ca_flat.reshape(B * H, L, L)
    return dec_output, self_attention, context_attention


# ----------------------------------------------------------------------------
# Deterministic parameter init (PyTorch-style uniform(-1/sqrt(fan_in), ...)).
# ----------------------------------------------------------------------------
def _init_linear(key, fan_in, fan_out):
    bound = 1.0 / (fan_in ** 0.5)
    kw, kb = jax.random.split(key)
    w = jax.random.uniform(kw, (fan_in, fan_out), jnp.float32, -bound, bound)
    b = jax.random.uniform(kb, (1, fan_out), jnp.float32, -bound, bound)
    return w, b


def init_params(key, model_dim, num_heads, ffn_dim):
    ks = jax.random.split(key, 6)
    wk, bk = _init_linear(ks[0], model_dim, model_dim)
    wv, bv = _init_linear(ks[1], model_dim, model_dim)
    wq, bq = _init_linear(ks[2], model_dim, model_dim)
    wo, bo = _init_linear(ks[3], model_dim, model_dim)
    w1, b1 = _init_linear(ks[4], model_dim, ffn_dim)
    w2, b2 = _init_linear(ks[5], ffn_dim, model_dim)
    ones = jnp.ones((1, model_dim), jnp.float32)
    zeros = jnp.zeros((1, model_dim), jnp.float32)
    return {
        "attn": {"wq": wq, "bq": bq, "wk": wk, "bk": bk, "wv": wv, "bv": bv,
                 "wo": wo, "bo": bo, "ln_g": ones, "ln_b": zeros},
        "ffn": {"w1": w1, "b1": b1, "w2": w2, "b2": b2, "ln_g": ones, "ln_b": zeros},
    }


# ----------------------------------------------------------------------------
# Pure-JAX f32 reference (same math, no Pallas) for a sanity check
# ----------------------------------------------------------------------------
def _ref_mha(key, value, query, p, num_heads):
    B, Lq, M = query.shape
    Lk = key.shape[1]
    D = M // num_heads
    residual = query
    k = (key.reshape(B * Lk, M) @ p["wk"] + p["bk"]).reshape(B * num_heads, -1, D)
    v = (value.reshape(B * Lk, M) @ p["wv"] + p["bv"]).reshape(B * num_heads, -1, D)
    q = (query.reshape(B * Lq, M) @ p["wq"] + p["bq"]).reshape(B * num_heads, -1, D)
    scale = (D // num_heads) ** -0.5
    s = jnp.einsum("bqd,bkd->bqk", q, k) * scale
    attn = jax.nn.softmax(s, axis=-1)
    ctx = jnp.einsum("bqk,bkd->bqd", attn, v).reshape(B * Lq, M)
    out = ctx @ p["wo"] + p["bo"]
    z = residual.reshape(B * Lq, M) + out
    mu = jnp.mean(z, -1, keepdims=True)
    var = jnp.mean((z - mu) ** 2, -1, keepdims=True)
    z = (z - mu) / jnp.sqrt(var + _LN_EPS) * p["ln_g"] + p["ln_b"]
    return z.reshape(B, Lq, M), attn


def _ref_decoder(dec, enc, params, num_heads):
    p = params["attn"]
    y, sa = _ref_mha(dec, dec, dec, p, num_heads)
    y, ca = _ref_mha(enc, enc, y, p, num_heads)
    f = params["ffn"]
    B, L, M = y.shape
    h = jnp.maximum(y.reshape(B * L, M) @ f["w1"] + f["b1"], 0.0) @ f["w2"] + f["b2"]
    z = y.reshape(B * L, M) + h
    mu = jnp.mean(z, -1, keepdims=True)
    var = jnp.mean((z - mu) ** 2, -1, keepdims=True)
    z = (z - mu) / jnp.sqrt(var + _LN_EPS) * f["ln_g"] + f["ln_b"]
    return z.reshape(B, L, M), sa, ca


# ----------------------------------------------------------------------------
if __name__ == "__main__":
    B, L, MODEL_DIM, NUM_HEADS, FFN_DIM = 2, 8, 64, 4, 128

    root = jax.random.PRNGKey(0)
    k_dec, k_enc, k_param = jax.random.split(root, 3)
    dec_inputs = jax.random.normal(k_dec, (B, L, MODEL_DIM), jnp.float32)
    enc_outputs = jax.random.normal(k_enc, (B, L, MODEL_DIM), jnp.float32)
    params = init_params(k_param, MODEL_DIM, NUM_HEADS, FFN_DIM)

    # Weights packed / cast to bf16 once, outside jit and outside the kernel.
    packed = pack_decoder_params(params, NUM_HEADS)

    layer_fn = jax.jit(functools.partial(decoder_layer, num_heads=NUM_HEADS))
    dec_out, self_attn, ctx_attn = layer_fn(dec_inputs, enc_outputs, packed)
    jax.block_until_ready((dec_out, self_attn, ctx_attn))

    assert dec_out.shape == (B, L, MODEL_DIM)
    assert self_attn.shape == (B * NUM_HEADS, L, L)
    assert ctx_attn.shape == (B * NUM_HEADS, L, L)

    r_out, r_sa, r_ca = _ref_decoder(dec_inputs, enc_outputs, params, NUM_HEADS)
    # Tolerances account for bf16 MXU operands (weights and activations) vs. the f32 reference.
    assert jnp.allclose(self_attn, r_sa, atol=1e-2, rtol=1e-2)
    assert jnp.allclose(ctx_attn, r_ca, atol=1e-2, rtol=1e-2)
    assert jnp.allclose(dec_out, r_out, atol=2e-2, rtol=2e-2)

    print("KERNEL_OK")
</pallas_src>

<mosaic_0001>
module attributes {stable_mosaic.version = 11 : i64} {
  func.func @_decoder_layer_kernel(%arg0: i32, %arg1: memref<8x64xf32, #tpu.memory_space<vmem>>, %arg2: memref<8x64xf32, #tpu.memory_space<vmem>>, %arg3: memref<12x64x16xbf16, #tpu.memory_space<vmem>>, %arg4: memref<12x1x16xf32, #tpu.memory_space<vmem>>, %arg5: memref<4x16x64xbf16, #tpu.memory_space<vmem>>, %arg6: memref<1x64xf32, #tpu.memory_space<vmem>>, %arg7: memref<1x64xf32, #tpu.memory_space<vmem>>, %arg8: memref<1x64xf32, #tpu.memory_space<vmem>>, %arg9: memref<64x128xbf16, #tpu.memory_space<vmem>>, %arg10: memref<1x128xf32, #tpu.memory_space<vmem>>, %arg11: memref<128x64xbf16, #tpu.memory_space<vmem>>, %arg12: memref<1x64xf32, #tpu.memory_space<vmem>>, %arg13: memref<1x64xf32, #tpu.memory_space<vmem>>, %arg14: memref<1x64xf32, #tpu.memory_space<vmem>>, %arg15: memref<4x32x8xf32, #tpu.memory_space<vmem>>, %arg16: memref<4x8x32xf32, #tpu.memory_space<vmem>>, %arg17: memref<4x32x8xf32, #tpu.memory_space<vmem>>, %arg18: memref<32x32xf32, #tpu.memory_space<vmem>>, %arg19: memref<8x64xf32, #tpu.memory_space<vmem>>, %arg20: memref<32x8xf32, #tpu.memory_space<vmem>>, %arg21: memref<32x8xf32, #tpu.memory_space<vmem>>) attributes {dimension_semantics = [#tpu.dimension_semantics<parallel>], iteration_bounds = array<i64: 2>, scalar_prefetch = 0 : i64, scratch_operands = 0 : i64, tpu.core_type = #tpu.core_type<tc>, window_params = [{transform_indices = @transform_0, window_bounds = array<i64: 8, 64>}, {transform_indices = @transform_1, window_bounds = array<i64: 8, 64>}, {pipeline_mode = #tpu.pipeline_mode<synchronous>, transform_indices = @transform_2, window_bounds = array<i64: 12, 64, 16>}, {pipeline_mode = #tpu.pipeline_mode<synchronous>, transform_indices = @transform_3, window_bounds = array<i64: 12, 1, 16>}, {pipeline_mode = #tpu.pipeline_mode<synchronous>, transform_indices = @transform_4, window_bounds = array<i64: 4, 16, 64>}, {pipeline_mode = #tpu.pipeline_mode<synchronous>, transform_indices = @transform_5, window_bounds = array<i64: 1, 64>}, {pipeline_mode = #tpu.pipeline_mode<synchronous>, transform_indices = @transform_6, window_bounds = array<i64: 1, 64>}, {pipeline_mode = #tpu.pipeline_mode<synchronous>, transform_indices = @transform_7, window_bounds = array<i64: 1, 64>}, {pipeline_mode = #tpu.pipeline_mode<synchronous>, transform_indices = @transform_8, window_bounds = array<i64: 64, 128>}, {pipeline_mode = #tpu.pipeline_mode<synchronous>, transform_indices = @transform_9, window_bounds = array<i64: 1, 128>}, {pipeline_mode = #tpu.pipeline_mode<synchronous>, transform_indices = @transform_10, window_bounds = array<i64: 128, 64>}, {pipeline_mode = #tpu.pipeline_mode<synchronous>, transform_indices = @transform_11, window_bounds = array<i64: 1, 64>}, {pipeline_mode = #tpu.pipeline_mode<synchronous>, transform_indices = @transform_12, window_bounds = array<i64: 1, 64>}, {pipeline_mode = #tpu.pipeline_mode<synchronous>, transform_indices = @transform_13, window_bounds = array<i64: 1, 64>}, {pipeline_mode = #tpu.pipeline_mode<synchronous>, transform_indices = @transform_14, window_bounds = array<i64: 4, 32, 8>}, {pipeline_mode = #tpu.pipeline_mode<synchronous>, transform_indices = @transform_15, window_bounds = array<i64: 4, 8, 32>}, {pipeline_mode = #tpu.pipeline_mode<synchronous>, transform_indices = @transform_16, window_bounds = array<i64: 4, 32, 8>}, {pipeline_mode = #tpu.pipeline_mode<synchronous>, transform_indices = @transform_17, window_bounds = array<i64: 32, 32>}, {transform_indices = @transform_18, window_bounds = array<i64: 8, 64>}, {transform_indices = @transform_19, window_bounds = array<i64: 32, 8>}, {transform_indices = @transform_20, window_bounds = array<i64: 32, 8>}]} {
    %c0 = arith.constant 0 : index
    %c0_0 = arith.constant 0 : index
    %0 = vector.load %arg1[%c0, %c0_0] : memref<8x64xf32, #tpu.memory_space<vmem>>, vector<8x64xf32>
    %c0_1 = arith.constant 0 : index
    %c0_2 = arith.constant 0 : index
    %1 = vector.load %arg2[%c0_1, %c0_2] : memref<8x64xf32, #tpu.memory_space<vmem>>, vector<8x64xf32>
    %2 = arith.truncf %0 : vector<8x64xf32> to vector<8x64xbf16>
    %3 = arith.truncf %1 : vector<8x64xf32> to vector<8x64xbf16>
    %c0_3 = arith.constant 0 : index
    %c0_4 = arith.constant 0 : index
    %4 = vector.load %arg18[%c0_3, %c0_4] : memref<32x32xf32, #tpu.memory_space<vmem>>, vector<32x32xf32>
    %c0_5 = arith.constant 0 : index
    %c0_6 = arith.constant 0 : index
    %5 = vector.load %arg6[%c0_5, %c0_6] : memref<1x64xf32, #tpu.memory_space<vmem>>, vector<1x64xf32>
    %c0_7 = arith.constant 0 : index
    %c0_8 = arith.constant 0 : index
    %6 = vector.load %arg7[%c0_7, %c0_8] : memref<1x64xf32, #tpu.memory_space<vmem>>, vector<1x64xf32>
    %c0_9 = arith.constant 0 : index
    %c0_10 = arith.constant 0 : index
    %7 = vector.load %arg8[%c0_9, %c0_10] : memref<1x64xf32, #tpu.memory_space<vmem>>, vector<1x64xf32>
    %c0_11 = arith.constant 0 : index
    %c0_12 = arith.constant 0 : index
    %c0_13 = arith.constant 0 : index
    %8 = vector.load %arg3[%c0_11, %c0_12, %c0_13] : memref<12x64x16xbf16, #tpu.memory_space<vmem>>, vector<1x64x16xbf16>
    %9 = vector.shape_cast %8 : vector<1x64x16xbf16> to vector<64x16xbf16>
    %cst = arith.constant dense<0.000000e+00> : vector<8x16xf32>
    %10 = tpu.matmul %2, %9, %cst {dimension_numbers = #tpu.dot_dimension_numbers<[1], [0], [0], [1], [0, 0, 1, 1], [], []>} : vector<8x64xbf16>, vector<64x16xbf16>, vector<8x16xf32> -> vector<8x16xf32>
    %c0_14 = arith.constant 0 : index
    %c0_15 = arith.constant 0 : index
    %c0_16 = arith.constant 0 : index
    %11 = vector.load %arg4[%c0_14, %c0_15, %c0_16] : memref<12x1x16xf32, #tpu.memory_space<vmem>>, vector<1x1x16xf32>
    %12 = vector.shape_cast %11 : vector<1x1x16xf32> to vector<1x16xf32>
    %13 = vector.broadcast %12 : vector<1x16xf32> to vector<8x16xf32>
    %14 = arith.addf %10, %13 : vector<8x16xf32>
    %c0_17 = arith.constant 0 : index
    %c0_18 = arith.constant 0 : index
    %c0_19 = arith.constant 0 : index
    %15 = vector.load %arg15[%c0_17, %c0_18, %c0_19] : memref<4x32x8xf32, #tpu.memory_space<vmem>>, vector<1x32x8xf32>
    %16 = vector.shape_cast %15 : vector<1x32x8xf32> to vector<32x8xf32>
    %cst_20 = arith.constant dense<0.000000e+00> : vector<32x16xf32>
    %17 = tpu.matmul %16, %14, %cst_20 {dimension_numbers = #tpu.dot_dimension_numbers<[1], [0], [0], [1], [0, 0, 1, 1], [], []>} : vector<32x8xf32>, vector<8x16xf32>, vector<32x16xf32> -> vector<32x16xf32>
    %c1 = arith.constant 1 : index
    %c0_21 = arith.constant 0 : index
    %c0_22 = arith.constant 0 : index
    %18 = vector.load %arg3[%c1, %c0_21, %c0_22] : memref<12x64x16xbf16, #tpu.memory_space<vmem>>, vector<1x64x16xbf16>
    %19 = vector.shape_cast %18 : vector<1x64x16xbf16> to vector<64x16xbf16>
    %cst_23 = arith.constant dense<0.000000e+00> : vector<8x16xf32>
    %20 = tpu.matmul %2, %19, %cst_23 {dimension_numbers = #tpu.dot_dimension_numbers<[1], [0], [0], [1], [0, 0, 1, 1], [], []>} : vector<8x64xbf16>, vector<64x16xbf16>, vector<8x16xf32> -> vector<8x16xf32>
    %c1_24 = arith.constant 1 : index
    %c0_25 = arith.constant 0 : index
    %c0_26 = arith.constant 0 : index
    %21 = vector.load %arg4[%c1_24, %c0_25, %c0_26] : memref<12x1x16xf32, #tpu.memory_space<vmem>>, vector<1x1x16xf32>
    %22 = vector.shape_cast %21 : vector<1x1x16xf32> to vector<1x16xf32>
    %23 = vector.broadcast %22 : vector<1x16xf32> to vector<8x16xf32>
    %24 = arith.addf %20, %23 : vector<8x16xf32>
    %c1_27 = arith.constant 1 : index
    %c0_28 = arith.constant 0 : index
    %c0_29 = arith.constant 0 : index
    %25 = vector.load %arg15[%c1_27, %c0_28, %c0_29] : memref<4x32x8xf32, #tpu.memory_space<vmem>>, vector<1x32x8xf32>
    %26 = vector.shape_cast %25 : vector<1x32x8xf32> to vector<32x8xf32>
    %cst_30 = arith.constant dense<0.000000e+00> : vector<32x16xf32>
    %27 = tpu.matmul %26, %24, %cst_30 {dimension_numbers = #tpu.dot_dimension_numbers<[1], [0], [0], [1], [0, 0, 1, 1], [], []>} : vector<32x8xf32>, vector<8x16xf32>, vector<32x16xf32> -> vector<32x16xf32>
    %28 = arith.addf %17, %27 : vector<32x16xf32>
    %c2 = arith.constant 2 : index
    %c0_31 = arith.constant 0 : index
    %c0_32 = arith.constant 0 : index
    %29 = vector.load %arg3[%c2, %c0_31, %c0_32] : memref<12x64x16xbf16, #tpu.memory_space<vmem>>, vector<1x64x16xbf16>
    %30 = vector.shape_cast %29 : vector<1x64x16xbf16> to vector<64x16xbf16>
    %cst_33 = arith.constant dense<0.000000e+00> : vector<8x16xf32>
    %31 = tpu.matmul %2, %30, %cst_33 {dimension_numbers = #tpu.dot_dimension_numbers<[1], [0], [0], [1], [0, 0, 1, 1], [], []>} : vector<8x64xbf16>, vector<64x16xbf16>, vector<8x16xf32> -> vector<8x16xf32>
    %c2_34 = arith.constant 2 : index
    %c0_35 = arith.constant 0 : index
    %c0_36 = arith.constant 0 : index
    %32 = vector.load %arg4[%c2_34, %c0_35, %c0_36] : memref<12x1x16xf32, #tpu.memory_space<vmem>>, vector<1x1x16xf32>
    %33 = vector.shape_cast %32 : vector<1x1x16xf32> to vector<1x16xf32>
    %34 = vector.broadcast %33 : vector<1x16xf32> to vector<8x16xf32>
    %35 = arith.addf %31, %34 : vector<8x16xf32>
    %c2_37 = arith.constant 2 : index
    %c0_38 = arith.constant 0 : index
    %c0_39 = arith.constant 0 : index
    %36 = vector.load %arg15[%c2_37, %c0_38, %c0_39] : memref<4x32x8xf32, #tpu.memory_space<vmem>>, vector<1x32x8xf32>
    %37 = vector.shape_cast %36 : vector<1x32x8xf32> to vector<32x8xf32>
    %cst_40 = arith.constant dense<0.000000e+00> : vector<32x16xf32>
    %38 = tpu.matmul %37, %35, %cst_40 {dimension_numbers = #tpu.dot_dimension_numbers<[1], [0], [0], [1], [0, 0, 1, 1], [], []>} : vector<32x8xf32>, vector<8x16xf32>, vector<32x16xf32> -> vector<32x16xf32>
    %39 = arith.addf %28, %38 : vector<32x16xf32>
    %c3 = arith.constant 3 : index
    %c0_41 = arith.constant 0 : index
    %c0_42 = arith.constant 0 : index
    %40 = vector.load %arg3[%c3, %c0_41, %c0_42] : memref<12x64x16xbf16, #tpu.memory_space<vmem>>, vector<1x64x16xbf16>
    %41 = vector.shape_cast %40 : vector<1x64x16xbf16> to vector<64x16xbf16>
    %cst_43 = arith.constant dense<0.000000e+00> : vector<8x16xf32>
    %42 = tpu.matmul %2, %41, %cst_43 {dimension_numbers = #tpu.dot_dimension_numbers<[1], [0], [0], [1], [0, 0, 1, 1], [], []>} : vector<8x64xbf16>, vector<64x16xbf16>, vector<8x16xf32> -> vector<8x16xf32>
    %c3_44 = arith.constant 3 : index
    %c0_45 = arith.constant 0 : index
    %c0_46 = arith.constant 0 : index
    %43 = vector.load %arg4[%c3_44, %c0_45, %c0_46] : memref<12x1x16xf32, #tpu.memory_space<vmem>>, vector<1x1x16xf32>
    %44 = vector.shape_cast %43 : vector<1x1x16xf32> to vector<1x16xf32>
    %45 = vector.broadcast %44 : vector<1x16xf32> to vector<8x16xf32>
    %46 = arith.addf %42, %45 : vector<8x16xf32>
    %c3_47 = arith.constant 3 : index
    %c0_48 = arith.constant 0 : index
    %c0_49 = arith.constant 0 : index
    %47 = vector.load %arg15[%c3_47, %c0_48, %c0_49] : memref<4x32x8xf32, #tpu.memory_space<vmem>>, vector<1x32x8xf32>
    %48 = vector.shape_cast %47 : vector<1x32x8xf32> to vector<32x8xf32>
    %cst_50 = arith.constant dense<0.000000e+00> : vector<32x16xf32>
    %49 = tpu.matmul %48, %46, %cst_50 {dimension_numbers = #tpu.dot_dimension_numbers<[1], [0], [0], [1], [0, 0, 1, 1], [], []>} : vector<32x8xf32>, vector<8x16xf32>, vector<32x16xf32> -> vector<32x16xf32>
    %50 = arith.addf %39, %49 : vector<32x16xf32>
    %c4 = arith.constant 4 : index
    %c0_51 = arith.constant 0 : index
    %c0_52 = arith.constant 0 : index
    %51 = vector.load %arg3[%c4, %c0_51, %c0_52] : memref<12x64x16xbf16, #tpu.memory_space<vmem>>, vector<1x64x16xbf16>
    %52 = vector.shape_cast %51 : vector<1x64x16xbf16> to vector<64x16xbf16>
    %cst_53 = arith.constant dense<0.000000e+00> : vector<8x16xf32>
    %53 = tpu.matmul %2, %52, %cst_53 {dimension_numbers = #tpu.dot_dimension_numbers<[1], [0], [0], [1], [0, 0, 1, 1], [], []>} : vector<8x64xbf16>, vector<64x16xbf16>, vector<8x16xf32> -> vector<8x16xf32>
    %c4_54 = arith.constant 4 : index
    %c0_55 = arith.constant 0 : index
    %c0_56 = arith.constant 0 : index
    %54 = vector.load %arg4[%c4_54, %c0_55, %c0_56] : memref<12x1x16xf32, #tpu.memory_space<vmem>>, vector<1x1x16xf32>
    %55 = vector.shape_cast %54 : vector<1x1x16xf32> to vector<1x16xf32>
    %56 = vector.broadcast %55 : vector<1x16xf32> to vector<8x16xf32>
    %57 = arith.addf %53, %56 : vector<8x16xf32>
    %c0_57 = arith.constant 0 : index
    %c0_58 = arith.constant 0 : index
    %c0_59 = arith.constant 0 : index
    %58 = vector.load %arg15[%c0_57, %c0_58, %c0_59] : memref<4x32x8xf32, #tpu.memory_space<vmem>>, vector<1x32x8xf32>
    %59 = vector.shape_cast %58 : vector<1x32x8xf32> to vector<32x8xf32>
    %cst_60 = arith.constant dense<0.000000e+00> : vector<32x16xf32>
    %60 = tpu.matmul %59, %57, %cst_60 {dimension_numbers = #tpu.dot_dimension_numbers<[1], [0], [0], [1], [0, 0, 1, 1], [], []>} : vector<32x8xf32>, vector<8x16xf32>, vector<32x16xf32> -> vector<32x16xf32>
    %c5 = arith.constant 5 : index
    %c0_61 = arith.constant 0 : index
    %c0_62 = arith.constant 0 : index
    %61 = vector.load %arg3[%c5, %c0_61, %c0_62] : memref<12x64x16xbf16, #tpu.memory_space<vmem>>, vector<1x64x16xbf16>
    %62 = vector.shape_cast %61 : vector<1x64x16xbf16> to vector<64x16xbf16>
    %cst_63 = arith.constant dense<0.000000e+00> : vector<8x16xf32>
    %63 = tpu.matmul %2, %62, %cst_63 {dimension_numbers = #tpu.dot_dimension_numbers<[1], [0], [0], [1], [0, 0, 1, 1], [], []>} : vector<8x64xbf16>, vector<64x16xbf16>, vector<8x16xf32> -> vector<8x16xf32>
    %c5_64 = arith.constant 5 : index
    %c0_65 = arith.constant 0 : index
    %c0_66 = arith.constant 0 : index
    %64 = vector.load %arg4[%c5_64, %c0_65, %c0_66] : memref<12x1x16xf32, #tpu.memory_space<vmem>>, vector<1x1x16xf32>
    %65 = vector.shape_cast %64 : vector<1x1x16xf32> to vector<1x16xf32>
    %66 = vector.broadcast %65 : vector<1x16xf32> to vector<8x16xf32>
    %67 = arith.addf %63, %66 : vector<8x16xf32>
    %c1_67 = arith.constant 1 : index
    %c0_68 = arith.constant 0 : index
    %c0_69 = arith.constant 0 : index
    %68 = vector.load %arg15[%c1_67, %c0_68, %c0_69] : memref<4x32x8xf32, #tpu.memory_space<vmem>>, vector<1x32x8xf32>
    %69 = vector.shape_cast %68 : vector<1x32x8xf32> to vector<32x8xf32>
    %cst_70 = arith.constant dense<0.000000e+00> : vector<32x16xf32>
    %70 = tpu.matmul %69, %67, %cst_70 {dimension_numbers = #tpu.dot_dimension_numbers<[1], [0], [0], [1], [0, 0, 1, 1], [], []>} : vector<32x8xf32>, vector<8x16xf32>, vector<32x16xf32> -> vector<32x16xf32>
    %71 = arith.addf %60, %70 : vector<32x16xf32>
    %c6 = arith.constant 6 : index
    %c0_71 = arith.constant 0 : index
    %c0_72 = arith.constant 0 : index
    %72 = vector.load %arg3[%c6, %c0_71, %c0_72] : memref<12x64x16xbf16, #tpu.memory_space<vmem>>, vector<1x64x16xbf16>
    %73 = vector.shape_cast %72 : vector<1x64x16xbf16> to vector<64x16xbf16>
    %cst_73 = arith.constant dense<0.000000e+00> : vector<8x16xf32>
    %74 = tpu.matmul %2, %73, %cst_73 {dimension_numbers = #tpu.dot_dimension_numbers<[1], [0], [0], [1], [0, 0, 1, 1], [], []>} : vector<8x64xbf16>, vector<64x16xbf16>, vector<8x16xf32> -> vector<8x16xf32>
    %c6_74 = arith.constant 6 : index
    %c0_75 = arith.constant 0 : index
    %c0_76 = arith.constant 0 : index
    %75 = vector.load %arg4[%c6_74, %c0_75, %c0_76] : memref<12x1x16xf32, #tpu.memory_space<vmem>>, vector<1x1x16xf32>
    %76 = vector.shape_cast %75 : vector<1x1x16xf32> to vector<1x16xf32>
    %77 = vector.broadcast %76 : vector<1x16xf32> to vector<8x16xf32>
    %78 = arith.addf %74, %77 : vector<8x16xf32>
    %c2_77 = arith.constant 2 : index
    %c0_78 = arith.constant 0 : index
    %c0_79 = arith.constant 0 : index
    %79 = vector.load %arg15[%c2_77, %c0_78, %c0_79] : memref<4x32x8xf32, #tpu.memory_space<vmem>>, vector<1x32x8xf32>
    %80 = vector.shape_cast %79 : vector<1x32x8xf32> to vector<32x8xf32>
    %cst_80 = arith.constant dense<0.000000e+00> : vector<32x16xf32>
    %81 = tpu.matmul %80, %78, %cst_80 {dimension_numbers = #tpu.dot_dimension_numbers<[1], [0], [0], [1], [0, 0, 1, 1], [], []>} : vector<32x8xf32>, vector<8x16xf32>, vector<32x16xf32> -> vector<32x16xf32>
    %82 = arith.addf %71, %81 : vector<32x16xf32>
    %c7 = arith.constant 7 : index
    %c0_81 = arith.constant 0 : index
    %c0_82 = arith.constant 0 : index
    %83 = vector.load %arg3[%c7, %c0_81, %c0_82] : memref<12x64x16xbf16, #tpu.memory_space<vmem>>, vector<1x64x16xbf16>
    %84 = vector.shape_cast %83 : vector<1x64x16xbf16> to vector<64x16xbf16>
    %cst_83 = arith.constant dense<0.000000e+00> : vector<8x16xf32>
    %85 = tpu.matmul %2, %84, %cst_83 {dimension_numbers = #tpu.dot_dimension_numbers<[1], [0], [0], [1], [0, 0, 1, 1], [], []>} : vector<8x64xbf16>, vector<64x16xbf16>, vector<8x16xf32> -> vector<8x16xf32>
    %c7_84 = arith.constant 7 : index
    %c0_85 = arith.constant 0 : index
    %c0_86 = arith.constant 0 : index
    %86 = vector.load %arg4[%c7_84, %c0_85, %c0_86] : memref<12x1x16xf32, #tpu.memory_space<vmem>>, vector<1x1x16xf32>
    %87 = vector.shape_cast %86 : vector<1x1x16xf32> to vector<1x16xf32>
    %88 = vector.broadcast %87 : vector<1x16xf32> to vector<8x16xf32>
    %89 = arith.addf %85, %88 : vector<8x16xf32>
    %c3_87 = arith.constant 3 : index
    %c0_88 = arith.constant 0 : index
    %c0_89 = arith.constant 0 : index
    %90 = vector.load %arg15[%c3_87, %c0_88, %c0_89] : memref<4x32x8xf32, #tpu.memory_space<vmem>>, vector<1x32x8xf32>
    %91 = vector.shape_cast %90 : vector<1x32x8xf32> to vector<32x8xf32>
    %cst_90 = arith.constant dense<0.000000e+00> : vector<32x16xf32>
    %92 = tpu.matmul %91, %89, %cst_90 {dimension_numbers = #tpu.dot_dimension_numbers<[1], [0], [0], [1], [0, 0, 1, 1], [], []>} : vector<32x8xf32>, vector<8x16xf32>, vector<32x16xf32> -> vector<32x16xf32>
    %93 = arith.addf %82, %92 : vector<32x16xf32>
    %c8 = arith.constant 8 : index
    %c0_91 = arith.constant 0 : index
    %c0_92 = arith.constant 0 : index
    %94 = vector.load %arg3[%c8, %c0_91, %c0_92] : memref<12x64x16xbf16, #tpu.memory_space<vmem>>, vector<1x64x16xbf16>
    %95 = vector.shape_cast %94 : vector<1x64x16xbf16> to vector<64x16xbf16>
    %cst_93 = arith.constant dense<0.000000e+00> : vector<8x16xf32>
    %96 = tpu.matmul %2, %95, %cst_93 {dimension_numbers = #tpu.dot_dimension_numbers<[1], [0], [0], [1], [0, 0, 1, 1], [], []>} : vector<8x64xbf16>, vector<64x16xbf16>, vector<8x16xf32> -> vector<8x16xf32>
    %c8_94 = arith.constant 8 : index
    %c0_95 = arith.constant 0 : index
    %c0_96 = arith.constant 0 : index
    %97 = vector.load %arg4[%c8_94, %c0_95, %c0_96] : memref<12x1x16xf32, #tpu.memory_space<vmem>>, vector<1x1x16xf32>
    %98 = vector.shape_cast %97 : vector<1x1x16xf32> to vector<1x16xf32>
    %99 = vector.broadcast %98 : vector<1x16xf32> to vector<8x16xf32>
    %100 = arith.addf %96, %99 : vector<8x16xf32>
    %c0_97 = arith.constant 0 : index
    %c0_98 = arith.constant 0 : index
    %c0_99 = arith.constant 0 : index
    %101 = vector.load %arg15[%c0_97, %c0_98, %c0_99] : memref<4x32x8xf32, #tpu.memory_space<vmem>>, vector<1x32x8xf32>
    %102 = vector.shape_cast %101 : vector<1x32x8xf32> to vector<32x8xf32>
    %cst_100 = arith.constant dense<0.000000e+00> : vector<32x16xf32>
    %103 = tpu.matmul %102, %100, %cst_100 {dimension_numbers = #tpu.dot_dimension_numbers<[1], [0], [0], [1], [0, 0, 1, 1], [], []>} : vector<32x8xf32>, vector<8x16xf32>, vector<32x16xf32> -> vector<32x16xf32>
    %c9 = arith.constant 9 : index
    %c0_101 = arith.constant 0 : index
    %c0_102 = arith.constant 0 : index
    %104 = vector.load %arg3[%c9, %c0_101, %c0_102] : memref<12x64x16xbf16, #tpu.memory_space<vmem>>, vector<1x64x16xbf16>
    %105 = vector.shape_cast %104 : vector<1x64x16xbf16> to vector<64x16xbf16>
    %cst_103 = arith.constant dense<0.000000e+00> : vector<8x16xf32>
    %106 = tpu.matmul %2, %105, %cst_103 {dimension_numbers = #tpu.dot_dimension_numbers<[1], [0], [0], [1], [0, 0, 1, 1], [], []>} : vector<8x64xbf16>, vector<64x16xbf16>, vector<8x16xf32> -> vector<8x16xf32>
    %c9_104 = arith.constant 9 : index
    %c0_105 = arith.constant 0 : index
    %c0_106 = arith.constant 0 : index
    %107 = vector.load %arg4[%c9_104, %c0_105, %c0_106] : memref<12x1x16xf32, #tpu.memory_space<vmem>>, vector<1x1x16xf32>
    %108 = vector.shape_cast %107 : vector<1x1x16xf32> to vector<1x16xf32>
    %109 = vector.broadcast %108 : vector<1x16xf32> to vector<8x16xf32>
    %110 = arith.addf %106, %109 : vector<8x16xf32>
    %c1_107 = arith.constant 1 : index
    %c0_108 = arith.constant 0 : index
    %c0_109 = arith.constant 0 : index
    %111 = vector.load %arg15[%c1_107, %c0_108, %c0_109] : memref<4x32x8xf32, #tpu.memory_space<vmem>>, vector<1x32x8xf32>
    %112 = vector.shape_cast %111 : vector<1x32x8xf32> to vector<32x8xf32>
    %cst_110 = arith.constant dense<0.000000e+00> : vector<32x16xf32>
    %113 = tpu.matmul %112, %110, %cst_110 {dimension_numbers = #tpu.dot_dimension_numbers<[1], [0], [0], [1], [0, 0, 1, 1], [], []>} : vector<32x8xf32>, vector<8x16xf32>, vector<32x16xf32> -> vector<32x16xf32>
    %114 = arith.addf %103, %113 : vector<32x16xf32>
    %c10 = arith.constant 10 : index
    %c0_111 = arith.constant 0 : index
    %c0_112 = arith.constant 0 : index
    %115 = vector.load %arg3[%c10, %c0_111, %c0_112] : memref<12x64x16xbf16, #tpu.memory_space<vmem>>, vector<1x64x16xbf16>
    %116 = vector.shape_cast %115 : vector<1x64x16xbf16> to vector<64x16xbf16>
    %cst_113 = arith.constant dense<0.000000e+00> : vector<8x16xf32>
    %117 = tpu.matmul %2, %116, %cst_113 {dimension_numbers = #tpu.dot_dimension_numbers<[1], [0], [0], [1], [0, 0, 1, 1], [], []>} : vector<8x64xbf16>, vector<64x16xbf16>, vector<8x16xf32> -> vector<8x16xf32>
    %c10_114 = arith.constant 10 : index
    %c0_115 = arith.constant 0 : index
    %c0_116 = arith.constant 0 : index
    %118 = vector.load %arg4[%c10_114, %c0_115, %c0_116] : memref<12x1x16xf32, #tpu.memory_space<vmem>>, vector<1x1x16xf32>
    %119 = vector.shape_cast %118 : vector<1x1x16xf32> to vector<1x16xf32>
    %120 = vector.broadcast %119 : vector<1x16xf32> to vector<8x16xf32>
    %121 = arith.addf %117, %120 : vector<8x16xf32>
    %c2_117 = arith.constant 2 : index
    %c0_118 = arith.constant 0 : index
    %c0_119 = arith.constant 0 : index
    %122 = vector.load %arg15[%c2_117, %c0_118, %c0_119] : memref<4x32x8xf32, #tpu.memory_space<vmem>>, vector<1x32x8xf32>
    %123 = vector.shape_cast %122 : vector<1x32x8xf32> to vector<32x8xf32>
    %cst_120 = arith.constant dense<0.000000e+00> : vector<32x16xf32>
    %124 = tpu.matmul %123, %121, %cst_120 {dimension_numbers = #tpu.dot_dimension_numbers<[1], [0], [0], [1], [0, 0, 1, 1], [], []>} : vector<32x8xf32>, vector<8x16xf32>, vector<32x16xf32> -> vector<32x16xf32>
    %125 = arith.addf %114, %124 : vector<32x16xf32>
    %c11 = arith.constant 11 : index
    %c0_121 = arith.constant 0 : index
    %c0_122 = arith.constant 0 : index
    %126 = vector.load %arg3[%c11, %c0_121, %c0_122] : memref<12x64x16xbf16, #tpu.memory_space<vmem>>, vector<1x64x16xbf16>
    %127 = vector.shape_cast %126 : vector<1x64x16xbf16> to vector<64x16xbf16>
    %cst_123 = arith.constant dense<0.000000e+00> : vector<8x16xf32>
    %128 = tpu.matmul %2, %127, %cst_123 {dimension_numbers = #tpu.dot_dimension_numbers<[1], [0], [0], [1], [0, 0, 1, 1], [], []>} : vector<8x64xbf16>, vector<64x16xbf16>, vector<8x16xf32> -> vector<8x16xf32>
    %c11_124 = arith.constant 11 : index
    %c0_125 = arith.constant 0 : index
    %c0_126 = arith.constant 0 : index
    %129 = vector.load %arg4[%c11_124, %c0_125, %c0_126] : memref<12x1x16xf32, #tpu.memory_space<vmem>>, vector<1x1x16xf32>
    %130 = vector.shape_cast %129 : vector<1x1x16xf32> to vector<1x16xf32>
    %131 = vector.broadcast %130 : vector<1x16xf32> to vector<8x16xf32>
    %132 = arith.addf %128, %131 : vector<8x16xf32>
    %c3_127 = arith.constant 3 : index
    %c0_128 = arith.constant 0 : index
    %c0_129 = arith.constant 0 : index
    %133 = vector.load %arg15[%c3_127, %c0_128, %c0_129] : memref<4x32x8xf32, #tpu.memory_space<vmem>>, vector<1x32x8xf32>
    %134 = vector.shape_cast %133 : vector<1x32x8xf32> to vector<32x8xf32>
    %cst_130 = arith.constant dense<0.000000e+00> : vector<32x16xf32>
    %135 = tpu.matmul %134, %132, %cst_130 {dimension_numbers = #tpu.dot_dimension_numbers<[1], [0], [0], [1], [0, 0, 1, 1], [], []>} : vector<32x8xf32>, vector<8x16xf32>, vector<32x16xf32> -> vector<32x16xf32>
    %136 = arith.addf %125, %135 : vector<32x16xf32>
    %137 = arith.truncf %50 : vector<32x16xf32> to vector<32x16xbf16>
    %138 = arith.truncf %93 : vector<32x16xf32> to vector<32x16xbf16>
    "tpu.trace_start"() <{level = 10 : i32, message = "qd,kd->qk"}> : () -> ()
    %cst_131 = arith.constant dense<0.000000e+00> : vector<32x32xf32>
    %139 = tpu.matmul %137, %138, %cst_131 {dimension_numbers = #tpu.dot_dimension_numbers<[1], [1], [0], [0], [0, 0, 1, 0], [], []>} : vector<32x16xbf16>, vector<32x16xbf16>, vector<32x32xf32> -> vector<32x32xf32>
    "tpu.trace_stop"() : () -> ()
    %cst_132 = arith.constant 5.000000e-01 : f32
    %140 = vector.broadcast %cst_132 : f32 to vector<32x32xf32>
    %141 = arith.mulf %139, %140 : vector<32x32xf32>
    %142 = arith.addf %141, %4 : vector<32x32xf32>
    %cst_133 = arith.constant dense<0xFF800000> : vector<32xf32>
    %143 = vector.multi_reduction <maximumf>, %142, %cst_133 [1] : vector<32x32xf32> to vector<32xf32>
    %144 = vector.shape_cast %143 : vector<32xf32> to vector<32x1xf32>
    %145 = vector.broadcast %144 : vector<32x1xf32> to vector<32x32xf32>
    %146 = arith.subf %142, %145 : vector<32x32xf32>
    %147 = math.exp %146 : vector<32x32xf32>
    %cst_134 = arith.constant dense<0.000000e+00> : vector<32xf32>
    %148 = vector.multi_reduction <add>, %147, %cst_134 [1] : vector<32x32xf32> to vector<32xf32>
    %149 = vector.shape_cast %148 : vector<32xf32> to vector<32x1xf32>
    %150 = vector.broadcast %149 : vector<32x1xf32> to vector<32x32xf32>
    %151 = arith.divf %147, %150 : vector<32x32xf32>
    %c0_135 = arith.constant 0 : index
    %c0_136 = arith.constant 0 : index
    %c0_137 = arith.constant 0 : index
    %152 = vector.load %arg17[%c0_135, %c0_136, %c0_137] : memref<4x32x8xf32, #tpu.memory_space<vmem>>, vector<1x32x8xf32>
    %153 = vector.shape_cast %152 : vector<1x32x8xf32> to vector<32x8xf32>
    %cst_138 = arith.constant dense<0.000000e+00> : vector<32xf32>
    %154 = vector.multi_reduction <add>, %153, %cst_138 [1] : vector<32x8xf32> to vector<32xf32>
    %155 = vector.shape_cast %154 : vector<32xf32> to vector<32x1xf32>
    %cst_139 = arith.constant dense<0.000000e+00> : vector<32x8xf32>
    %156 = tpu.matmul %151, %153, %cst_139 {dimension_numbers = #tpu.dot_dimension_numbers<[1], [0], [0], [1], [0, 0, 1, 1], [], []>} : vector<32x32xf32>, vector<32x8xf32>, vector<32x8xf32> -> vector<32x8xf32>
    %157 = vector.broadcast %155 : vector<32x1xf32> to vector<32x8xf32>
    %158 = arith.mulf %157, %156 : vector<32x8xf32>
    %c1_140 = arith.constant 1 : index
    %c0_141 = arith.constant 0 : index
    %c0_142 = arith.constant 0 : index
    %159 = vector.load %arg17[%c1_140, %c0_141, %c0_142] : memref<4x32x8xf32, #tpu.memory_space<vmem>>, vector<1x32x8xf32>
    %160 = vector.shape_cast %159 : vector<1x32x8xf32> to vector<32x8xf32>
    %cst_143 = arith.constant dense<0.000000e+00> : vector<32xf32>
    %161 = vector.multi_reduction <add>, %160, %cst_143 [1] : vector<32x8xf32> to vector<32xf32>
    %162 = vector.shape_cast %161 : vector<32xf32> to vector<32x1xf32>
    %cst_144 = arith.constant dense<0.000000e+00> : vector<32x8xf32>
    %163 = tpu.matmul %151, %160, %cst_144 {dimension_numbers = #tpu.dot_dimension_numbers<[1], [0], [0], [1], [0, 0, 1, 1], [], []>} : vector<32x32xf32>, vector<32x8xf32>, vector<32x8xf32> -> vector<32x8xf32>
    %164 = vector.broadcast %162 : vector<32x1xf32> to vector<32x8xf32>
    %165 = arith.mulf %164, %163 : vector<32x8xf32>
    %166 = arith.addf %158, %165 : vector<32x8xf32>
    %c2_145 = arith.constant 2 : index
    %c0_146 = arith.constant 0 : index
    %c0_147 = arith.constant 0 : index
    %167 = vector.load %arg17[%c2_145, %c0_146, %c0_147] : memref<4x32x8xf32, #tpu.memory_space<vmem>>, vector<1x32x8xf32>
    %168 = vector.shape_cast %167 : vector<1x32x8xf32> to vector<32x8xf32>
    %cst_148 = arith.constant dense<0.000000e+00> : vector<32xf32>
    %169 = vector.multi_reduction <add>, %168, %cst_148 [1] : vector<32x8xf32> to vector<32xf32>
    %170 = vector.shape_cast %169 : vector<32xf32> to vector<32x1xf32>
    %cst_149 = arith.constant dense<0.000000e+00> : vector<32x8xf32>
    %171 = tpu.matmul %151, %168, %cst_149 {dimension_numbers = #tpu.dot_dimension_numbers<[1], [0], [0], [1], [0, 0, 1, 1], [], []>} : vector<32x32xf32>, vector<32x8xf32>, vector<32x8xf32> -> vector<32x8xf32>
    %172 = vector.broadcast %170 : vector<32x1xf32> to vector<32x8xf32>
    %173 = arith.mulf %172, %171 : vector<32x8xf32>
    %174 = arith.addf %166, %173 : vector<32x8xf32>
    %c3_150 = arith.constant 3 : index
    %c0_151 = arith.constant 0 : index
    %c0_152 = arith.constant 0 : index
    %175 = vector.load %arg17[%c3_150, %c0_151, %c0_152] : memref<4x32x8xf32, #tpu.memory_space<vmem>>, vector<1x32x8xf32>
    %176 = vector.shape_cast %175 : vector<1x32x8xf32> to vector<32x8xf32>
    %cst_153 = arith.constant dense<0.000000e+00> : vector<32xf32>
    %177 = vector.multi_reduction <add>, %176, %cst_153 [1] : vector<32x8xf32> to vector<32xf32>
    %178 = vector.shape_cast %177 : vector<32xf32> to vector<32x1xf32>
    %cst_154 = arith.constant dense<0.000000e+00> : vector<32x8xf32>
    %179 = tpu.matmul %151, %176, %cst_154 {dimension_numbers = #tpu.dot_dimension_numbers<[1], [0], [0], [1], [0, 0, 1, 1], [], []>} : vector<32x32xf32>, vector<32x8xf32>, vector<32x8xf32> -> vector<32x8xf32>
    %180 = vector.broadcast %178 : vector<32x1xf32> to vector<32x8xf32>
    %181 = arith.mulf %180, %179 : vector<32x8xf32>
    %182 = arith.addf %174, %181 : vector<32x8xf32>
    %c0_155 = arith.constant 0 : index
    %c0_156 = arith.constant 0 : index
    %183 = vector.load %arg20[%c0_155, %c0_156] : memref<32x8xf32, #tpu.memory_space<vmem>>, vector<32x8xf32>
    tpu.vector_store %arg20[%c0_155, %c0_156], %182 {strides = array<i32>} : memref<32x8xf32, #tpu.memory_space<vmem>>, vector<32x8xf32>,
    %184 = arith.truncf %151 : vector<32x32xf32> to vector<32x32xbf16>
    %185 = arith.truncf %136 : vector<32x16xf32> to vector<32x16xbf16>
    %cst_157 = arith.constant dense<0.000000e+00> : vector<32x16xf32>
    %186 = tpu.matmul %184, %185, %cst_157 {dimension_numbers = #tpu.dot_dimension_numbers<[1], [0], [0], [1], [0, 0, 1, 1], [], []>} : vector<32x32xbf16>, vector<32x16xbf16>, vector<32x16xf32> -> vector<32x16xf32>
    %c0_158 = arith.constant 0 : index
    %c0_159 = arith.constant 0 : index
    %c0_160 = arith.constant 0 : index
    %187 = vector.load %arg16[%c0_158, %c0_159, %c0_160] : memref<4x8x32xf32, #tpu.memory_space<vmem>>, vector<1x8x32xf32>
    %188 = vector.shape_cast %187 : vector<1x8x32xf32> to vector<8x32xf32>
    %cst_161 = arith.constant dense<0.000000e+00> : vector<8x16xf32>
    %189 = tpu.matmul %188, %186, %cst_161 {dimension_numbers = #tpu.dot_dimension_numbers<[1], [0], [0], [1], [0, 0, 1, 1], [], []>} : vector<8x32xf32>, vector<32x16xf32>, vector<8x16xf32> -> vector<8x16xf32>
    %190 = arith.truncf %189 : vector<8x16xf32> to vector<8x16xbf16>
    %c0_162 = arith.constant 0 : index
    %c0_163 = arith.constant 0 : index
    %c0_164 = arith.constant 0 : index
    %191 = vector.load %arg5[%c0_162, %c0_163, %c0_164] : memref<4x16x64xbf16, #tpu.memory_space<vmem>>, vector<1x16x64xbf16>
    %192 = vector.shape_cast %191 : vector<1x16x64xbf16> to vector<16x64xbf16>
    %cst_165 = arith.constant dense<0.000000e+00> : vector<8x64xf32>
    %193 = tpu.matmul %190, %192, %cst_165 {dimension_numbers = #tpu.dot_dimension_numbers<[1], [0], [0], [1], [0, 0, 1, 1], [], []>} : vector<8x16xbf16>, vector<16x64xbf16>, vector<8x64xf32> -> vector<8x64xf32>
    %c1_166 = arith.constant 1 : index
    %c0_167 = arith.constant 0 : index
    %c0_168 = arith.constant 0 : index
    %194 = vector.load %arg16[%c1_166, %c0_167, %c0_168] : memref<4x8x32xf32, #tpu.memory_space<vmem>>, vector<1x8x32xf32>
    %195 = vector.shape_cast %194 : vector<1x8x32xf32> to vector<8x32xf32>
    %cst_169 = arith.constant dense<0.000000e+00> : vector<8x16xf32>
    %196 = tpu.matmul %195, %186, %cst_169 {dimension_numbers = #tpu.dot_dimension_numbers<[1], [0], [0], [1], [0, 0, 1, 1], [], []>} : vector<8x32xf32>, vector<32x16xf32>, vector<8x16xf32> -> vector<8x16xf32>
    %197 = arith.truncf %196 : vector<8x16xf32> to vector<8x16xbf16>
    %c1_170 = arith.constant 1 : index
    %c0_171 = arith.constant 0 : index
    %c0_172 = arith.constant 0 : index
    %198 = vector.load %arg5[%c1_170, %c0_171, %c0_172] : memref<4x16x64xbf16, #tpu.memory_space<vmem>>, vector<1x16x64xbf16>
    %199 = vector.shape_cast %198 : vector<1x16x64xbf16> to vector<16x64xbf16>
    %cst_173 = arith.constant dense<0.000000e+00> : vector<8x64xf32>
    %200 = tpu.matmul %197, %199, %cst_173 {dimension_numbers = #tpu.dot_dimension_numbers<[1], [0], [0], [1], [0, 0, 1, 1], [], []>} : vector<8x16xbf16>, vector<16x64xbf16>, vector<8x64xf32> -> vector<8x64xf32>
    %201 = arith.addf %193, %200 : vector<8x64xf32>
    %c2_174 = arith.constant 2 : index
    %c0_175 = arith.constant 0 : index
    %c0_176 = arith.constant 0 : index
    %202 = vector.load %arg16[%c2_174, %c0_175, %c0_176] : memref<4x8x32xf32, #tpu.memory_space<vmem>>, vector<1x8x32xf32>
    %203 = vector.shape_cast %202 : vector<1x8x32xf32> to vector<8x32xf32>
    %cst_177 = arith.constant dense<0.000000e+00> : vector<8x16xf32>
    %204 = tpu.matmul %203, %186, %cst_177 {dimension_numbers = #tpu.dot_dimension_numbers<[1], [0], [0], [1], [0, 0, 1, 1], [], []>} : vector<8x32xf32>, vector<32x16xf32>, vector<8x16xf32> -> vector<8x16xf32>
    %205 = arith.truncf %204 : vector<8x16xf32> to vector<8x16xbf16>
    %c2_178 = arith.constant 2 : index
    %c0_179 = arith.constant 0 : index
    %c0_180 = arith.constant 0 : index
    %206 = vector.load %arg5[%c2_178, %c0_179, %c0_180] : memref<4x16x64xbf16, #tpu.memory_space<vmem>>, vector<1x16x64xbf16>
    %207 = vector.shape_cast %206 : vector<1x16x64xbf16> to vector<16x64xbf16>
    %cst_181 = arith.constant dense<0.000000e+00> : vector<8x64xf32>
    %208 = tpu.matmul %205, %207, %cst_181 {dimension_numbers = #tpu.dot_dimension_numbers<[1], [0], [0], [1], [0, 0, 1, 1], [], []>} : vector<8x16xbf16>, vector<16x64xbf16>, vector<8x64xf32> -> vector<8x64xf32>
    %209 = arith.addf %201, %208 : vector<8x64xf32>
    %c3_182 = arith.constant 3 : index
    %c0_183 = arith.constant 0 : index
    %c0_184 = arith.constant 0 : index
    %210 = vector.load %arg16[%c3_182, %c0_183, %c0_184] : memref<4x8x32xf32, #tpu.memory_space<vmem>>, vector<1x8x32xf32>
    %211 = vector.shape_cast %210 : vector<1x8x32xf32> to vector<8x32xf32>
    %cst_185 = arith.constant dense<0.000000e+00> : vector<8x16xf32>
    %212 = tpu.matmul %211, %186, %cst_185 {dimension_numbers = #tpu.dot_dimension_numbers<[1], [0], [0], [1], [0, 0, 1, 1], [], []>} : vector<8x32xf32>, vector<32x16xf32>, vector<8x16xf32> -> vector<8x16xf32>
    %213 = arith.truncf %212 : vector<8x16xf32> to vector<8x16xbf16>
    %c3_186 = arith.constant 3 : index
    %c0_187 = arith.constant 0 : index
    %c0_188 = arith.constant 0 : index
    %214 = vector.load %arg5[%c3_186, %c0_187, %c0_188] : memref<4x16x64xbf16, #tpu.memory_space<vmem>>, vector<1x16x64xbf16>
    %215 = vector.shape_cast %214 : vector<1x16x64xbf16> to vector<16x64xbf16>
    %cst_189 = arith.constant dense<0.000000e+00> : vector<8x64xf32>
    %216 = tpu.matmul %213, %215, %cst_189 {dimension_numbers = #tpu.dot_dimension_numbers<[1], [0], [0], [1], [0, 0, 1, 1], [], []>} : vector<8x16xbf16>, vector<16x64xbf16>, vector<8x64xf32> -> vector<8x64xf32>
    %217 = arith.addf %209, %216 : vector<8x64xf32>
    %218 = vector.broadcast %5 : vector<1x64xf32> to vector<8x64xf32>
    %219 = arith.addf %217, %218 : vector<8x64xf32>
    %220 = arith.addf %0, %219 : vector<8x64xf32>
    %cst_190 = arith.constant dense<0.000000e+00> : vector<8xf32>
    %221 = vector.multi_reduction <add>, %220, %cst_190 [1] : vector<8x64xf32> to vector<8xf32>
    %222 = vector.shape_cast %221 : vector<8xf32> to vector<8x1xf32>
    %cst_191 = arith.constant 6.400000e+01 : f32
    %223 = vector.broadcast %cst_191 : f32 to vector<8x1xf32>
    %224 = arith.divf %222, %223 : vector<8x1xf32>
    %225 = vector.broadcast %224 : vector<8x1xf32> to vector<8x64xf32>
    %226 = arith.subf %220, %225 : vector<8x64xf32>
    %227 = arith.mulf %226, %226 : vector<8x64xf32>
    %cst_192 = arith.constant dense<0.000000e+00> : vector<8xf32>
    %228 = vector.multi_reduction <add>, %227, %cst_192 [1] : vector<8x64xf32> to vector<8xf32>
    %229 = vector.shape_cast %228 : vector<8xf32> to vector<8x1xf32>
    %cst_193 = arith.constant 6.400000e+01 : f32
    %230 = vector.broadcast %cst_193 : f32 to vector<8x1xf32>
    %231 = arith.divf %229, %230 : vector<8x1xf32>
    %cst_194 = arith.constant 9.99999974E-6 : f32
    %232 = vector.broadcast %cst_194 : f32 to vector<8x1xf32>
    %233 = arith.addf %231, %232 : vector<8x1xf32>
    %234 = math.rsqrt %233 : vector<8x1xf32>
    %235 = vector.broadcast %234 : vector<8x1xf32> to vector<8x64xf32>
    %236 = arith.mulf %226, %235 : vector<8x64xf32>
    %237 = vector.broadcast %6 : vector<1x64xf32> to vector<8x64xf32>
    %238 = arith.mulf %236, %237 : vector<8x64xf32>
    %239 = vector.broadcast %7 : vector<1x64xf32> to vector<8x64xf32>
    %240 = arith.addf %238, %239 : vector<8x64xf32>
    %241 = arith.truncf %240 : vector<8x64xf32> to vector<8x64xbf16>
    %c0_195 = arith.constant 0 : index
    %c0_196 = arith.constant 0 : index
    %c0_197 = arith.constant 0 : index
    %242 = vector.load %arg3[%c0_195, %c0_196, %c0_197] : memref<12x64x16xbf16, #tpu.memory_space<vmem>>, vector<1x64x16xbf16>
    %243 = vector.shape_cast %242 : vector<1x64x16xbf16> to vector<64x16xbf16>
    %cst_198 = arith.constant dense<0.000000e+00> : vector<8x16xf32>
    %244 = tpu.matmul %241, %243, %cst_198 {dimension_numbers = #tpu.dot_dimension_numbers<[1], [0], [0], [1], [0, 0, 1, 1], [], []>} : vector<8x64xbf16>, vector<64x16xbf16>, vector<8x16xf32> -> vector<8x16xf32>
    %c0_199 = arith.constant 0 : index
    %c0_200 = arith.constant 0 : index
    %c0_201 = arith.constant 0 : index
    %245 = vector.load %arg4[%c0_199, %c0_200, %c0_201] : memref<12x1x16xf32, #tpu.memory_space<vmem>>, vector<1x1x16xf32>
    %246 = vector.shape_cast %245 : vector<1x1x16xf32> to vector<1x16xf32>
    %247 = vector.broadcast %246 : vector<1x16xf32> to vector<8x16xf32>
    %248 = arith.addf %244, %247 : vector<8x16xf32>
    %c0_202 = arith.constant 0 : index
    %c0_203 = arith.constant 0 : index
    %c0_204 = arith.constant 0 : index
    %249 = vector.load %arg15[%c0_202, %c0_203, %c0_204] : memref<4x32x8xf32, #tpu.memory_space<vmem>>, vector<1x32x8xf32>
    %250 = vector.shape_cast %249 : vector<1x32x8xf32> to vector<32x8xf32>
    %cst_205 = arith.constant dense<0.000000e+00> : vector<32x16xf32>
    %251 = tpu.matmul %250, %248, %cst_205 {dimension_numbers = #tpu.dot_dimension_numbers<[1], [0], [0], [1], [0, 0, 1, 1], [], []>} : vector<32x8xf32>, vector<8x16xf32>, vector<32x16xf32> -> vector<32x16xf32>
    %c1_206 = arith.constant 1 : index
    %c0_207 = arith.constant 0 : index
    %c0_208 = arith.constant 0 : index
    %252 = vector.load %arg3[%c1_206, %c0_207, %c0_208] : memref<12x64x16xbf16, #tpu.memory_space<vmem>>, vector<1x64x16xbf16>
    %253 = vector.shape_cast %252 : vector<1x64x16xbf16> to vector<64x16xbf16>
    %cst_209 = arith.constant dense<0.000000e+00> : vector<8x16xf32>
    %254 = tpu.matmul %241, %253, %cst_209 {dimension_numbers = #tpu.dot_dimension_numbers<[1], [0], [0], [1], [0, 0, 1, 1], [], []>} : vector<8x64xbf16>, vector<64x16xbf16>, vector<8x16xf32> -> vector<8x16xf32>
    %c1_210 = arith.constant 1 : index
    %c0_211 = arith.constant 0 : index
    %c0_212 = arith.constant 0 : index
    %255 = vector.load %arg4[%c1_210, %c0_211, %c0_212] : memref<12x1x16xf32, #tpu.memory_space<vmem>>, vector<1x1x16xf32>
    %256 = vector.shape_cast %255 : vector<1x1x16xf32> to vector<1x16xf32>
    %257 = vector.broadcast %256 : vector<1x16xf32> to vector<8x16xf32>
    %258 = arith.addf %254, %257 : vector<8x16xf32>
    %c1_213 = arith.constant 1 : index
    %c0_214 = arith.constant 0 : index
    %c0_215 = arith.constant 0 : index
    %259 = vector.load %arg15[%c1_213, %c0_214, %c0_215] : memref<4x32x8xf32, #tpu.memory_space<vmem>>, vector<1x32x8xf32>
    %260 = vector.shape_cast %259 : vector<1x32x8xf32> to vector<32x8xf32>
    %cst_216 = arith.constant dense<0.000000e+00> : vector<32x16xf32>
    %261 = tpu.matmul %260, %258, %cst_216 {dimension_numbers = #tpu.dot_dimension_numbers<[1], [0], [0], [1], [0, 0, 1, 1], [], []>} : vector<32x8xf32>, vector<8x16xf32>, vector<32x16xf32> -> vector<32x16xf32>
    %262 = arith.addf %251, %261 : vector<32x16xf32>
    %c2_217 = arith.constant 2 : index
    %c0_218 = arith.constant 0 : index
    %c0_219 = arith.constant 0 : index
    %263 = vector.load %arg3[%c2_217, %c0_218, %c0_219] : memref<12x64x16xbf16, #tpu.memory_space<vmem>>, vector<1x64x16xbf16>
    %264 = vector.shape_cast %263 : vector<1x64x16xbf16> to vector<64x16xbf16>
    %cst_220 = arith.constant dense<0.000000e+00> : vector<8x16xf32>
    %265 = tpu.matmul %241, %264, %cst_220 {dimension_numbers = #tpu.dot_dimension_numbers<[1], [0], [0], [1], [0, 0, 1, 1], [], []>} : vector<8x64xbf16>, vector<64x16xbf16>, vector<8x16xf32> -> vector<8x16xf32>
    %c2_221 = arith.constant 2 : index
    %c0_222 = arith.constant 0 : index
    %c0_223 = arith.constant 0 : index
    %266 = vector.load %arg4[%c2_221, %c0_222, %c0_223] : memref<12x1x16xf32, #tpu.memory_space<vmem>>, vector<1x1x16xf32>
    %267 = vector.shape_cast %266 : vector<1x1x16xf32> to vector<1x16xf32>
    %268 = vector.broadcast %267 : vector<1x16xf32> to vector<8x16xf32>
    %269 = arith.addf %265, %268 : vector<8x16xf32>
    %c2_224 = arith.constant 2 : index
    %c0_225 = arith.constant 0 : index
    %c0_226 = arith.constant 0 : index
    %270 = vector.load %arg15[%c2_224, %c0_225, %c0_226] : memref<4x32x8xf32, #tpu.memory_space<vmem>>, vector<1x32x8xf32>
    %271 = vector.shape_cast %270 : vector<1x32x8xf32> to vector<32x8xf32>
    %cst_227 = arith.constant dense<0.000000e+00> : vector<32x16xf32>
    %272 = tpu.matmul %271, %269, %cst_227 {dimension_numbers = #tpu.dot_dimension_numbers<[1], [0], [0], [1], [0, 0, 1, 1], [], []>} : vector<32x8xf32>, vector<8x16xf32>, vector<32x16xf32> -> vector<32x16xf32>
    %273 = arith.addf %262, %272 : vector<32x16xf32>
    %c3_228 = arith.constant 3 : index
    %c0_229 = arith.constant 0 : index
    %c0_230 = arith.constant 0 : index
    %274 = vector.load %arg3[%c3_228, %c0_229, %c0_230] : memref<12x64x16xbf16, #tpu.memory_space<vmem>>, vector<1x64x16xbf16>
    %275 = vector.shape_cast %274 : vector<1x64x16xbf16> to vector<64x16xbf16>
    %cst_231 = arith.constant dense<0.000000e+00> : vector<8x16xf32>
    %276 = tpu.matmul %241, %275, %cst_231 {dimension_numbers = #tpu.dot_dimension_numbers<[1], [0], [0], [1], [0, 0, 1, 1], [], []>} : vector<8x64xbf16>, vector<64x16xbf16>, vector<8x16xf32> -> vector<8x16xf32>
    %c3_232 = arith.constant 3 : index
    %c0_233 = arith.constant 0 : index
    %c0_234 = arith.constant 0 : index
    %277 = vector.load %arg4[%c3_232, %c0_233, %c0_234] : memref<12x1x16xf32, #tpu.memory_space<vmem>>, vector<1x1x16xf32>
    %278 = vector.shape_cast %277 : vector<1x1x16xf32> to vector<1x16xf32>
    %279 = vector.broadcast %278 : vector<1x16xf32> to vector<8x16xf32>
    %280 = arith.addf %276, %279 : vector<8x16xf32>
    %c3_235 = arith.constant 3 : index
    %c0_236 = arith.constant 0 : index
    %c0_237 = arith.constant 0 : index
    %281 = vector.load %arg15[%c3_235, %c0_236, %c0_237] : memref<4x32x8xf32, #tpu.memory_space<vmem>>, vector<1x32x8xf32>
    %282 = vector.shape_cast %281 : vector<1x32x8xf32> to vector<32x8xf32>
    %cst_238 = arith.constant dense<0.000000e+00> : vector<32x16xf32>
    %283 = tpu.matmul %282, %280, %cst_238 {dimension_numbers = #tpu.dot_dimension_numbers<[1], [0], [0], [1], [0, 0, 1, 1], [], []>} : vector<32x8xf32>, vector<8x16xf32>, vector<32x16xf32> -> vector<32x16xf32>
    %284 = arith.addf %273, %283 : vector<32x16xf32>
    %c4_239 = arith.constant 4 : index
    %c0_240 = arith.constant 0 : index
    %c0_241 = arith.constant 0 : index
    %285 = vector.load %arg3[%c4_239, %c0_240, %c0_241] : memref<12x64x16xbf16, #tpu.memory_space<vmem>>, vector<1x64x16xbf16>
    %286 = vector.shape_cast %285 : vector<1x64x16xbf16> to vector<64x16xbf16>
    %cst_242 = arith.constant dense<0.000000e+00> : vector<8x16xf32>
    %287 = tpu.matmul %3, %286, %cst_242 {dimension_numbers = #tpu.dot_dimension_numbers<[1], [0], [0], [1], [0, 0, 1, 1], [], []>} : vector<8x64xbf16>, vector<64x16xbf16>, vector<8x16xf32> -> vector<8x16xf32>
    %c4_243 = arith.constant 4 : index
    %c0_244 = arith.constant 0 : index
    %c0_245 = arith.constant 0 : index
    %288 = vector.load %arg4[%c4_243, %c0_244, %c0_245] : memref<12x1x16xf32, #tpu.memory_space<vmem>>, vector<1x1x16xf32>
    %289 = vector.shape_cast %288 : vector<1x1x16xf32> to vector<1x16xf32>
    %290 = vector.broadcast %289 : vector<1x16xf32> to vector<8x16xf32>
    %291 = arith.addf %287, %290 : vector<8x16xf32>
    %c0_246 = arith.constant 0 : index
    %c0_247 = arith.constant 0 : index
    %c0_248 = arith.constant 0 : index
    %292 = vector.load %arg15[%c0_246, %c0_247, %c0_248] : memref<4x32x8xf32, #tpu.memory_space<vmem>>, vector<1x32x8xf32>
    %293 = vector.shape_cast %292 : vector<1x32x8xf32> to vector<32x8xf32>
    %cst_249 = arith.constant dense<0.000000e+00> : vector<32x16xf32>
    %294 = tpu.matmul %293, %291, %cst_249 {dimension_numbers = #tpu.dot_dimension_numbers<[1], [0], [0], [1], [0, 0, 1, 1], [], []>} : vector<32x8xf32>, vector<8x16xf32>, vector<32x16xf32> -> vector<32x16xf32>
    %c5_250 = arith.constant 5 : index
    %c0_251 = arith.constant 0 : index
    %c0_252 = arith.constant 0 : index
    %295 = vector.load %arg3[%c5_250, %c0_251, %c0_252] : memref<12x64x16xbf16, #tpu.memory_space<vmem>>, vector<1x64x16xbf16>
    %296 = vector.shape_cast %295 : vector<1x64x16xbf16> to vector<64x16xbf16>
    %cst_253 = arith.constant dense<0.000000e+00> : vector<8x16xf32>
    %297 = tpu.matmul %3, %296, %cst_253 {dimension_numbers = #tpu.dot_dimension_numbers<[1], [0], [0], [1], [0, 0, 1, 1], [], []>} : vector<8x64xbf16>, vector<64x16xbf16>, vector<8x16xf32> -> vector<8x16xf32>
    %c5_254 = arith.constant 5 : index
    %c0_255 = arith.constant 0 : index
    %c0_256 = arith.constant 0 : index
    %298 = vector.load %arg4[%c5_254, %c0_255, %c0_256] : memref<12x1x16xf32, #tpu.memory_space<vmem>>, vector<1x1x16xf32>
    %299 = vector.shape_cast %298 : vector<1x1x16xf32> to vector<1x16xf32>
    %300 = vector.broadcast %299 : vector<1x16xf32> to vector<8x16xf32>
    %301 = arith.addf %297, %300 : vector<8x16xf32>
    %c1_257 = arith.constant 1 : index
    %c0_258 = arith.constant 0 : index
    %c0_259 = arith.constant 0 : index
    %302 = vector.load %arg15[%c1_257, %c0_258, %c0_259] : memref<4x32x8xf32, #tpu.memory_space<vmem>>, vector<1x32x8xf32>
    %303 = vector.shape_cast %302 : vector<1x32x8xf32> to vector<32x8xf32>
    %cst_260 = arith.constant dense<0.000000e+00> : vector<32x16xf32>
    %304 = tpu.matmul %303, %301, %cst_260 {dimension_numbers = #tpu.dot_dimension_numbers<[1], [0], [0], [1], [0, 0, 1, 1], [], []>} : vector<32x8xf32>, vector<8x16xf32>, vector<32x16xf32> -> vector<32x16xf32>
    %305 = arith.addf %294, %304 : vector<32x16xf32>
    %c6_261 = arith.constant 6 : index
    %c0_262 = arith.constant 0 : index
    %c0_263 = arith.constant 0 : index
    %306 = vector.load %arg3[%c6_261, %c0_262, %c0_263] : memref<12x64x16xbf16, #tpu.memory_space<vmem>>, vector<1x64x16xbf16>
    %307 = vector.shape_cast %306 : vector<1x64x16xbf16> to vector<64x16xbf16>
    %cst_264 = arith.constant dense<0.000000e+00> : vector<8x16xf32>
    %308 = tpu.matmul %3, %307, %cst_264 {dimension_numbers = #tpu.dot_dimension_numbers<[1], [0], [0], [1], [0, 0, 1, 1], [], []>} : vector<8x64xbf16>, vector<64x16xbf16>, vector<8x16xf32> -> vector<8x16xf32>
    %c6_265 = arith.constant 6 : index
    %c0_266 = arith.constant 0 : index
    %c0_267 = arith.constant 0 : index
    %309 = vector.load %arg4[%c6_265, %c0_266, %c0_267] : memref<12x1x16xf32, #tpu.memory_space<vmem>>, vector<1x1x16xf32>
    %310 = vector.shape_cast %309 : vector<1x1x16xf32> to vector<1x16xf32>
    %311 = vector.broadcast %310 : vector<1x16xf32> to vector<8x16xf32>
    %312 = arith.addf %308, %311 : vector<8x16xf32>
    %c2_268 = arith.constant 2 : index
    %c0_269 = arith.constant 0 : index
    %c0_270 = arith.constant 0 : index
    %313 = vector.load %arg15[%c2_268, %c0_269, %c0_270] : memref<4x32x8xf32, #tpu.memory_space<vmem>>, vector<1x32x8xf32>
    %314 = vector.shape_cast %313 : vector<1x32x8xf32> to vector<32x8xf32>
    %cst_271 = arith.constant dense<0.000000e+00> : vector<32x16xf32>
    %315 = tpu.matmul %314, %312, %cst_271 {dimension_numbers = #tpu.dot_dimension_numbers<[1], [0], [0], [1], [0, 0, 1, 1], [], []>} : vector<32x8xf32>, vector<8x16xf32>, vector<32x16xf32> -> vector<32x16xf32>
    %316 = arith.addf %305, %315 : vector<32x16xf32>
    %c7_272 = arith.constant 7 : index
    %c0_273 = arith.constant 0 : index
    %c0_274 = arith.constant 0 : index
    %317 = vector.load %arg3[%c7_272, %c0_273, %c0_274] : memref<12x64x16xbf16, #tpu.memory_space<vmem>>, vector<1x64x16xbf16>
    %318 = vector.shape_cast %317 : vector<1x64x16xbf16> to vector<64x16xbf16>
    %cst_275 = arith.constant dense<0.000000e+00> : vector<8x16xf32>
    %319 = tpu.matmul %3, %318, %cst_275 {dimension_numbers = #tpu.dot_dimension_numbers<[1], [0], [0], [1], [0, 0, 1, 1], [], []>} : vector<8x64xbf16>, vector<64x16xbf16>, vector<8x16xf32> -> vector<8x16xf32>
    %c7_276 = arith.constant 7 : index
    %c0_277 = arith.constant 0 : index
    %c0_278 = arith.constant 0 : index
    %320 = vector.load %arg4[%c7_276, %c0_277, %c0_278] : memref<12x1x16xf32, #tpu.memory_space<vmem>>, vector<1x1x16xf32>
    %321 = vector.shape_cast %320 : vector<1x1x16xf32> to vector<1x16xf32>
    %322 = vector.broadcast %321 : vector<1x16xf32> to vector<8x16xf32>
    %323 = arith.addf %319, %322 : vector<8x16xf32>
    %c3_279 = arith.constant 3 : index
    %c0_280 = arith.constant 0 : index
    %c0_281 = arith.constant 0 : index
    %324 = vector.load %arg15[%c3_279, %c0_280, %c0_281] : memref<4x32x8xf32, #tpu.memory_space<vmem>>, vector<1x32x8xf32>
    %325 = vector.shape_cast %324 : vector<1x32x8xf32> to vector<32x8xf32>
    %cst_282 = arith.constant dense<0.000000e+00> : vector<32x16xf32>
    %326 = tpu.matmul %325, %323, %cst_282 {dimension_numbers = #tpu.dot_dimension_numbers<[1], [0], [0], [1], [0, 0, 1, 1], [], []>} : vector<32x8xf32>, vector<8x16xf32>, vector<32x16xf32> -> vector<32x16xf32>
    %327 = arith.addf %316, %326 : vector<32x16xf32>
    %c8_283 = arith.constant 8 : index
    %c0_284 = arith.constant 0 : index
    %c0_285 = arith.constant 0 : index
    %328 = vector.load %arg3[%c8_283, %c0_284, %c0_285] : memref<12x64x16xbf16, #tpu.memory_space<vmem>>, vector<1x64x16xbf16>
    %329 = vector.shape_cast %328 : vector<1x64x16xbf16> to vector<64x16xbf16>
    %cst_286 = arith.constant dense<0.000000e+00> : vector<8x16xf32>
    %330 = tpu.matmul %3, %329, %cst_286 {dimension_numbers = #tpu.dot_dimension_numbers<[1], [0], [0], [1], [0, 0, 1, 1], [], []>} : vector<8x64xbf16>, vector<64x16xbf16>, vector<8x16xf32> -> vector<8x16xf32>
    %c8_287 = arith.constant 8 : index
    %c0_288 = arith.constant 0 : index
    %c0_289 = arith.constant 0 : index
    %331 = vector.load %arg4[%c8_287, %c0_288, %c0_289] : memref<12x1x16xf32, #tpu.memory_space<vmem>>, vector<1x1x16xf32>
    %332 = vector.shape_cast %331 : vector<1x1x16xf32> to vector<1x16xf32>
    %333 = vector.broadcast %332 : vector<1x16xf32> to vector<8x16xf32>
    %334 = arith.addf %330, %333 : vector<8x16xf32>
    %c0_290 = arith.constant 0 : index
    %c0_291 = arith.constant 0 : index
    %c0_292 = arith.constant 0 : index
    %335 = vector.load %arg15[%c0_290, %c0_291, %c0_292] : memref<4x32x8xf32, #tpu.memory_space<vmem>>, vector<1x32x8xf32>
    %336 = vector.shape_cast %335 : vector<1x32x8xf32> to vector<32x8xf32>
    %cst_293 = arith.constant dense<0.000000e+00> : vector<32x16xf32>
    %337 = tpu.matmul %336, %334, %cst_293 {dimension_numbers = #tpu.dot_dimension_numbers<[1], [0], [0], [1], [0, 0, 1, 1], [], []>} : vector<32x8xf32>, vector<8x16xf32>, vector<32x16xf32> -> vector<32x16xf32>
    %c9_294 = arith.constant 9 : index
    %c0_295 = arith.constant 0 : index
    %c0_296 = arith.constant 0 : index
    %338 = vector.load %arg3[%c9_294, %c0_295, %c0_296] : memref<12x64x16xbf16, #tpu.memory_space<vmem>>, vector<1x64x16xbf16>
    %339 = vector.shape_cast %338 : vector<1x64x16xbf16> to vector<64x16xbf16>
    %cst_297 = arith.constant dense<0.000000e+00> : vector<8x16xf32>
    %340 = tpu.matmul %3, %339, %cst_297 {dimension_numbers = #tpu.dot_dimension_numbers<[1], [0], [0], [1], [0, 0, 1, 1], [], []>} : vector<8x64xbf16>, vector<64x16xbf16>, vector<8x16xf32> -> vector<8x16xf32>
    %c9_298 = arith.constant 9 : index
    %c0_299 = arith.constant 0 : index
    %c0_300 = arith.constant 0 : index
    %341 = vector.load %arg4[%c9_298, %c0_299, %c0_300] : memref<12x1x16xf32, #tpu.memory_space<vmem>>, vector<1x1x16xf32>
    %342 = vector.shape_cast %341 : vector<1x1x16xf32> to vector<1x16xf32>
    %343 = vector.broadcast %342 : vector<1x16xf32> to vector<8x16xf32>
    %344 = arith.addf %340, %343 : vector<8x16xf32>
    %c1_301 = arith.constant 1 : index
    %c0_302 = arith.constant 0 : index
    %c0_303 = arith.constant 0 : index
    %345 = vector.load %arg15[%c1_301, %c0_302, %c0_303] : memref<4x32x8xf32, #tpu.memory_space<vmem>>, vector<1x32x8xf32>
    %346 = vector.shape_cast %345 : vector<1x32x8xf32> to vector<32x8xf32>
    %cst_304 = arith.constant dense<0.000000e+00> : vector<32x16xf32>
    %347 = tpu.matmul %346, %344, %cst_304 {dimension_numbers = #tpu.dot_dimension_numbers<[1], [0], [0], [1], [0, 0, 1, 1], [], []>} : vector<32x8xf32>, vector<8x16xf32>, vector<32x16xf32> -> vector<32x16xf32>
    %348 = arith.addf %337, %347 : vector<32x16xf32>
    %c10_305 = arith.constant 10 : index
    %c0_306 = arith.constant 0 : index
    %c0_307 = arith.constant 0 : index
    %349 = vector.load %arg3[%c10_305, %c0_306, %c0_307] : memref<12x64x16xbf16, #tpu.memory_space<vmem>>, vector<1x64x16xbf16>
    %350 = vector.shape_cast %349 : vector<1x64x16xbf16> to vector<64x16xbf16>
    %cst_308 = arith.constant dense<0.000000e+00> : vector<8x16xf32>
    %351 = tpu.matmul %3, %350, %cst_308 {dimension_numbers = #tpu.dot_dimension_numbers<[1], [0], [0], [1], [0, 0, 1, 1], [], []>} : vector<8x64xbf16>, vector<64x16xbf16>, vector<8x16xf32> -> vector<8x16xf32>
    %c10_309 = arith.constant 10 : index
    %c0_310 = arith.constant 0 : index
    %c0_311 = arith.constant 0 : index
    %352 = vector.load %arg4[%c10_309, %c0_310, %c0_311] : memref<12x1x16xf32, #tpu.memory_space<vmem>>, vector<1x1x16xf32>
    %353 = vector.shape_cast %352 : vector<1x1x16xf32> to vector<1x16xf32>
    %354 = vector.broadcast %353 : vector<1x16xf32> to vector<8x16xf32>
    %355 = arith.addf %351, %354 : vector<8x16xf32>
    %c2_312 = arith.constant 2 : index
    %c0_313 = arith.constant 0 : index
    %c0_314 = arith.constant 0 : index
    %356 = vector.load %arg15[%c2_312, %c0_313, %c0_314] : memref<4x32x8xf32, #tpu.memory_space<vmem>>, vector<1x32x8xf32>
    %357 = vector.shape_cast %356 : vector<1x32x8xf32> to vector<32x8xf32>
    %cst_315 = arith.constant dense<0.000000e+00> : vector<32x16xf32>
    %358 = tpu.matmul %357, %355, %cst_315 {dimension_numbers = #tpu.dot_dimension_numbers<[1], [0], [0], [1], [0, 0, 1, 1], [], []>} : vector<32x8xf32>, vector<8x16xf32>, vector<32x16xf32> -> vector<32x16xf32>
    %359 = arith.addf %348, %358 : vector<32x16xf32>
    %c11_316 = arith.constant 11 : index
    %c0_317 = arith.constant 0 : index
    %c0_318 = arith.constant 0 : index
    %360 = vector.load %arg3[%c11_316, %c0_317, %c0_318] : memref<12x64x16xbf16, #tpu.memory_space<vmem>>, vector<1x64x16xbf16>
    %361 = vector.shape_cast %360 : vector<1x64x16xbf16> to vector<64x16xbf16>
    %cst_319 = arith.constant dense<0.000000e+00> : vector<8x16xf32>
    %362 = tpu.matmul %3, %361, %cst_319 {dimension_numbers = #tpu.dot_dimension_numbers<[1], [0], [0], [1], [0, 0, 1, 1], [], []>} : vector<8x64xbf16>, vector<64x16xbf16>, vector<8x16xf32> -> vector<8x16xf32>
    %c11_320 = arith.constant 11 : index
    %c0_321 = arith.constant 0 : index
    %c0_322 = arith.constant 0 : index
    %363 = vector.load %arg4[%c11_320, %c0_321, %c0_322] : memref<12x1x16xf32, #tpu.memory_space<vmem>>, vector<1x1x16xf32>
    %364 = vector.shape_cast %363 : vector<1x1x16xf32> to vector<1x16xf32>
    %365 = vector.broadcast %364 : vector<1x16xf32> to vector<8x16xf32>
    %366 = arith.addf %362, %365 : vector<8x16xf32>
    %c3_323 = arith.constant 3 : index
    %c0_324 = arith.constant 0 : index
    %c0_325 = arith.constant 0 : index
    %367 = vector.load %arg15[%c3_323, %c0_324, %c0_325] : memref<4x32x8xf32, #tpu.memory_space<vmem>>, vector<1x32x8xf32>
    %368 = vector.shape_cast %367 : vector<1x32x8xf32> to vector<32x8xf32>
    %cst_326 = arith.constant dense<0.000000e+00> : vector<32x16xf32>
    %369 = tpu.matmul %368, %366, %cst_326 {dimension_numbers = #tpu.dot_dimension_numbers<[1], [0], [0], [1], [0, 0, 1, 1], [], []>} : vector<32x8xf32>, vector<8x16xf32>, vector<32x16xf32> -> vector<32x16xf32>
    %370 = arith.addf %359, %369 : vector<32x16xf32>
    %371 = arith.truncf %284 : vector<32x16xf32> to vector<32x16xbf16>
    %372 = arith.truncf %327 : vector<32x16xf32> to vector<32x16xbf16>
    "tpu.trace_start"() <{level = 10 : i32, message = "qd,kd->qk"}> : () -> ()
    %cst_327 = arith.constant dense<0.000000e+00> : vector<32x32xf32>
    %373 = tpu.matmul %371, %372, %cst_327 {dimension_numbers = #tpu.dot_dimension_numbers<[1], [1], [0], [0], [0, 0, 1, 0], [], []>} : vector<32x16xbf16>, vector<32x16xbf16>, vector<32x32xf32> -> vector<32x32xf32>
    "tpu.trace_stop"() : () -> ()
    %cst_328 = arith.constant 5.000000e-01 : f32
    %374 = vector.broadcast %cst_328 : f32 to vector<32x32xf32>
    %375 = arith.mulf %373, %374 : vector<32x32xf32>
    %376 = arith.addf %375, %4 : vector<32x32xf32>
    %cst_329 = arith.constant dense<0xFF800000> : vector<32xf32>
    %377 = vector.multi_reduction <maximumf>, %376, %cst_329 [1] : vector<32x32xf32> to vector<32xf32>
    %378 = vector.shape_cast %377 : vector<32xf32> to vector<32x1xf32>
    %379 = vector.broadcast %378 : vector<32x1xf32> to vector<32x32xf32>
    %380 = arith.subf %376, %379 : vector<32x32xf32>
    %381 = math.exp %380 : vector<32x32xf32>
    %cst_330 = arith.constant dense<0.000000e+00> : vector<32xf32>
    %382 = vector.multi_reduction <add>, %381, %cst_330 [1] : vector<32x32xf32> to vector<32xf32>
    %383 = vector.shape_cast %382 : vector<32xf32> to vector<32x1xf32>
    %384 = vector.broadcast %383 : vector<32x1xf32> to vector<32x32xf32>
    %385 = arith.divf %381, %384 : vector<32x32xf32>
    %c0_331 = arith.constant 0 : index
    %c0_332 = arith.constant 0 : index
    %c0_333 = arith.constant 0 : index
    %386 = vector.load %arg17[%c0_331, %c0_332, %c0_333] : memref<4x32x8xf32, #tpu.memory_space<vmem>>, vector<1x32x8xf32>
    %387 = vector.shape_cast %386 : vector<1x32x8xf32> to vector<32x8xf32>
    %cst_334 = arith.constant dense<0.000000e+00> : vector<32xf32>
    %388 = vector.multi_reduction <add>, %387, %cst_334 [1] : vector<32x8xf32> to vector<32xf32>
    %389 = vector.shape_cast %388 : vector<32xf32> to vector<32x1xf32>
    %cst_335 = arith.constant dense<0.000000e+00> : vector<32x8xf32>
    %390 = tpu.matmul %385, %387, %cst_335 {dimension_numbers = #tpu.dot_dimension_numbers<[1], [0], [0], [1], [0, 0, 1, 1], [], []>} : vector<32x32xf32>, vector<32x8xf32>, vector<32x8xf32> -> vector<32x8xf32>
    %391 = vector.broadcast %389 : vector<32x1xf32> to vector<32x8xf32>
    %392 = arith.mulf %391, %390 : vector<32x8xf32>
    %c1_336 = arith.constant 1 : index
    %c0_337 = arith.constant 0 : index
    %c0_338 = arith.constant 0 : index
    %393 = vector.load %arg17[%c1_336, %c0_337, %c0_338] : memref<4x32x8xf32, #tpu.memory_space<vmem>>, vector<1x32x8xf32>
    %394 = vector.shape_cast %393 : vector<1x32x8xf32> to vector<32x8xf32>
    %cst_339 = arith.constant dense<0.000000e+00> : vector<32xf32>
    %395 = vector.multi_reduction <add>, %394, %cst_339 [1] : vector<32x8xf32> to vector<32xf32>
    %396 = vector.shape_cast %395 : vector<32xf32> to vector<32x1xf32>
    %cst_340 = arith.constant dense<0.000000e+00> : vector<32x8xf32>
    %397 = tpu.matmul %385, %394, %cst_340 {dimension_numbers = #tpu.dot_dimension_numbers<[1], [0], [0], [1], [0, 0, 1, 1], [], []>} : vector<32x32xf32>, vector<32x8xf32>, vector<32x8xf32> -> vector<32x8xf32>
    %398 = vector.broadcast %396 : vector<32x1xf32> to vector<32x8xf32>
    %399 = arith.mulf %398, %397 : vector<32x8xf32>
    %400 = arith.addf %392, %399 : vector<32x8xf32>
    %c2_341 = arith.constant 2 : index
    %c0_342 = arith.constant 0 : index
    %c0_343 = arith.constant 0 : index
    %401 = vector.load %arg17[%c2_341, %c0_342, %c0_343] : memref<4x32x8xf32, #tpu.memory_space<vmem>>, vector<1x32x8xf32>
    %402 = vector.shape_cast %401 : vector<1x32x8xf32> to vector<32x8xf32>
    %cst_344 = arith.constant dense<0.000000e+00> : vector<32xf32>
    %403 = vector.multi_reduction <add>, %402, %cst_344 [1] : vector<32x8xf32> to vector<32xf32>
    %404 = vector.shape_cast %403 : vector<32xf32> to vector<32x1xf32>
    %cst_345 = arith.constant dense<0.000000e+00> : vector<32x8xf32>
    %405 = tpu.matmul %385, %402, %cst_345 {dimension_numbers = #tpu.dot_dimension_numbers<[1], [0], [0], [1], [0, 0, 1, 1], [], []>} : vector<32x32xf32>, vector<32x8xf32>, vector<32x8xf32> -> vector<32x8xf32>
    %406 = vector.broadcast %404 : vector<32x1xf32> to vector<32x8xf32>
    %407 = arith.mulf %406, %405 : vector<32x8xf32>
    %408 = arith.addf %400, %407 : vector<32x8xf32>
    %c3_346 = arith.constant 3 : index
    %c0_347 = arith.constant 0 : index
    %c0_348 = arith.constant 0 : index
    %409 = vector.load %arg17[%c3_346, %c0_347, %c0_348] : memref<4x32x8xf32, #tpu.memory_space<vmem>>, vector<1x32x8xf32>
    %410 = vector.shape_cast %409 : vector<1x32x8xf32> to vector<32x8xf32>
    %cst_349 = arith.constant dense<0.000000e+00> : vector<32xf32>
    %411 = vector.multi_reduction <add>, %410, %cst_349 [1] : vector<32x8xf32> to vector<32xf32>
    %412 = vector.shape_cast %411 : vector<32xf32> to vector<32x1xf32>
    %cst_350 = arith.constant dense<0.000000e+00> : vector<32x8xf32>
    %413 = tpu.matmul %385, %410, %cst_350 {dimension_numbers = #tpu.dot_dimension_numbers<[1], [0], [0], [1], [0, 0, 1, 1], [], []>} : vector<32x32xf32>, vector<32x8xf32>, vector<32x8xf32> -> vector<32x8xf32>
    %414 = vector.broadcast %412 : vector<32x1xf32> to vector<32x8xf32>
    %415 = arith.mulf %414, %413 : vector<32x8xf32>
    %416 = arith.addf %408, %415 : vector<32x8xf32>
    %c0_351 = arith.constant 0 : index
    %c0_352 = arith.constant 0 : index
    %417 = vector.load %arg21[%c0_351, %c0_352] : memref<32x8xf32, #tpu.memory_space<vmem>>, vector<32x8xf32>
    tpu.vector_store %arg21[%c0_351, %c0_352], %416 {strides = array<i32>} : memref<32x8xf32, #tpu.memory_space<vmem>>, vector<32x8xf32>,
    %418 = arith.truncf %385 : vector<32x32xf32> to vector<32x32xbf16>
    %419 = arith.truncf %370 : vector<32x16xf32> to vector<32x16xbf16>
    %cst_353 = arith.constant dense<0.000000e+00> : vector<32x16xf32>
    %420 = tpu.matmul %418, %419, %cst_353 {dimension_numbers = #tpu.dot_dimension_numbers<[1], [0], [0], [1], [0, 0, 1, 1], [], []>} : vector<32x32xbf16>, vector<32x16xbf16>, vector<32x16xf32> -> vector<32x16xf32>
    %c0_354 = arith.constant 0 : index
    %c0_355 = arith.constant 0 : index
    %c0_356 = arith.constant 0 : index
    %421 = vector.load %arg16[%c0_354, %c0_355, %c0_356] : memref<4x8x32xf32, #tpu.memory_space<vmem>>, vector<1x8x32xf32>
    %422 = vector.shape_cast %421 : vector<1x8x32xf32> to vector<8x32xf32>
    %cst_357 = arith.constant dense<0.000000e+00> : vector<8x16xf32>
    %423 = tpu.matmul %422, %420, %cst_357 {dimension_numbers = #tpu.dot_dimension_numbers<[1], [0], [0], [1], [0, 0, 1, 1], [], []>} : vector<8x32xf32>, vector<32x16xf32>, vector<8x16xf32> -> vector<8x16xf32>
    %424 = arith.truncf %423 : vector<8x16xf32> to vector<8x16xbf16>
    %c0_358 = arith.constant 0 : index
    %c0_359 = arith.constant 0 : index
    %c0_360 = arith.constant 0 : index
    %425 = vector.load %arg5[%c0_358, %c0_359, %c0_360] : memref<4x16x64xbf16, #tpu.memory_space<vmem>>, vector<1x16x64xbf16>
    %426 = vector.shape_cast %425 : vector<1x16x64xbf16> to vector<16x64xbf16>
    %cst_361 = arith.constant dense<0.000000e+00> : vector<8x64xf32>
    %427 = tpu.matmul %424, %426, %cst_361 {dimension_numbers = #tpu.dot_dimension_numbers<[1], [0], [0], [1], [0, 0, 1, 1], [], []>} : vector<8x16xbf16>, vector<16x64xbf16>, vector<8x64xf32> -> vector<8x64xf32>
    %c1_362 = arith.constant 1 : index
    %c0_363 = arith.constant 0 : index
    %c0_364 = arith.constant 0 : index
    %428 = vector.load %arg16[%c1_362, %c0_363, %c0_364] : memref<4x8x32xf32, #tpu.memory_space<vmem>>, vector<1x8x32xf32>
    %429 = vector.shape_cast %428 : vector<1x8x32xf32> to vector<8x32xf32>
    %cst_365 = arith.constant dense<0.000000e+00> : vector<8x16xf32>
    %430 = tpu.matmul %429, %420, %cst_365 {dimension_numbers = #tpu.dot_dimension_numbers<[1], [0], [0], [1], [0, 0, 1, 1], [], []>} : vector<8x32xf32>, vector<32x16xf32>, vector<8x16xf32> -> vector<8x16xf32>
    %431 = arith.truncf %430 : vector<8x16xf32> to vector<8x16xbf16>
    %c1_366 = arith.constant 1 : index
    %c0_367 = arith.constant 0 : index
    %c0_368 = arith.constant 0 : index
    %432 = vector.load %arg5[%c1_366, %c0_367, %c0_368] : memref<4x16x64xbf16, #tpu.memory_space<vmem>>, vector<1x16x64xbf16>
    %433 = vector.shape_cast %432 : vector<1x16x64xbf16> to vector<16x64xbf16>
    %cst_369 = arith.constant dense<0.000000e+00> : vector<8x64xf32>
    %434 = tpu.matmul %431, %433, %cst_369 {dimension_numbers = #tpu.dot_dimension_numbers<[1], [0], [0], [1], [0, 0, 1, 1], [], []>} : vector<8x16xbf16>, vector<16x64xbf16>, vector<8x64xf32> -> vector<8x64xf32>
    %435 = arith.addf %427, %434 : vector<8x64xf32>
    %c2_370 = arith.constant 2 : index
    %c0_371 = arith.constant 0 : index
    %c0_372 = arith.constant 0 : index
    %436 = vector.load %arg16[%c2_370, %c0_371, %c0_372] : memref<4x8x32xf32, #tpu.memory_space<vmem>>, vector<1x8x32xf32>
    %437 = vector.shape_cast %436 : vector<1x8x32xf32> to vector<8x32xf32>
    %cst_373 = arith.constant dense<0.000000e+00> : vector<8x16xf32>
    %438 = tpu.matmul %437, %420, %cst_373 {dimension_numbers = #tpu.dot_dimension_numbers<[1], [0], [0], [1], [0, 0, 1, 1], [], []>} : vector<8x32xf32>, vector<32x16xf32>, vector<8x16xf32> -> vector<8x16xf32>
    %439 = arith.truncf %438 : vector<8x16xf32> to vector<8x16xbf16>
    %c2_374 = arith.constant 2 : index
    %c0_375 = arith.constant 0 : index
    %c0_376 = arith.constant 0 : index
    %440 = vector.load %arg5[%c2_374, %c0_375, %c0_376] : memref<4x16x64xbf16, #tpu.memory_space<vmem>>, vector<1x16x64xbf16>
    %441 = vector.shape_cast %440 : vector<1x16x64xbf16> to vector<16x64xbf16>
    %cst_377 = arith.constant dense<0.000000e+00> : vector<8x64xf32>
    %442 = tpu.matmul %439, %441, %cst_377 {dimension_numbers = #tpu.dot_dimension_numbers<[1], [0], [0], [1], [0, 0, 1, 1], [], []>} : vector<8x16xbf16>, vector<16x64xbf16>, vector<8x64xf32> -> vector<8x64xf32>
    %443 = arith.addf %435, %442 : vector<8x64xf32>
    %c3_378 = arith.constant 3 : index
    %c0_379 = arith.constant 0 : index
    %c0_380 = arith.constant 0 : index
    %444 = vector.load %arg16[%c3_378, %c0_379, %c0_380] : memref<4x8x32xf32, #tpu.memory_space<vmem>>, vector<1x8x32xf32>
    %445 = vector.shape_cast %444 : vector<1x8x32xf32> to vector<8x32xf32>
    %cst_381 = arith.constant dense<0.000000e+00> : vector<8x16xf32>
    %446 = tpu.matmul %445, %420, %cst_381 {dimension_numbers = #tpu.dot_dimension_numbers<[1], [0], [0], [1], [0, 0, 1, 1], [], []>} : vector<8x32xf32>, vector<32x16xf32>, vector<8x16xf32> -> vector<8x16xf32>
    %447 = arith.truncf %446 : vector<8x16xf32> to vector<8x16xbf16>
    %c3_382 = arith.constant 3 : index
    %c0_383 = arith.constant 0 : index
    %c0_384 = arith.constant 0 : index
    %448 = vector.load %arg5[%c3_382, %c0_383, %c0_384] : memref<4x16x64xbf16, #tpu.memory_space<vmem>>, vector<1x16x64xbf16>
    %449 = vector.shape_cast %448 : vector<1x16x64xbf16> to vector<16x64xbf16>
    %cst_385 = arith.constant dense<0.000000e+00> : vector<8x64xf32>
    %450 = tpu.matmul %447, %449, %cst_385 {dimension_numbers = #tpu.dot_dimension_numbers<[1], [0], [0], [1], [0, 0, 1, 1], [], []>} : vector<8x16xbf16>, vector<16x64xbf16>, vector<8x64xf32> -> vector<8x64xf32>
    %451 = arith.addf %443, %450 : vector<8x64xf32>
    %452 = vector.broadcast %5 : vector<1x64xf32> to vector<8x64xf32>
    %453 = arith.addf %451, %452 : vector<8x64xf32>
    %454 = arith.addf %240, %453 : vector<8x64xf32>
    %cst_386 = arith.constant dense<0.000000e+00> : vector<8xf32>
    %455 = vector.multi_reduction <add>, %454, %cst_386 [1] : vector<8x64xf32> to vector<8xf32>
    %456 = vector.shape_cast %455 : vector<8xf32> to vector<8x1xf32>
    %cst_387 = arith.constant 6.400000e+01 : f32
    %457 = vector.broadcast %cst_387 : f32 to vector<8x1xf32>
    %458 = arith.divf %456, %457 : vector<8x1xf32>
    %459 = vector.broadcast %458 : vector<8x1xf32> to vector<8x64xf32>
    %460 = arith.subf %454, %459 : vector<8x64xf32>
    %461 = arith.mulf %460, %460 : vector<8x64xf32>
    %cst_388 = arith.constant dense<0.000000e+00> : vector<8xf32>
    %462 = vector.multi_reduction <add>, %461, %cst_388 [1] : vector<8x64xf32> to vector<8xf32>
    %463 = vector.shape_cast %462 : vector<8xf32> to vector<8x1xf32>
    %cst_389 = arith.constant 6.400000e+01 : f32
    %464 = vector.broadcast %cst_389 : f32 to vector<8x1xf32>
    %465 = arith.divf %463, %464 : vector<8x1xf32>
    %cst_390 = arith.constant 9.99999974E-6 : f32
    %466 = vector.broadcast %cst_390 : f32 to vector<8x1xf32>
    %467 = arith.addf %465, %466 : vector<8x1xf32>
    %468 = math.rsqrt %467 : vector<8x1xf32>
    %469 = vector.broadcast %468 : vector<8x1xf32> to vector<8x64xf32>
    %470 = arith.mulf %460, %469 : vector<8x64xf32>
    %471 = vector.broadcast %6 : vector<1x64xf32> to vector<8x64xf32>
    %472 = arith.mulf %470, %471 : vector<8x64xf32>
    %473 = vector.broadcast %7 : vector<1x64xf32> to vector<8x64xf32>
    %474 = arith.addf %472, %473 : vector<8x64xf32>
    %475 = arith.truncf %474 : vector<8x64xf32> to vector<8x64xbf16>
    %c0_391 = arith.constant 0 : index
    %c0_392 = arith.constant 0 : index
    %476 = vector.load %arg9[%c0_391, %c0_392] : memref<64x128xbf16, #tpu.memory_space<vmem>>, vector<64x128xbf16>
    %cst_393 = arith.constant dense<0.000000e+00> : vector<8x128xf32>
    %477 = tpu.matmul %475, %476, %cst_393 {dimension_numbers = #tpu.dot_dimension_numbers<[1], [0], [0], [1], [0, 0, 1, 1], [], []>} : vector<8x64xbf16>, vector<64x128xbf16>, vector<8x128xf32> -> vector<8x128xf32>
    %c0_394 = arith.constant 0 : index
    %c0_395 = arith.constant 0 : index
    %478 = vector.load %arg10[%c0_394, %c0_395] : memref<1x128xf32, #tpu.memory_space<vmem>>, vector<1x128xf32>
    %479 = vector.broadcast %478 : vector<1x128xf32> to vector<8x128xf32>
    %480 = arith.addf %477, %479 : vector<8x128xf32>
    %cst_396 = arith.constant 0.000000e+00 : f32
    %481 = vector.broadcast %cst_396 : f32 to vector<8x128xf32>
    %482 = arith.maximumf %480, %481 : vector<8x128xf32>
    %483 = arith.truncf %482 : vector<8x128xf32> to vector<8x128xbf16>
    %c0_397 = arith.constant 0 : index
    %c0_398 = arith.constant 0 : index
    %484 = vector.load %arg11[%c0_397, %c0_398] : memref<128x64xbf16, #tpu.memory_space<vmem>>, vector<128x64xbf16>
    %cst_399 = arith.constant dense<0.000000e+00> : vector<8x64xf32>
    %485 = tpu.matmul %483, %484, %cst_399 {dimension_numbers = #tpu.dot_dimension_numbers<[1], [0], [0], [1], [0, 0, 1, 1], [], []>} : vector<8x128xbf16>, vector<128x64xbf16>, vector<8x64xf32> -> vector<8x64xf32>
    %c0_400 = arith.constant 0 : index
    %c0_401 = arith.constant 0 : index
    %486 = vector.load %arg12[%c0_400, %c0_401] : memref<1x64xf32, #tpu.memory_space<vmem>>, vector<1x64xf32>
    %487 = vector.broadcast %486 : vector<1x64xf32> to vector<8x64xf32>
    %488 = arith.addf %485, %487 : vector<8x64xf32>
    %489 = arith.addf %474, %488 : vector<8x64xf32>
    %c0_402 = arith.constant 0 : index
    %c0_403 = arith.constant 0 : index
    %490 = vector.load %arg13[%c0_402, %c0_403] : memref<1x64xf32, #tpu.memory_space<vmem>>, vector<1x64xf32>
    %c0_404 = arith.constant 0 : index
    %c0_405 = arith.constant 0 : index
    %491 = vector.load %arg14[%c0_404, %c0_405] : memref<1x64xf32, #tpu.memory_space<vmem>>, vector<1x64xf32>
    %cst_406 = arith.constant dense<0.000000e+00> : vector<8xf32>
    %492 = vector.multi_reduction <add>, %489, %cst_406 [1] : vector<8x64xf32> to vector<8xf32>
    %493 = vector.shape_cast %492 : vector<8xf32> to vector<8x1xf32>
    %cst_407 = arith.constant 6.400000e+01 : f32
    %494 = vector.broadcast %cst_407 : f32 to vector<8x1xf32>
    %495 = arith.divf %493, %494 : vector<8x1xf32>
    %496 = vector.broadcast %495 : vector<8x1xf32> to vector<8x64xf32>
    %497 = arith.subf %489, %496 : vector<8x64xf32>
    %498 = arith.mulf %497, %497 : vector<8x64xf32>
    %cst_408 = arith.constant dense<0.000000e+00> : vector<8xf32>
    %499 = vector.multi_reduction <add>, %498, %cst_408 [1] : vector<8x64xf32> to vector<8xf32>
    %500 = vector.shape_cast %499 : vector<8xf32> to vector<8x1xf32>
    %cst_409 = arith.constant 6.400000e+01 : f32
    %501 = vector.broadcast %cst_409 : f32 to vector<8x1xf32>
    %502 = arith.divf %500, %501 : vector<8x1xf32>
    %cst_410 = arith.constant 9.99999974E-6 : f32
    %503 = vector.broadcast %cst_410 : f32 to vector<8x1xf32>
    %504 = arith.addf %502, %503 : vector<8x1xf32>
    %505 = math.rsqrt %504 : vector<8x1xf32>
    %506 = vector.broadcast %505 : vector<8x1xf32> to vector<8x64xf32>
    %507 = arith.mulf %497, %506 : vector<8x64xf32>
    %508 = vector.broadcast %490 : vector<1x64xf32> to vector<8x64xf32>
    %509 = arith.mulf %507, %508 : vector<8x64xf32>
    %510 = vector.broadcast %491 : vector<1x64xf32> to vector<8x64xf32>
    %511 = arith.addf %509, %510 : vector<8x64xf32>
    %c0_411 = arith.constant 0 : index
    %c0_412 = arith.constant 0 : index
    %512 = vector.load %arg19[%c0_411, %c0_412] : memref<8x64xf32, #tpu.memory_space<vmem>>, vector<8x64xf32>
    tpu.vector_store %arg19[%c0_411, %c0_412], %511 {strides = array<i32>} : memref<8x64xf32, #tpu.memory_space<vmem>>, vector<8x64xf32>,
    return
  }
  func.func @transform_0(%arg0: i32) -> (i32, i32) {
    %c0_i32 = arith.constant 0 : i32
    %c0_i32_0 = arith.constant 0 : i32
    return %arg0, %c0_i32 : i32, i32
  }
  func.func @transform_1(%arg0: i32) -> (i32, i32) {
    %c0_i32 = arith.constant 0 : i32
    %c0_i32_0 = arith.constant 0 : i32
    return %arg0, %c0_i32 : i32, i32
  }
  func.func @transform_2(%arg0: i32) -> (i32, i32, i32) {
    %c0_i32 = arith.constant 0 : i32
    %c0_i32_0 = arith.constant 0 : i32
    %c0_i32_1 = arith.constant 0 : i32
    %c0_i32_2 = arith.constant 0 : i32
    return %c0_i32, %c0_i32_0, %c0_i32_1 : i32, i32, i32
  }
  func.func @transform_3(%arg0: i32) -> (i32, i32, i32) {
    %c0_i32 = arith.constant 0 : i32
    %c0_i32_0 = arith.constant 0 : i32
    %c0_i32_1 = arith.constant 0 : i32
    %c0_i32_2 = arith.constant 0 : i32
    return %c0_i32, %c0_i32_0, %c0_i32_1 : i32, i32, i32
  }
  func.func @transform_4(%arg0: i32) -> (i32, i32, i32) {
    %c0_i32 = arith.constant 0 : i32
    %c0_i32_0 = arith.constant 0 : i32
    %c0_i32_1 = arith.constant 0 : i32
    %c0_i32_2 = arith.constant 0 : i32
    return %c0_i32, %c0_i32_0, %c0_i32_1 : i32, i32, i32
  }
  func.func @transform_5(%arg0: i32) -> (i32, i32) {
    %c0_i32 = arith.constant 0 : i32
    %c0_i32_0 = arith.constant 0 : i32
    %c0_i32_1 = arith.constant 0 : i32
    return %c0_i32, %c0_i32_0 : i32, i32
  }
  func.func @transform_6(%arg0: i32) -> (i32, i32) {
    %c0_i32 = arith.constant 0 : i32
    %c0_i32_0 = arith.constant 0 : i32
    %c0_i32_1 = arith.constant 0 : i32
    return %c0_i32, %c0_i32_0 : i32, i32
  }
  func.func @transform_7(%arg0: i32) -> (i32, i32) {
    %c0_i32 = arith.constant 0 : i32
    %c0_i32_0 = arith.constant 0 : i32
    %c0_i32_1 = arith.constant 0 : i32
    return %c0_i32, %c0_i32_0 : i32, i32
  }
  func.func @transform_8(%arg0: i32) -> (i32, i32) {
    %c0_i32 = arith.constant 0 : i32
    %c0_i32_0 = arith.constant 0 : i32
    %c0_i32_1 = arith.constant 0 : i32
    return %c0_i32, %c0_i32_0 : i32, i32
  }
  func.func @transform_9(%arg0: i32) -> (i32, i32) {
    %c0_i32 = arith.constant 0 : i32
    %c0_i32_0 = arith.constant 0 : i32
    %c0_i32_1 = arith.constant 0 : i32
    return %c0_i32, %c0_i32_0 : i32, i32
  }
  func.func @transform_10(%arg0: i32) -> (i32, i32) {
    %c0_i32 = arith.constant 0 : i32
    %c0_i32_0 = arith.constant 0 : i32
    %c0_i32_1 = arith.constant 0 : i32
    return %c0_i32, %c0_i32_0 : i32, i32
  }
  func.func @transform_11(%arg0: i32) -> (i32, i32) {
    %c0_i32 = arith.constant 0 : i32
    %c0_i32_0 = arith.constant 0 : i32
    %c0_i32_1 = arith.constant 0 : i32
    return %c0_i32, %c0_i32_0 : i32, i32
  }
  func.func @transform_12(%arg0: i32) -> (i32, i32) {
    %c0_i32 = arith.constant 0 : i32
    %c0_i32_0 = arith.constant 0 : i32
    %c0_i32_1 = arith.constant 0 : i32
    return %c0_i32, %c0_i32_0 : i32, i32
  }
  func.func @transform_13(%arg0: i32) -> (i32, i32) {
    %c0_i32 = arith.constant 0 : i32
    %c0_i32_0 = arith.constant 0 : i32
    %c0_i32_1 = arith.constant 0 : i32
    return %c0_i32, %c0_i32_0 : i32, i32
  }
  func.func @transform_14(%arg0: i32) -> (i32, i32, i32) {
    %c0_i32 = arith.constant 0 : i32
    %c0_i32_0 = arith.constant 0 : i32
    %c0_i32_1 = arith.constant 0 : i32
    %c0_i32_2 = arith.constant 0 : i32
    return %c0_i32, %c0_i32_0, %c0_i32_1 : i32, i32, i32
  }
  func.func @transform_15(%arg0: i32) -> (i32, i32, i32) {
    %c0_i32 = arith.constant 0 : i32
    %c0_i32_0 = arith.constant 0 : i32
    %c0_i32_1 = arith.constant 0 : i32
    %c0_i32_2 = arith.constant 0 : i32
    return %c0_i32, %c0_i32_0, %c0_i32_1 : i32, i32, i32
  }
  func.func @transform_16(%arg0: i32) -> (i32, i32, i32) {
    %c0_i32 = arith.constant 0 : i32
    %c0_i32_0 = arith.constant 0 : i32
    %c0_i32_1 = arith.constant 0 : i32
    %c0_i32_2 = arith.constant 0 : i32
    return %c0_i32, %c0_i32_0, %c0_i32_1 : i32, i32, i32
  }
  func.func @transform_17(%arg0: i32) -> (i32, i32) {
    %c0_i32 = arith.constant 0 : i32
    %c0_i32_0 = arith.constant 0 : i32
    %c0_i32_1 = arith.constant 0 : i32
    return %c0_i32, %c0_i32_0 : i32, i32
  }
  func.func @transform_18(%arg0: i32) -> (i32, i32) {
    %c0_i32 = arith.constant 0 : i32
    %c0_i32_0 = arith.constant 0 : i32
    return %arg0, %c0_i32 : i32, i32
  }
  func.func @transform_19(%arg0: i32) -> (i32, i32) {
    %c0_i32 = arith.constant 0 : i32
    %c0_i32_0 = arith.constant 0 : i32
    return %arg0, %c0_i32 : i32, i32
  }
  func.func @transform_20(%arg0: i32) -> (i32, i32) {
    %c0_i32 = arith.constant 0 : i32
    %c0_i32_0 = arith.constant 0 : i32
    return %arg0, %c0_i32 : i32, i32
  }
}

</mosaic_0001>

<bundles_post_ra>
// kernel: decoder_layer.1
= control target key start
LH: loop header
LB: loop body
LE: loop exit
PB: predicated region body
PF: predicated region fallthrough
CT: control target
= control target key end

     0   :  { %s11855_s0 = inlined_call_operand.vmem [shape: f32[16,64], index: 0, kind: input, shape index: {}]   ;;  %s11856_s1 = inlined_call_operand.vmem [shape: f32[16,64], index: 1, kind: input, shape index: {}]   ;;  %s11857_s2 = inlined_call_operand.vmem [shape: bf16[12,64,16], index: 2, kind: input, shape index: {}]   ;;  %s11858_s3 = inlined_call_operand.vmem [shape: f32[12,1,16], index: 3, kind: input, shape index: {}]   ;;  %s11859_s4 = inlined_call_operand.vmem [shape: bf16[4,16,64], index: 4, kind: input, shape index: {}]   ;;  %s11860_s5 = inlined_call_operand.vmem [shape: f32[1,64], index: 5, kind: input, shape index: {}]   ;;  %s11861_s6 = inlined_call_operand.vmem [shape: f32[1,64], index: 6, kind: input, shape index: {}]   ;;  %s11862_s7 = inlined_call_operand.vmem [shape: f32[1,64], index: 7, kind: input, shape index: {}]   ;;  %s11863_s8 = inlined_call_operand.vmem [shape: bf16[64,128], index: 8, kind: input, shape index: {}]   ;;  %s11864_s9 = inlined_call_operand.vmem [shape: f32[1,128], index: 9, kind: input, shape index: {}]   ;;  %s11865_s10 = inlined_call_operand.vmem [shape: bf16[128,64], index: 10, kind: input, shape index: {}]   ;;  %s11866_s11 = inlined_call_operand.vmem [shape: f32[1,64], index: 11, kind: input, shape index: {}]   ;;  %s11867_s12 = inlined_call_operand.vmem [shape: f32[1,64], index: 12, kind: input, shape index: {}]   ;;  %s11868_s13 = inlined_call_operand.vmem [shape: f32[1,64], index: 13, kind: input, shape index: {}]   ;;  %s11869_s14 = inlined_call_operand.vmem [shape: f32[4,32,8], index: 14, kind: input, shape index: {}]   ;;  %s11870_s15 = inlined_call_operand.vmem [shape: f32[4,8,32], index: 15, kind: input, shape index: {}]   ;;  %s11871_s16 = inlined_call_operand.vmem [shape: f32[4,32,8], index: 16, kind: input, shape index: {}]   ;;  %s11872_s17 = inlined_call_operand.vmem [shape: f32[32,32], index: 17, kind: input, shape index: {}]   ;;  %s11873_s18 = inlined_call_operand.hbm [shape: f32[16,64], index: 18, kind: output, shape index: {0}]   ;;  %s11874_s19 = inlined_call_operand.hbm [shape: f32[64,8], index: 19, kind: output, shape index: {1}]   ;;  %s11875_s20 = inlined_call_operand.hbm [shape: f32[64,8], index: 20, kind: output, shape index: {2}]  }
   0x1   :  { %11894 = sst [smem:[#allocation16_spill]] %s11855_s0 }
   0x2   :  { %11895 = sst [smem:[#allocation17_spill]] %s11856_s1 }
   0x3   :  { %11896 = sst [smem:[#allocation18_spill]] %s11857_s2 }
   0x4   :  { %11897 = sst [smem:[#allocation19_spill]] %s11858_s3 }
   0x5   :  { %11898 = sst [smem:[#allocation20_spill]] %s11859_s4 }
   0x6   :  { %11899 = sst [smem:[#allocation21_spill]] %s11860_s5 }
   0x7   :  { %11900 = sst [smem:[#allocation22_spill]] %s11861_s6 }
   0x8   :  { %11901 = sst [smem:[#allocation23_spill]] %s11862_s7 }
   0x9   :  { %11902 = sst [smem:[#allocation24_spill]] %s11863_s8 }
   0xa   :  { %11903 = sst [smem:[#allocation25_spill]] %s11864_s9 }
   0xb   :  { %11904 = sst [smem:[#allocation26_spill]] %s11865_s10 }
   0xc   :  { %11905 = sst [smem:[#allocation27_spill]] %s11866_s11 }
   0xd   :  { %11906 = sst [smem:[#allocation28_spill]] %s11875_s20 }
   0xe   :  { %26 = vsyncpa [#allocation3], 0 }
   0xf   :  { %28 = vsyncpa [#allocation3 + $0x1], 0 }
  0x10   :  { %29 = vsyncpa [#allocation5], 0 }
  0x11   :  { %31 = vsyncpa [#allocation5 + $0x1], 0  ;;  %s10010_s1 = smov 0   ;;  %s10012_s22 = smov 0  }
  0x12   :  { %s10014_s23 = smov 0   ;;  %s10016_s24 = smov 0  }
  0x13 LB: > { %11907 = sst [smem:[#allocation9_spill]] %s9883_s1  ;;  %s10031_s2 = sadd.s32 4294967295, %s9895_s24   ;;  %s9895_s24 = sphi %s10016_s24, %s11939_s24   ;;  %s9891_s23 = sphi %s10014_s23, %s11941_s23   ;;  %s9887_s22 = sphi %s10012_s22, %s11943_s22   ;;  %s9883_s1 = sphi %s10010_s1, %s11942_s1  }
  0x14   : > { %11908 = sst [smem:[#allocation10_spill]] %s9891_s23  ;;  %s11879_s25 = sadd.s32 4294967294, %s9895_s24  }
  0x15   : > { %11909 = sst [smem:[#allocation11_spill]] %s9895_s24  ;;  %s10035_s3 = sadd.s32 1, %s9895_s24  }
  0x16   : > { %11910 = sst [smem:[#allocation12_spill]] %s10035_s3  ;;  %s432_s26 = sadd.s32 1, %s9891_s23 }
  0x17   : > { %s429_s27 = ssub.s32 %s9895_s24, %s10035_s3  ;;  %p442_p0 = scmp.ne.s32.totalorder %s9891_s23, %s9887_s22 }
  0x18   : > { %p430_p1 = scmp.eq.s32.totalorder %s429_s27, 0  ;;  %p443_p2 = scmp.eq.s32.totalorder %s10031_s2, 1 }
  0x19   : > { %p448_p3 = scmp.ne.s32.totalorder %s9887_s22, %s9883_s1  ;;  %p449_p4 = scmp.eq.s32.totalorder %s11879_s25, 1 }
  0x1a   : > { %s10048_s28 = scalar_select %p430_p1, %s9891_s23, %s432_s26  }
  0x1b   : > { %p10050_p5 = por %p443_p2, %p442_p0  ;;  %p10054_p6 = por %p449_p4, %p448_p3 }
  0x1c   : > { %11911 = sst [smem:[#allocation13_spill]] %s10048_s28  ;;  %p7565_p7 = scmp.ge.s32.totalorder %s9895_s24, 1 }
  0x1d   : > { %s11913_s29 = scalar_select %p10054_p6, 1, 0 }
  0x1e   : > { %p581_p8 = scmp.lt.s32.totalorder %s9895_s24, 3 }
  0x1f   : > { %11914 = sst [smem:[#allocation14_spill]] %s11913_s29 }
  0x20   : > { %p582_p9 = pnand %p7565_p7, %p581_p8 }
  0x22   : > { %585 = sbr.rel (%p582_p9) target bundleno = 5883 (0x16fb), region = 92 }
  0x29   : > { %s11915_s21 = sld [smem:[#allocation18_spill]]  ;;  %v11889_v1 = vmov 0.0   ;;  %vm9898_vm0 = vmmov 0   ;;  %p652_p10 = scmp.lt.s32.totalorder %s10031_s2, 1  ;;  %vm713_vm1 = vcmask 523264   ;;  %v10161_v19 = vld [vmem:[%s11869_s14 + $0x20] sm:$0xff] }
  0x2a   : > { %8573 = vmatprep.subr.bf16.mxu1 %v11889_v1  ;;  %8561 = vmatprep.subr.bf16.mxu0 %v11889_v1  ;;  %s11916_s29 = sld [smem:[#allocation16_spill]]  ;;  %vm847_vm2 = vcmask 64512   ;;  %v10231_v37 = vld [vmem:[%s11869_s14 + $0x28] sm:$0xff]  ;;  %v10239_v40 = vld [vmem:[%s11869_s14 + $0x30] sm:$0xff]  ;;  %v10248_v45 = vld [vmem:[%s11869_s14 + $0x38] sm:$0xff]  ;;  %vm2764_vm3 = vcmask 130048  }
  0x2b   : > { %8581 = vmatprep.mubr.msk.bf16.mxu1 %vm9898_vm0, %v11889_v1  ;;  %8569 = vmatprep.mubr.msk.bf16.mxu0 %vm9898_vm0, %v11889_v1  ;;  %s10078_s25 = scalar_select %p652_p10, %s10031_s2, 1  ;;  %v10253_v47 = vld [vmem:[%s11869_s14] sm:$0xff]  ;;  %v10262_v48 = vld [vmem:[%s11869_s14 + $0x8] sm:$0xff]  ;;  %v10267_v49 = vld [vmem:[%s11869_s14 + $0x10] sm:$0xff]  ;;  %vm2834_vm4 = vcmask 261120  }
  0x2c   : > { %v10279_v51 = vld [vmem:[%s11869_s14 + $0x18] sm:$0xff]  ;;  %v10284_v52 = vld [vmem:[%s11869_s14 + $0x40] sm:$0xff]  ;;  %v10293_v57 = vld [vmem:[%s11869_s14 + $0x48] sm:$0xff]  ;;  %s11918_s27 = sld [smem:[#allocation20_spill]]  ;;  %s11919_s5 = sld [smem:[#allocation21_spill]] }
  0x2d   : > { %s11885_s26 = sshll.u32 %s10078_s25, 3  ;;  %v10298_v59 = vld [vmem:[%s11869_s14 + $0x50] sm:$0xff]  ;;  %v10307_v60 = vld [vmem:[%s11869_s14 + $0x58] sm:$0xff]  ;;  %v10312_v61 = vld [vmem:[%s11869_s14 + $0x60] sm:$0xff]  ;;  %s11920_s6 = sld [smem:[#allocation22_spill]] }
  0x2e   : > { %s11921_s7 = sld [smem:[#allocation23_spill]]  ;;  %s11922_s23 = sshll.u32 %s10078_s25, 3 }
  0x2f   : > { %v9595_v0 = vld [vmem:[%s11915_s21 + $0x20] sm:$0xff]   ;;  %v9596_v2 = vld [vmem:[%s11915_s21 + $0x28] sm:$0xff]   ;;  %v9597_v4 = vld [vmem:[%s11915_s21 + $0x30] sm:$0xff]   ;;  %s11925_s8 = sld [smem:[#allocation24_spill]]  ;;  %s11927_s10 = sld [smem:[#allocation26_spill]] }
  0x30   : > { %8574 = vmatpush3.bf16.msra.mxu1 %v9595_v0  ;;  %v9599_v3 = vld [vmem:[%s11915_s21] sm:$0xff]   ;;  %v9601_v5 = vld [vmem:[%s11915_s21 + $0x8] sm:$0xff]   ;;  %s10093_s1 = scalar_lea.vmem %s11916_s29, %s11885_s26  ;;  %v9598_v6 = vld [vmem:[%s11915_s21 + $0x38] sm:$0xff]   ;;  %s11917_s26 = sld [smem:[#allocation19_spill]] }
  0x31   : > { %8575 = vmatprep.subr.bf16.mxu1 %v11889_v1  ;;  %8562 = vmatpush3.bf16.msra.mxu0 %v9599_v3  ;;  %v663_v7 = vld [vmem:[%s10093_s1] sm:$0xff]  ;;  %v9603_v8 = vld [vmem:[%s11915_s21 + $0x10] sm:$0xff]   ;;  %v9605_v11 = vld [vmem:[%s11915_s21 + $0x18] sm:$0xff]   ;;  %s11928_s9 = sld [smem:[#allocation25_spill]]  ;;  %s11929_s11 = sld [smem:[#allocation27_spill]] }
  0x32   : > { %8563 = vmatprep.subr.bf16.mxu0 %v11889_v1  ;;  %v10105_v9 = vpack.c.bf16 %v663_v7, %v663_v7  ;;  %v9600_v10 = vld [vmem:[%s11915_s21 + $0x40] sm:$0xff]   ;;  %v9602_v12 = vld [vmem:[%s11915_s21 + $0x48] sm:$0xff]   ;;  %v9604_v13 = vld [vmem:[%s11915_s21 + $0x50] sm:$0xff]   ;;  %s11675_s25 = sand.u32 1, %s9887_s22   ;;  %s7379_s28 = sand.u32 1, %s10031_s2  }
  0x33   : > { %v9606_v14 = vld [vmem:[%s11915_s21 + $0x58] sm:$0xff]   ;;  %v9607_v15 = vld [vmem:[%s11915_s21 + $0x60] sm:$0xff]   ;;  %v9608_v16 = vld [vmem:[%s11915_s21 + $0x68] sm:$0xff]   ;;  %s7567_s0 = sshll.u32 %s11675_s25, 5 }
  0x34   : > { %8576 = vmatpush3.bf16.msra.mxu1 %v9596_v2  ;;  %v9609_v17 = vld [vmem:[%s11915_s21 + $0x70] sm:$0xff]   ;;  %v9610_v18 = vld [vmem:[%s11915_s21 + $0x78] sm:$0xff]   ;;  %v9611_v20 = vld [vmem:[%s11915_s21 + $0xa0] sm:$0xff]   ;;  %s11680_s20 = scalar_lea.vmem [#allocation4], %s7567_s0 }
  0x35   : > { %8577 = vmatprep.subr.bf16.mxu1 %v11889_v1  ;;  %8564 = vmatpush3.bf16.msra.mxu0 %v9601_v5  ;;  %v9612_v21 = vld [vmem:[%s11915_s21 + $0xa8] sm:$0xff]   ;;  %v9613_v22 = vld [vmem:[%s11915_s21 + $0xb0] sm:$0xff]   ;;  %v9614_v23 = vld [vmem:[%s11915_s21 + $0xb8] sm:$0xff]   ;;  %s7411_s3 = sshll.u32 %s11680_s20, 4  ;;  %s11715_s3 = int_to_ptr.vmem [resolvable:$true] %s7411_s3 }
  0x36   : > { %8565 = vmatprep.subr.bf16.mxu0 %v11889_v1  ;;  %v9615_v24 = vld [vmem:[%s11915_s21 + $0xc0] sm:$0xff]   ;;  %v9617_v25 = vld [vmem:[%s11915_s21 + $0xc8] sm:$0xff]   ;;  %v9619_v26 = vld [vmem:[%s11915_s21 + $0xd0] sm:$0xff]  }
  0x37   : > { %v9621_v27 = vld [vmem:[%s11915_s21 + $0xd8] sm:$0xff]   ;;  %v9623_v28 = vld [vmem:[%s11915_s21 + $0xe0] sm:$0xff]   ;;  %v9624_v29 = vld [vmem:[%s11915_s21 + $0xe8] sm:$0xff]  }
  0x38   : > { %8578 = vmatpush3.bf16.msra.mxu1 %v9597_v4  ;;  %v9625_v30 = vld [vmem:[%s11915_s21 + $0xf0] sm:$0xff]   ;;  %v9626_v31 = vld [vmem:[%s11915_s21 + $0xf8] sm:$0xff]   ;;  %v7586_v32 = vld [vmem:[%s11917_s26 + $0x1] ss:$0 sm:$0xff] }
  0x39   : > { %8579 = vmatprep.subr.bf16.mxu1 %v11889_v1  ;;  %8566 = vmatpush3.bf16.msra.mxu0 %v9603_v8  ;;  %v7571_v38 = vld [vmem:[%s11917_s26] ss:$0 sm:$0xff]  ;;  %v7613_v50 = vld [vmem:[%s11917_s26 + $0x2] ss:$0 sm:$0xff]  ;;  %v7636_v62 = vld [vmem:[%s11917_s26 + $0x3] ss:$0 sm:$0xff] }
  0x3a   : > { %8567 = vmatprep.subr.bf16.mxu0 %v11889_v1  ;;  %v10324_v4 = vld [vmem:[%s11869_s14 + $0x68] sm:$0xff]  ;;  %v9616_v5 = vld [vmem:[%s11915_s21 + $0x80] sm:$0xff]   ;;  %v10332_v7 = vld [vmem:[%s11869_s14 + $0x70] sm:$0xff] }
  0x3b   : > { %v10342_v8 = vld [vmem:[%s11869_s14 + $0x78] sm:$0xff] }
  0x3c   : > { %8580 = vmatpush3.bf16.msra.mxu1 %v9598_v6 }
  0x3d   : > { %8601 = vmatprep.subr.bf16.mxu1 %v11889_v1  ;;  %8568 = vmatpush3.bf16.msra.mxu0 %v9605_v11  ;;  %v9620_v11 = vld [vmem:[%s11915_s21 + $0x90] sm:$0xff]  }
  0x3f   : > { %8582 = vmatmul.mubr.msk.bf16.vlgmr.msra.gmra.mrb[0].mxu1 %vm713_vm1, %v10105_v9 }
  0x40   : > { %8602 = vmatpush3.bf16.msra.mxu1 %v9600_v10  ;;  %8609 = vmatprep.mubr.msk.bf16.mxu1 %vm9898_vm0, %v11889_v1  ;;  %v9618_v10 = vld [vmem:[%s11915_s21 + $0x88] sm:$0xff]  }
  0x41   : > { %8603 = vmatprep.subr.bf16.mxu1 %v11889_v1  ;;  %8570 = vmatmul.mubr.msk.bf16.vlgmr.msra.gmra.mrb[0].mxu0 %vm713_vm1, %v10105_v9 }
  0x42   : > { %8587 = vmatprep.mubr.msk.f32.mxu0 %vm847_vm2, %v10161_v19 }
  0x44   : > { %8604 = vmatpush3.bf16.msra.mxu1 %v9602_v12  ;;  %v9622_v12 = vld [vmem:[%s11915_s21 + $0x98] sm:$0xff]  }
  0x45   : > { %8605 = vmatprep.subr.bf16.mxu1 %v11889_v1 }
  0x48   : > { %8606 = vmatpush3.bf16.msra.mxu1 %v9604_v13  ;;  %v7674_v13 = vld [vmem:[%s11917_s26 + $0x5] ss:$0 sm:$0xff] }
  0x49   : > { %8607 = vmatprep.subr.bf16.mxu1 %v11889_v1 }
  0x4c   : > { %8608 = vmatpush3.bf16.msra.mxu1 %v9606_v14 }
  0x4d   : > { %8621 = vmatprep.subr.bf16.mxu1 %v11889_v1 }
  0x4f   : > { %8610 = vmatmul.mubr.msk.bf16.vlgmr.msra.gmra.mrb[4].mxu1 %vm713_vm1, %v10105_v9 }
  0x50   : > { %8622 = vmatpush3.bf16.msra.mxu1 %v9607_v15  ;;  %8629 = vmatprep.mubr.msk.bf16.mxu1 %vm9898_vm0, %v11889_v1 }
  0x51   : > { %8623 = vmatprep.subr.bf16.mxu1 %v11889_v1 }
  0x54   : > { %8624 = vmatpush3.bf16.msra.mxu1 %v9608_v16 }
  0x55   : > { %8625 = vmatprep.subr.bf16.mxu1 %v11889_v1 }
  0x58   : > { %8626 = vmatpush3.bf16.msra.mxu1 %v9609_v17 }
  0x59   : > { %8627 = vmatprep.subr.bf16.mxu1 %v11889_v1 }
  0x5c   : > { %8628 = vmatpush3.bf16.msra.mxu1 %v9610_v18 }
  0x5d   : > { %8653 = vmatprep.subr.bf16.mxu1 %v11889_v1 }
  0x5f   : > { %8630 = vmatmul.mubr.msk.bf16.vlgmr.msra.gmra.mrb[8].mxu1 %vm713_vm1, %v10105_v9 }
  0x60   : > { %8661 = vmatprep.mubr.msk.bf16.mxu1 %vm9898_vm0, %v11889_v1  ;;  %8654 = vmatpush3.bf16.msra.mxu1 %v9611_v20  ;;  %v9627_v20 = vld [vmem:[%s11915_s21 + $0x120] sm:$0xff]  }
  0x61   : > { %8655 = vmatprep.subr.bf16.mxu1 %v11889_v1 }
  0x64   : > { %8656 = vmatpush3.bf16.msra.mxu1 %v9612_v21 }
  0x65   : > { %8657 = vmatprep.subr.bf16.mxu1 %v11889_v1 }
  0x68   : > { %8658 = vmatpush3.bf16.msra.mxu1 %v9613_v22 }
  0x69   : > { %8659 = vmatprep.subr.bf16.mxu1 %v11889_v1 }
  0x6c   : > { %8660 = vmatpush3.bf16.msra.mxu1 %v9614_v23 }
  0x6d   : > { %8681 = vmatprep.subr.bf16.mxu1 %v11889_v1 }
  0x6f   : > { %8662 = vmatmul.mubr.msk.bf16.vlgmr.msra.gmra.mrb[12].mxu1 %vm713_vm1, %v10105_v9 }
  0x70   : > { %8682 = vmatpush3.bf16.msra.mxu1 %v9615_v24  ;;  %8689 = vmatprep.mubr.msk.bf16.mxu1 %vm9898_vm0, %v11889_v1  ;;  %v9628_v24 = vld [vmem:[%s11915_s21 + $0x128] sm:$0xff]  }
  0x71   : > { %8683 = vmatprep.subr.bf16.mxu1 %v11889_v1 }
  0x74   : > { %8684 = vmatpush3.bf16.msra.mxu1 %v9617_v25 }
  0x75   : > { %8685 = vmatprep.subr.bf16.mxu1 %v11889_v1 }
  0x78   : > { %8686 = vmatpush3.bf16.msra.mxu1 %v9619_v26  ;;  %v9629_v26 = vld [vmem:[%s11915_s21 + $0x130] sm:$0xff]  }
  0x79   : > { %8687 = vmatprep.subr.bf16.mxu1 %v11889_v1 }
  0x7c   : > { %8688 = vmatpush3.bf16.msra.mxu1 %v9621_v27  ;;  %v9630_v27 = vld [vmem:[%s11915_s21 + $0x138] sm:$0xff]  }
  0x7d   : > { %8701 = vmatprep.subr.bf16.mxu1 %v11889_v1 }
  0x7f   : > { %8690 = vmatmul.mubr.msk.bf16.vlgmr.msra.gmra.mrb[16].mxu1 %vm713_vm1, %v10105_v9 }
  0x80   : > { %8702 = vmatpush3.bf16.msra.mxu1 %v9623_v28  ;;  %8709 = vmatprep.mubr.msk.bf16.mxu1 %vm9898_vm0, %v11889_v1  ;;  %v9631_v28 = vld [vmem:[%s11915_s21 + $0x140] sm:$0xff]  }
  0x81   : > { %8703 = vmatprep.subr.bf16.mxu1 %v11889_v1 }
  0x84   : > { %8704 = vmatpush3.bf16.msra.mxu1 %v9624_v29 }
  0x85   : > { %8705 = vmatprep.subr.bf16.mxu1 %v11889_v1 }
  0x88   : > { %8706 = vmatpush3.bf16.msra.mxu1 %v9625_v30 }
  0x89   : > { %8707 = vmatprep.subr.bf16.mxu1 %v11889_v1 }
  0x8c   : > { %8708 = vmatpush3.bf16.msra.mxu1 %v9626_v31 }
  0x8d   : > { %8733 = vmatprep.subr.bf16.mxu1 %v11889_v1 }
  0x8f   : > { %8710 = vmatmul.mubr.msk.bf16.vlgmr.msra.gmra.mrb[20].mxu1 %vm713_vm1, %v10105_v9 }
  0x90   : > { %8741 = vmatprep.mubr.msk.bf16.mxu1 %vm9898_vm0, %v11889_v1  ;;  %8734 = vmatpush3.bf16.msra.mxu1 %v9627_v20 }
  0x91   : > { %8735 = vmatprep.subr.bf16.mxu1 %v11889_v1 }
  0x94   : > { %8736 = vmatpush3.bf16.msra.mxu1 %v9628_v24 }
  0x95   : > { %8737 = vmatprep.subr.bf16.mxu1 %v11889_v1 }
  0x98   : > { %8738 = vmatpush3.bf16.msra.mxu1 %v9629_v26 }
  0x99   : > { %8739 = vmatprep.subr.bf16.mxu1 %v11889_v1 }
  0x9c   : > { %8740 = vmatpush3.bf16.msra.mxu1 %v9630_v27 }
  0x9d   : > { %8761 = vmatprep.subr.bf16.mxu1 %v11889_v1 }
  0x9f   : > { %8742 = vmatmul.mubr.msk.bf16.vlgmr.msra.gmra.mrb[24].mxu1 %vm713_vm1, %v10105_v9 }
  0xa0   : > { %8762 = vmatpush3.bf16.msra.mxu1 %v9631_v28  ;;  %8769 = vmatprep.mubr.msk.bf16.mxu1 %vm9898_vm0, %v11889_v1 }
  0xa1   : > { %8763 = vmatprep.subr.bf16.mxu1 %v11889_v1 }
 0x112   : > { %v836_v33 = vpop.f32.mrb[0].mxu1 }
 0x113   : > { %v837_v34 = vadd.f32 %v7586_v32, %v836_v33  ;;  %v8583_v35 = vpop.f32.mrb[1].mxu1  ;;  %v9632_v32 = vld [vmem:[%s11915_s21 + $0x148] sm:$0xff]  }
 0x114   : > { %v839_v36 = vpop.f32.mrb[2].mxu1  ;;  %v751_v41 = vpop.f32.mrb[0].mxu0  ;;  %8764 = vmatpush3.bf16.msra.mxu1 %v9632_v32  ;;  %v9635_v35 = vld [vmem:[%s11915_s21 + $0x158] sm:$0xff]  }
 0x115   : > { %v8584_v39 = vpop.f32.mrb[3].mxu1  ;;  %8585 = vmatprep.subr.mxu0 %v837_v34  ;;  %v752_v42 = vadd.f32 %v7571_v38, %v751_v41  ;;  %v8571_v43 = vpop.f32.mrb[1].mxu0  ;;  %8765 = vmatprep.subr.bf16.mxu1 %v11889_v1  ;;  %v9637_v36 = vld [vmem:[%s11915_s21 + $0x160] sm:$0xff]   ;;  %v9639_v38 = vld [vmem:[%s11915_s21 + $0x168] sm:$0xff]   ;;  %v9642_v41 = vld [vmem:[%s11915_s21 + $0x178] sm:$0xff]  }
 0x116   : > { %8586 = vmatpush3.msra.mxu0 %v837_v34  ;;  %v754_v44 = vpop.f32.mrb[2].mxu0  ;;  %v9633_v34 = vld [vmem:[%s11915_s21 + $0x150] sm:$0xff]  }
 0x117   : > { %8588 = vmatmul.mubr.msk.f32.vlgmr.msra.gmra.mrb[4].mxu0 %vm847_vm2, %v10231_v37  ;;  %v8572_v46 = vpop.f32.mrb[3].mxu0  ;;  %8593 = vmatprep.subr.mxu0 %v752_v42  ;;  %v9641_v39 = vld [vmem:[%s11915_s21 + $0x170] sm:$0xff]  }
 0x118   : > { %8590 = vmatprep.mubr.msk.f32.mxu0 %vm847_vm2, %v10239_v40  ;;  %8594 = vmatpush3.msra.mxu0 %v752_v42 }
 0x119   : > { %8766 = vmatpush3.bf16.msra.mxu1 %v9633_v34 }
 0x11a   : > { %8767 = vmatprep.subr.bf16.mxu1 %v11889_v1 }
 0x11b   : > { %8591 = vmatmul.mubr.msk.f32.gmra.mrb[6].mxu0 %vm847_vm2, %v10248_v45 }
 0x11c   : > { %8595 = vmatprep.mubr.msk.f32.mxu0 %vm847_vm2, %v10253_v47 }
 0x11d   : > { %8768 = vmatpush3.bf16.msra.mxu1 %v9635_v35 }
 0x11e   : > { %8781 = vmatprep.subr.bf16.mxu1 %v11889_v1 }
 0x11f   : > { %8596 = vmatmul.mubr.msk.f32.vlgmr.msra.gmra.mrb[4].mxu0 %vm847_vm2, %v10262_v48 }
 0x120   : > { %8598 = vmatprep.mubr.msk.f32.mxu0 %vm847_vm2, %v10267_v49  ;;  %8770 = vmatmul.mubr.msk.bf16.vlgmr.msra.gmra.mrb[28].mxu1 %vm713_vm1, %v10105_v9 }
 0x121   : > { %8782 = vmatpush3.bf16.msra.mxu1 %v9637_v36  ;;  %8789 = vmatprep.mubr.msk.bf16.mxu1 %vm9898_vm0, %v11889_v1 }
 0x122   : > { %v1117_v53 = vpop.f32.mrb[4].mxu1  ;;  %8783 = vmatprep.subr.bf16.mxu1 %v11889_v1 }
 0x123   : > { %v1118_v54 = vadd.f32 %v7613_v50, %v1117_v53  ;;  %v8611_v55 = vpop.f32.mrb[5].mxu1  ;;  %8599 = vmatmul.mubr.msk.f32.gmra.mrb[6].mxu0 %vm847_vm2, %v10279_v51 }
 0x124   : > { %v1120_v56 = vpop.f32.mrb[6].mxu1  ;;  %8615 = vmatprep.mubr.msk.f32.mxu0 %vm847_vm2, %v10284_v52  ;;  %v7697_v55 = vld [vmem:[%s11917_s26 + $0x6] ss:$0 sm:$0xff] }
 0x125   : > { %v8612_v58 = vpop.f32.mrb[7].mxu1  ;;  %8613 = vmatprep.subr.mxu0 %v1118_v54  ;;  %8784 = vmatpush3.bf16.msra.mxu1 %v9639_v38 }
 0x126   : > { %8614 = vmatpush3.msra.mxu0 %v1118_v54  ;;  %8785 = vmatprep.subr.bf16.mxu1 %v11889_v1  ;;  %v7659_v54 = vld [vmem:[%s11917_s26 + $0x4] ss:$0 sm:$0xff]  ;;  %v7716_v58 = vld [vmem:[%s11917_s26 + $0x7] ss:$0 sm:$0xff] }
 0x127   : > { %8616 = vmatmul.mubr.msk.f32.vlgmr.msra.gmra.mrb[4].mxu0 %vm847_vm2, %v10293_v57 }
 0x128   : > { %8618 = vmatprep.mubr.msk.f32.mxu0 %vm847_vm2, %v10298_v59 }
 0x129   : > { %8786 = vmatpush3.bf16.msra.mxu1 %v9641_v39 }
 0x12a   : > { %8787 = vmatprep.subr.bf16.mxu1 %v11889_v1 }
 0x12b   : > { %8619 = vmatmul.mubr.msk.f32.gmra.mrb[6].mxu0 %vm847_vm2, %v10307_v60 }
 0x12c   : > { %8635 = vmatprep.mubr.msk.f32.mxu0 %vm847_vm2, %v10312_v61 }
 0x12d   : > { %8788 = vmatpush3.bf16.msra.mxu1 %v9642_v41  ;;  %v667_v41 = vld [vmem:[%s11872_s17] sm:$0xff] }
 0x130   : > { %8790 = vmatmul.mubr.msk.bf16.vlgmr.msra.gmra.mrb[32].mxu1 %vm713_vm1, %v10105_v9 }
 0x132   : > { %v1304_v63 = vpop.f32.mrb[8].mxu1 }
 0x133   : > { %v1305_v0 = vadd.f32 %v7636_v62, %v1304_v63  ;;  %v8631_v2 = vpop.f32.mrb[9].mxu1 }
 0x134   : > { %v1307_v3 = vpop.f32.mrb[10].mxu1 }
 0x135   : > { %v8632_v6 = vpop.f32.mrb[11].mxu1  ;;  %8633 = vmatprep.subr.mxu0 %v1305_v0 }
 0x136   : > { %8634 = vmatpush3.msra.mxu0 %v1305_v0  ;;  %v9634_v6 = vld [vmem:[%s11915_s21 + $0x100] sm:$0xff]  }
 0x137   : > { %8636 = vmatmul.mubr.msk.f32.vlgmr.msra.gmra.mrb[4].mxu0 %vm847_vm2, %v10324_v4  ;;  %8641 = vmatprep.subr.bf16.mxu0 %v11889_v1 }
 0x138   : > { %8642 = vmatpush3.bf16.msra.mxu0 %v9616_v5  ;;  %8638 = vmatprep.mubr.msk.f32.mxu0 %vm847_vm2, %v10332_v7 }
 0x139   : > { %8643 = vmatprep.subr.bf16.mxu0 %v11889_v1 }
 0x13b   : > { %8639 = vmatmul.mubr.msk.f32.gmra.mrb[6].mxu0 %vm847_vm2, %v10342_v8 }
 0x13c   : > { %8644 = vmatpush3.bf16.msra.mxu0 %v9618_v10  ;;  %8649 = vmatprep.mubr.msk.bf16.mxu0 %vm9898_vm0, %v11889_v1  ;;  %v9636_v10 = vld [vmem:[%s11915_s21 + $0x108] sm:$0xff]  }
 0x13d   : > { %8645 = vmatprep.subr.bf16.mxu0 %v11889_v1 }
 0x140   : > { %8646 = vmatpush3.bf16.msra.mxu0 %v9620_v11  ;;  %v9638_v11 = vld [vmem:[%s11915_s21 + $0x110] sm:$0xff]  }
 0x141   : > { %8647 = vmatprep.subr.bf16.mxu0 %v11889_v1 }
 0x142   : > { %v1572_v14 = vpop.f32.mrb[12].mxu1 }
 0x143   : > { %v1573_v15 = vadd.f32 %v7674_v13, %v1572_v14  ;;  %v8663_v16 = vpop.f32.mrb[13].mxu1  ;;  %v7750_v13 = vld [vmem:[%s11917_s26 + $0x9] ss:$0 sm:$0xff] }
 0x144   : > { %8648 = vmatpush3.bf16.msra.mxu0 %v9622_v12  ;;  %v1575_v17 = vpop.f32.mrb[14].mxu1  ;;  %v9640_v12 = vld [vmem:[%s11915_s21 + $0x118] sm:$0xff]  }
 0x145   : > { %v8664_v18 = vpop.f32.mrb[15].mxu1  ;;  %8665 = vmatprep.subr.mxu0 %v1573_v15 }
 0x147   : > { %8650 = vmatmul.mubr.msk.bf16.vlgmr.msra.gmra.mrb[8].mxu0 %vm713_vm1, %v10105_v9 }
 0x148   : > { %8667 = vmatprep.mubr.msk.f32.mxu0 %vm847_vm2, %v10161_v19  ;;  %8666 = vmatpush3.msra.mxu0 %v1573_v15 }
 0x14f   : > { %8668 = vmatmul.mubr.msk.f32.vlgmr.msra.gmra.mrb[12].mxu0 %vm847_vm2, %v10231_v37 }
 0x150   : > { %8670 = vmatprep.mubr.msk.f32.mxu0 %vm847_vm2, %v10239_v40 }
 0x152   : > { %v1823_v21 = vpop.f32.mrb[16].mxu1 }
 0x153   : > { %8671 = vmatmul.mubr.msk.f32.gmra.mrb[14].mxu0 %vm847_vm2, %v10248_v45  ;;  %v8691_v22 = vpop.f32.mrb[17].mxu1  ;;  %v1824_v2 = vadd.f32 %v7697_v55, %v1823_v21 }
 0x154   : > { %8675 = vmatprep.mubr.msk.f32.mxu0 %vm847_vm2, %v10253_v47  ;;  %v1826_v23 = vpop.f32.mrb[18].mxu1 }
 0x155   : > { %v8692_v25 = vpop.f32.mrb[19].mxu1 }
 0x162   : > { %v1993_v29 = vpop.f32.mrb[20].mxu1 }
 0x163   : > { %v8711_v30 = vpop.f32.mrb[21].mxu1  ;;  %v1994_v5 = vadd.f32 %v7716_v58, %v1993_v29 }
 0x164   : > { %v1996_v31 = vpop.f32.mrb[22].mxu1 }
 0x165   : > { %v8712_v33 = vpop.f32.mrb[23].mxu1  ;;  %v7792_v31 = vld [vmem:[%s11917_s26 + $0xb] ss:$0 sm:$0xff] }
 0x172   : > { %v2244_v14 = vpop.f32.mrb[24].mxu1 }
 0x173   : > { %v2245_v15 = vadd.f32 %v7750_v13, %v2244_v14  ;;  %v8743_v16 = vpop.f32.mrb[25].mxu1 }
 0x174   : > { %v2247_v17 = vpop.f32.mrb[26].mxu1 }
 0x175   : > { %v8744_v18 = vpop.f32.mrb[27].mxu1 }
 0x20a   : > { %v10432_v42 = vpop.f32.mrb[4].mxu0 }
 0x20b   : > { %v10434_v43 = vpop.f32.mrb[5].mxu0 }
 0x20c   : > { %v2760_v44 = vpack.c.bf16 %v10432_v42, %v10434_v43 }
 0x20e   : > { %v10438_v46 = vpop.f32.mrb[6].mxu0 }
 0x20f   : > { %v10440_v50 = vpop.f32.mrb[7].mxu0 }
 0x210   : > { %v2761_v53 = vpack.c.bf16 %v10438_v46, %v10440_v50 }
 0x21a   : > { %v1491_v56 = vpop.f32.mrb[8].mxu0 }
 0x21b   : > { %v1492_v62 = vadd.f32 %v7659_v54, %v1491_v56  ;;  %v8651_v63 = vpop.f32.mrb[9].mxu0  ;;  %v668_v54 = vld [vmem:[%s11872_s17 + $0x8] sm:$0xff] }
 0x21c   : > { %v1494_v0 = vpop.f32.mrb[10].mxu0 }
 0x21d   : > { %v8652_v3 = vpop.f32.mrb[11].mxu0  ;;  %8673 = vmatprep.subr.mxu0 %v1492_v62 }
 0x21e   : > { %8674 = vmatpush3.msra.mxu0 %v1492_v62 }
 0x21f   : > { %8676 = vmatmul.mubr.msk.f32.vlgmr.msra.gmra.mrb[12].mxu0 %vm847_vm2, %v10262_v48  ;;  %8693 = vmatprep.subr.mxu0 %v1824_v2 }
 0x220   : > { %8694 = vmatpush3.msra.mxu0 %v1824_v2  ;;  %8678 = vmatprep.mubr.msk.f32.mxu0 %vm847_vm2, %v10267_v49 }
 0x221   : > { %8713 = vmatprep.subr.mxu0 %v1994_v5 }
 0x223   : > { %8679 = vmatmul.mubr.msk.f32.gmra.mrb[14].mxu0 %vm847_vm2, %v10279_v51 }
 0x224   : > { %8695 = vmatprep.mubr.msk.f32.mxu0 %vm847_vm2, %v10284_v52 }
 0x227   : > { %8696 = vmatmul.mubr.msk.f32.vlgmr.msra.gmra.mrb[12].mxu0 %vm847_vm2, %v10293_v57 }
 0x228   : > { %8698 = vmatprep.mubr.msk.f32.mxu0 %vm847_vm2, %v10298_v59  ;;  %8714 = vmatpush3.msra.mxu0 %v1994_v5 }
 0x229   : > { %8721 = vmatprep.subr.bf16.mxu0 %v11889_v1 }
 0x22b   : > { %8699 = vmatmul.mubr.msk.f32.gmra.mrb[14].mxu0 %vm847_vm2, %v10307_v60 }
 0x22c   : > { %8715 = vmatprep.mubr.msk.f32.mxu0 %vm847_vm2, %v10312_v61 }
 0x22f   : > { %8716 = vmatmul.mubr.msk.f32.vlgmr.msra.gmra.mrb[12].mxu0 %vm847_vm2, %v10324_v4 }
 0x230   : > { %8722 = vmatpush3.bf16.msra.mxu0 %v9634_v6  ;;  %8718 = vmatprep.mubr.msk.f32.mxu0 %vm847_vm2, %v10332_v7 }
 0x231   : > { %8723 = vmatprep.subr.bf16.mxu0 %v11889_v1 }
 0x233   : > { %8719 = vmatmul.mubr.msk.f32.gmra.mrb[14].mxu0 %vm847_vm2, %v10342_v8 }
 0x234   : > { %8724 = vmatpush3.bf16.msra.mxu0 %v9636_v10  ;;  %8729 = vmatprep.mubr.msk.bf16.mxu0 %vm9898_vm0, %v11889_v1 }
 0x235   : > { %8725 = vmatprep.subr.bf16.mxu0 %v11889_v1 }
 0x238   : > { %8726 = vmatpush3.bf16.msra.mxu0 %v9638_v11 }
 0x239   : > { %8727 = vmatprep.subr.bf16.mxu0 %v11889_v1 }
 0x23c   : > { %8728 = vmatpush3.bf16.msra.mxu0 %v9640_v12 }
 0x23d   : > { %8745 = vmatprep.subr.mxu0 %v2245_v15 }
 0x23f   : > { %8730 = vmatmul.mubr.msk.bf16.vlgmr.msra.gmra.mrb[16].mxu0 %vm713_vm1, %v10105_v9  ;;  %v2495_v9 = vpop.f32.mrb[28].mxu1 }
 0x240   : > { %8747 = vmatprep.mubr.msk.f32.mxu0 %vm847_vm2, %v10161_v19  ;;  %8746 = vmatpush3.msra.mxu0 %v2245_v15  ;;  %v8771_v19 = vpop.f32.mrb[29].mxu1 }
 0x241   : > { %v2498_v20 = vpop.f32.mrb[30].mxu1 }
 0x242   : > { %v8772_v21 = vpop.f32.mrb[31].mxu1 }
 0x243   : > { %v2665_v22 = vpop.f32.mrb[32].mxu1 }
 0x244   : > { %v8791_v23 = vpop.f32.mrb[33].mxu1  ;;  %v2666_v38 = vadd.f32 %v7792_v31, %v2665_v22 }
 0x245   : > { %v2668_v24 = vpop.f32.mrb[34].mxu1 }
 0x246   : > { %v8792_v25 = vpop.f32.mrb[35].mxu1 }
 0x247   : > { %8748 = vmatmul.mubr.msk.f32.vlgmr.msra.gmra.mrb[20].mxu0 %vm847_vm2, %v10231_v37 }
 0x248   : > { %8750 = vmatprep.mubr.msk.f32.mxu0 %vm847_vm2, %v10239_v40 }
 0x24b   : > { %8751 = vmatmul.mubr.msk.f32.gmra.mrb[22].mxu0 %vm847_vm2, %v10248_v45  ;;  %v7735_v45 = vld [vmem:[%s11917_s26 + $0x8] ss:$0 sm:$0xff] }
 0x24c   : > { %8755 = vmatprep.mubr.msk.f32.mxu0 %vm847_vm2, %v10253_v47  ;;  %v7773_v47 = vld [vmem:[%s11917_s26 + $0xa] ss:$0 sm:$0xff] }
 0x24d   : > { %v2496_v35 = vadd.f32 %v7773_v47, %v2495_v9  ;;  %v2881_v47 = vld [vmem:[%s11871_s16 + $0x10] sm:$0xff] }
 0x302   : > { %v8717_v26 = vpop.f32.mrb[12].mxu0 }
 0x303   : > { %v2065_v27 = vpop.f32.mrb[13].mxu0 }
 0x304   : > { %v2762_v37 = vpack.c.bf16 %v8717_v26, %v2065_v27  ;;  %v2879_v27 = vld [vmem:[%s11871_s16] sm:$0xff] }
 0x306   : > { %v8720_v28 = vpop.f32.mrb[14].mxu0 }
 0x307   : > { %v2075_v29 = vpop.f32.mrb[15].mxu0 }
 0x308   : > { %v2763_v40 = vpack.c.bf16 %v8720_v28, %v2075_v29  ;;  %v7808_v29 = vld [vmem:[%s11871_s16 + $0x20] sm:$0xff] }
 0x312   : > { %v2163_v30 = vpop.f32.mrb[16].mxu0 }
 0x313   : > { %v2164_v32 = vadd.f32 %v7735_v45, %v2163_v30  ;;  %v8731_v33 = vpop.f32.mrb[17].mxu0  ;;  %v2882_v30 = vld [vmem:[%s11871_s16 + $0x18] sm:$0xff] }
 0x314   : > { %v2166_v34 = vpop.f32.mrb[18].mxu0  ;;  %v9357_v31 = vpack.c.bf16 %v2882_v30, %v2881_v47  ;;  %v7811_v33 = vld [vmem:[%s11871_s16 + $0x38] sm:$0xff] }
 0x315   : > { %v8732_v36 = vpop.f32.mrb[19].mxu0  ;;  %8753 = vmatprep.subr.mxu0 %v2164_v32 }
 0x316   : > { %8754 = vmatpush3.msra.mxu0 %v2164_v32  ;;  %v7810_v32 = vld [vmem:[%s11871_s16 + $0x30] sm:$0xff]  ;;  %v7817_v36 = vld [vmem:[%s11871_s16 + $0x48] sm:$0xff] }
 0x317   : > { %8756 = vmatmul.mubr.msk.f32.vlgmr.msra.gmra.mrb[20].mxu0 %vm847_vm2, %v10262_v48  ;;  %8773 = vmatprep.subr.mxu0 %v2496_v35  ;;  %v2772_v48 = vsel %vm2764_vm3, %v2762_v37, 0  ;;  %v9365_v34 = vpack.c.bf16 %v7811_v33, %v7810_v32  ;;  %v7849_v32 = vld [vmem:[%s11870_s15 + $0x18] sm:$0xff]  ;;  %v9645_v33 = vld [vmem:[%s11918_s27 + $0x10] sm:$0xff]  }
 0x318   : > { %8774 = vmatpush3.msra.mxu0 %v2496_v35  ;;  %8758 = vmatprep.mubr.msk.f32.mxu0 %vm847_vm2, %v10267_v49  ;;  %v2775_v49 = vsel %vm2764_vm3, %v2763_v40, 0  ;;  %v7816_v35 = vld [vmem:[%s11871_s16 + $0x40] sm:$0xff] }
 0x319   : > { %8793 = vmatprep.subr.mxu0 %v2666_v38 }
 0x31b   : > { %8759 = vmatmul.mubr.msk.f32.gmra.mrb[22].mxu0 %vm847_vm2, %v10279_v51 }
 0x31c   : > { %8775 = vmatprep.mubr.msk.f32.mxu0 %vm847_vm2, %v10284_v52 }
 0x31f   : > { %8776 = vmatmul.mubr.msk.f32.vlgmr.msra.gmra.mrb[20].mxu0 %vm847_vm2, %v10293_v57 }
 0x320   : > { %8794 = vmatpush3.msra.mxu0 %v2666_v38  ;;  %8778 = vmatprep.mubr.msk.f32.mxu0 %vm847_vm2, %v10298_v59  ;;  %v9369_v38 = vpack.c.bf16 %v7817_v36, %v7816_v35 }
 0x321   : > { %9537 = vmatprep.subr.msk.bf16.mxu0 %vm2764_vm3, %v2762_v37  ;;  %v2880_v37 = vld [vmem:[%s11871_s16 + $0x8] sm:$0xff] }
 0x322   : > { %v9353_v28 = vpack.c.bf16 %v2880_v37, %v2879_v27  ;;  %v9643_v27 = vld [vmem:[%s11918_s27 + $0x8] sm:$0xff]   ;;  %v9644_v37 = vld [vmem:[%s11918_s27] sm:$0xff]  }
 0x323   : > { %8779 = vmatmul.mubr.msk.f32.gmra.mrb[22].mxu0 %vm847_vm2, %v10307_v60 }
 0x324   : > { %8795 = vmatprep.mubr.msk.f32.mxu0 %vm847_vm2, %v10312_v61 }
 0x327   : > { %8796 = vmatmul.mubr.msk.f32.vlgmr.msra.gmra.mrb[20].mxu0 %vm847_vm2, %v10324_v4 }
 0x328   : > { %8802 = vmatpush3.bf16.xpose.msra.mxu0 %v2772_v48  ;;  %8798 = vmatprep.mubr.msk.f32.mxu0 %vm847_vm2, %v10332_v7  ;;  %v669_v7 = vld [vmem:[%s11872_s17 + $0x10] sm:$0xff]  ;;  %v7824_v48 = vld [vmem:[%s11871_s16 + $0x60] sm:$0xff] }
 0x329   : > { %9538 = vmatprep.subr.msk.bf16.mxu0 %vm2764_vm3, %v2763_v40  ;;  %v7809_v40 = vld [vmem:[%s11871_s16 + $0x28] sm:$0xff] }
 0x32a   : > { %v9361_v45 = vpack.c.bf16 %v7809_v40, %v7808_v29 }
 0x32b   : > { %8799 = vmatmul.mubr.msk.f32.gmra.mrb[22].mxu0 %vm847_vm2, %v10342_v8 }
 0x32c   : > { %8805 = vmatprep.mubr.msk.bf16.mxu0 %vm2764_vm3, %v2760_v44  ;;  %v670_v44 = vld [vmem:[%s11872_s17 + $0x18] sm:$0xff]  ;;  %9362 = vmatprep.subr.bf16.mxu1 %v9361_v45 }
 0x32d   : > { %9364 = vmatpush3.bf16.msra.mxu1 %v9361_v45 }
 0x32e   : > { %9366 = vmatprep.subr.bf16.mxu1 %v9365_v34 }
 0x330   : > { %8804 = vmatpush3.bf16.xpose.msra.mxu0 %v2775_v49  ;;  %v7825_v49 = vld [vmem:[%s11871_s16 + $0x68] sm:$0xff] }
 0x331   : > { %9354 = vmatprep.subr.bf16.mxu0 %v9353_v28  ;;  %9368 = vmatpush3.bf16.msra.mxu1 %v9365_v34  ;;  %v9646_v34 = vld [vmem:[%s11918_s27 + $0x18] sm:$0xff]  }
 0x337   : > { %8806 = vmatmul.mubr.msk.bf16.vlgmr.msra.gmra.mrb[24].mxu0 %vm2764_vm3, %v2761_v53 }
 0x338   : > { %9356 = vmatpush3.bf16.msra.mxu0 %v9353_v28 }
 0x339   : > { %9358 = vmatprep.subr.bf16.mxu0 %v9357_v31 }
 0x33c   : > { %9360 = vmatpush3.bf16.msra.mxu0 %v9357_v31  ;;  %v7843_v31 = vld [vmem:[%s11870_s15 + $0x10] sm:$0xff] }
 0x33d   : > { %9370 = vmatprep.subr.bf16.mxu0 %v9369_v38 }
 0x3fa   : > { %v8797_v51 = vpop.f32.mrb[20].mxu0 }
 0x3fb   : > { %v2737_v52 = vpop.f32.mrb[21].mxu0 }
 0x3fc   : > { %v10551_v57 = vpack.c.bf16 %v8797_v51, %v2737_v52  ;;  %v9377_v51 = vpack.c.bf16 %v7825_v49, %v7824_v48 }
 0x3fe   : > { %v8800_v59 = vpop.f32.mrb[22].mxu0  ;;  %9378 = vmatprep.subr.bf16.mxu1 %v9377_v51 }
 0x3ff   : > { %v2747_v60 = vpop.f32.mrb[23].mxu0 }
 0x400   : > { %v10553_v61 = vpack.c.bf16 %v8800_v59, %v2747_v60 }
 0x40a   : > { %v8807_v4 = vpop.f32.mrb[24].mxu0 }
 0x40b   : > { %v2828_v8 = vmul.f32 0.5, %v8807_v4  ;;  %v2811_v39 = vpop.f32.mrb[25].mxu0 }
 0x40c   : > { %v2826_v42 = vmul.f32 0.5, %v2811_v39  ;;  %v8808_v43 = vpop.f32.mrb[26].mxu0  ;;  %v7818_v39 = vld [vmem:[%s11871_s16 + $0x50] sm:$0xff] }
 0x40d   : > { %v2829_v46 = vmul.f32 0.5, %v8808_v43  ;;  %v2814_v50 = vpop.f32.mrb[27].mxu0  ;;  %v2832_v53 = vadd.f32 %v2828_v8, %v669_v7  ;;  %v7827_v43 = vld [vmem:[%s11871_s16 + $0x78] sm:$0xff] }
 0x40e   : > { %v2827_v55 = vmul.f32 0.5, %v2814_v50  ;;  %v2830_v56 = vadd.f32 %v2826_v42, %v667_v41  ;;  %v7819_v41 = vld [vmem:[%s11871_s16 + $0x58] sm:$0xff]  ;;  %v7826_v42 = vld [vmem:[%s11871_s16 + $0x70] sm:$0xff] }
 0x40f   : > { %v2841_v58 = vsel %vm2834_vm4, %v2832_v53, -inf  ;;  %v2833_v62 = vadd.f32 %v2829_v46, %v670_v44 }
 0x410   : > { %2842 = vmax.xlane.f32.xlu1 %v2841_v58  ;;  %v2835_v63 = vsel %vm2834_vm4, %v2830_v56, -inf  ;;  %v2831_v0 = vadd.f32 %v2827_v55, %v668_v54  ;;  %v9373_v54 = vpack.c.bf16 %v7819_v41, %v7818_v39  ;;  %v9381_v55 = vpack.c.bf16 %v7827_v43, %v7826_v42 }
 0x411   : > { %2836 = vmax.xlane.f32.xlu0 %v2835_v63  ;;  %v2844_v2 = vsel %vm2834_vm4, %v2833_v62, -inf }
 0x412   : > { %v2838_v3 = vsel %vm2834_vm4, %v2831_v0, -inf }
 0x414   : > { %2845 = vmax.xlane.f32.xlu1 %v2844_v2 }
 0x415   : > { %2839 = vmax.xlane.f32.xlu0 %v2838_v3 }
 0x49d   : > { %v2843_v5 = vpop.xlane.xlu1 %2842 }
 0x49e   : > { %v2849_v6 = vsub.f32 %v2832_v53, %v2843_v5  ;;  %v2837_v10 = vpop.xlane.xlu0 %2836 }
 0x49f   : > { %v2847_v11 = vsub.f32 %v2830_v56, %v2837_v10 }
 0x4a0   : > { %v2855_v12 = vmul.f32 1.442695, %v2849_v6 }
 0x4a1   : > { %v2851_v13 = vmul.f32 1.442695, %v2847_v11  ;;  %v2846_v14 = vpop.xlane.xlu1 %2845 }
 0x4a2   : > { %v2850_v15 = vsub.f32 %v2833_v62, %v2846_v14  ;;  %v2840_v16 = vpop.xlane.xlu0 %2839 }
 0x4a3   : > { %9711 = vpow2.f32 %v2851_v13  ;;  %v2848_v17 = vsub.f32 %v2831_v0, %v2840_v16 }
 0x4a4   : > { %9713 = vpow2.f32 %v2855_v12  ;;  %v2857_v18 = vmul.f32 1.442695, %v2850_v15 }
 0x4a5   : > { %v2853_v9 = vmul.f32 1.442695, %v2848_v17 }
 0x4a7   : > { %9715 = vpow2.f32 %v2853_v9 }
 0x4a8   : > { %9717 = vpow2.f32 %v2857_v18 }
 0x4ad   : > { %v9712_v19 = vpop.eup %9711 }
 0x4ae   : > { %v2859_v20 = vsel %vm2834_vm4, %v9712_v19, 0.0  ;;  %v9714_v21 = vpop.eup %9713 }
 0x4af   : > { %2860 = vadd.xlane.f32.xlu0 %v2859_v20  ;;  %v2865_v23 = vsel %vm2834_vm4, %v9714_v21, 0.0 }
 0x4b1   : > { %v9716_v22 = vpop.eup %9715 }
 0x4b2   : > { %v2862_v24 = vsel %vm2834_vm4, %v9716_v22, 0.0  ;;  %v9718_v25 = vpop.eup %9717 }
 0x4b3   : > { %2866 = vadd.xlane.f32.xlu0 %v2865_v23  ;;  %2863 = vadd.xlane.f32.xlu1 %v2862_v24  ;;  %v2868_v26 = vsel %vm2834_vm4, %v9718_v25, 0.0 }
 0x4b7   : > { %2869 = vadd.xlane.f32.xlu1 %v2868_v26  ;;  %v7835_v26 = vld [vmem:[%s11870_s15 + $0x8] sm:$0xff] }
 0x53c   : > { %v2861_v52 = vpop.xlane.xlu0 %2860 }
 0x53d   : > { %9719 = vrcp.f32 %v2861_v52 }
 0x540   : > { %v2864_v59 = vpop.xlane.xlu1 %2863  ;;  %v2867_v60 = vpop.xlane.xlu0 %2866 }
 0x541   : > { %9721 = vrcp.f32 %v2864_v59 }
 0x542   : > { %9723 = vrcp.f32 %v2867_v60 }
 0x544   : > { %v2870_v4 = vpop.xlane.xlu1 %2869 }
 0x545   : > { %9725 = vrcp.f32 %v2870_v4 }
 0x547   : > { %v9720_v7 = vpop.eup %9719 }
 0x548   : > { %v2872_v8 = vmul.f32 %v9720_v7, %v9712_v19 }
 0x54a   : > { %8817 = vmatprep.mubr.msk.f32.mxu0 %vm2834_vm4, %v2872_v8  ;;  %8831 = vmatprep.mubr.msk.f32.mxu1 %vm2834_vm4, %v2872_v8 }
 0x54b   : > { %v9722_v44 = vpop.eup %9721 }
 0x54c   : > { %v9724_v46 = vpop.eup %9723  ;;  %v2874_v50 = vmul.f32 %v9722_v44, %v9716_v22 }
 0x54d   : > { %v2876_v53 = vmul.f32 %v9724_v46, %v9714_v21 }
 0x54e   : > { %8818 = vmatmul.mubr.msk.f32.vlgmr.msra.gmra.mrb[28].mxu0 %vm2834_vm4, %v2874_v50  ;;  %8832 = vmatmul.mubr.msk.f32.vlgmr.msra.gmra.mrb[36].mxu1 %vm2834_vm4, %v2874_v50  ;;  %v3330_v62 = vpack.c.bf16 %v2874_v50, %v2872_v8 }
 0x54f   : > { %v9726_v56 = vpop.eup %9725  ;;  %9372 = vmatpush3.bf16.msra.mxu0 %v9369_v38  ;;  %8820 = vmatprep.mubr.msk.f32.mxu0 %vm2834_vm4, %v2876_v53 }
 0x550   : > { %v2878_v58 = vmul.f32 %v9726_v56, %v9718_v25  ;;  %8834 = vmatprep.mubr.msk.f32.mxu1 %vm2834_vm4, %v2876_v53  ;;  %9380 = vmatpush3.bf16.msra.mxu1 %v9377_v51  ;;  %v3389_v25 = vld [vmem:[%s11870_s15] sm:$0xff] }
 0x551   : > { %9374 = vmatprep.subr.bf16.mxu0 %v9373_v54  ;;  %9382 = vmatprep.subr.bf16.mxu1 %v9381_v55 }
 0x552   : > { %8821 = vmatmul.mubr.msk.f32.gmra.mrb[30].mxu0 %vm2834_vm4, %v2878_v58  ;;  %8835 = vmatmul.mubr.msk.f32.gmra.mrb[38].mxu1 %vm2834_vm4, %v2878_v58  ;;  %v3331_v63 = vpack.c.bf16 %v2878_v58, %v2876_v53 }
 0x553   : > { %9376 = vmatpush3.bf16.msra.mxu0 %v9373_v54  ;;  %8845 = vmatprep.mubr.msk.f32.mxu0 %vm2834_vm4, %v2872_v8  ;;  %v7855_v54 = vld [vmem:[%s11919_s5] ss:$0 sm:$0xff] }
 0x554   : > { %9384 = vmatpush3.bf16.msra.mxu1 %v9381_v55  ;;  %8859 = vmatprep.mubr.msk.f32.mxu1 %vm2834_vm4, %v2872_v8 }
 0x555   : > { %8865 = vmatprep.subr.bf16.mxu0 %v10551_v57 }
 0x556   : > { %8846 = vmatmul.mubr.msk.f32.vlgmr.msra.gmra.mrb[32].mxu0 %vm2834_vm4, %v2874_v50 }
 0x557   : > { %8860 = vmatmul.mubr.msk.f32.vlgmr.msra.gmra.mrb[40].mxu1 %vm2834_vm4, %v2874_v50  ;;  %8866 = vmatpush3.bf16.msra.mxu0 %v10551_v57  ;;  %v9899_v57 = vmov 0.0|0.0  }
 0x558   : > { %8848 = vmatprep.mubr.msk.f32.mxu0 %vm2834_vm4, %v2876_v53  ;;  %8862 = vmatprep.mubr.msk.f32.mxu1 %vm2834_vm4, %v2876_v53 }
 0x559   : > { %8867 = vmatprep.subr.bf16.mxu0 %v10553_v61  ;;  %9385 = vmatprep.subr.bf16.mxu1 %v9899_v57 }
 0x55a   : > { %8849 = vmatmul.mubr.msk.f32.gmra.mrb[34].mxu0 %vm2834_vm4, %v2878_v58 }
 0x55b   : > { %8863 = vmatmul.mubr.msk.f32.gmra.mrb[42].mxu1 %vm2834_vm4, %v2878_v58  ;;  %8868 = vmatpush3.bf16.msra.mxu0 %v10553_v61 }
 0x55c   : > { %8869 = vmatprep.mubr.msk.bf16.mxu0 %vm2834_vm4, %v3330_v62  ;;  %8881 = vmatprep.mubr.msk.f32.mxu1 %vm9898_vm0, %v11889_v1 }
 0x55d   : > { %9391 = vmatprep.subr.bf16.mxu0 %v9899_v57 }
 0x55e   : > { %8870 = vmatmul.mubr.msk.bf16.vlgmr.msra.gmra.mrb[36].mxu0 %vm2834_vm4, %v3331_v63 }
 0x55f   : > { %8892 = vmatprep.mubr.msk.f32.mxu0 %vm9898_vm0, %v11889_v1 }
 0x621   : > { %v10651_v0 = vpop.f32.mrb[28].mxu0  ;;  %v10653_v2 = vpop.f32.mrb[36].mxu1 }
 0x622   : > { %v10655_v61 = vpop.f32.mrb[29].mxu0  ;;  %v10657_v3 = vpop.f32.mrb[37].mxu1 }
 0x625   : > { %v10659_v5 = vpop.f32.mrb[30].mxu0  ;;  %v10661_v6 = vpop.f32.mrb[38].mxu1 }
 0x626   : > { %v10663_v10 = vpop.f32.mrb[31].mxu0  ;;  %v10665_v11 = vpop.f32.mrb[39].mxu1 }
 0x629   : > { %v10667_v12 = vpop.f32.mrb[32].mxu0 }
 0x62a   : > { %v10669_v13 = vpop.f32.mrb[40].mxu1  ;;  %v10671_v14 = vpop.f32.mrb[33].mxu0 }
 0x62b   : > { %v10673_v15 = vpop.f32.mrb[41].mxu1 }
 0x62d   : > { %v10675_v16 = vpop.f32.mrb[34].mxu0 }
 0x62e   : > { %v10677_v17 = vpop.f32.mrb[42].mxu1  ;;  %v10679_v18 = vpop.f32.mrb[35].mxu0 }
 0x62f   : > { %v10681_v9 = vpop.f32.mrb[43].mxu1 }
 0x631   : > { %v8871_v19 = vpop.f32.mrb[36].mxu0 }
 0x632   : > { %v3374_v20 = vpop.f32.mrb[37].mxu0 }
 0x633   : > { %v8872_v21 = vpop.f32.mrb[38].mxu0 }
 0x634   : > { %v9389_v22 = vpack.c.bf16 %v8872_v21, %v8871_v19  ;;  %v3377_v23 = vpop.f32.mrb[39].mxu0 }
 0x635   : > { %v9386_v24 = vpack.c.bf16 %v3377_v23, %v3374_v20  ;;  %v9749_v20 = vld [vmem:[%s10093_s1] sm:$0xff]  ;;  %s11923_s1 = sld [smem:[#allocation17_spill]] }
 0x637   : > { %9387 = vmatpush3.bf16.msra.mxu1 %v9386_v24  ;;  %9393 = vmatpush3.bf16.msra.mxu0 %v9386_v24 }
 0x638   : > { %9388 = vmatprep.subr.bf16.mxu1 %v9899_v57  ;;  %9394 = vmatprep.subr.bf16.mxu0 %v9899_v57 }
 0x63b   : > { %9390 = vmatpush3.bf16.msra.mxu1 %v9389_v22  ;;  %9396 = vmatpush3.bf16.msra.mxu0 %v9389_v22  ;;  %s659_s29 = scalar_lea.vmem %s11923_s1, %s11922_s23  ;;  %s11688_s23 = scalar_lea.vmem [#allocation6], %s7567_s0 }
 0x63c   : > { %8895 = vmatprep.subr.bf16.mxu1 %v11889_v1  ;;  %8901 = vmatprep.subr.bf16.mxu0 %v11889_v1  ;;  %s11891_s1 = sshll.u32 %s10031_s2, 9 }
 0x63d   : > { %s11713_s0 = scalar_lea.hbm %s11874_s19, %s11891_s1  ;;  %s8162_s1 = sshll.u32 %s10031_s2, 7 }
 0x63e   : > { %8882 = vmatmul.mubr.msk.f32.vlgmr.msra.gmra.mrb[44].mxu1 %vm2834_vm4, %v3389_v25  ;;  %8893 = vmatmul.mubr.msk.f32.vlgmr.msra.gmra.mrb[40].mxu0 %vm2834_vm4, %v7835_v26 }
 0x63f   : > { %8896 = vmatpush3.bf16.msra.mxu1 %v9643_v27  ;;  %8902 = vmatpush3.bf16.msra.mxu0 %v9644_v37  ;;  %v9647_v37 = vld [vmem:[%s11915_s21 + $0x20] sm:$0xff]  }
 0x640   : > { %8897 = vmatprep.mubr.msk.bf16.mxu1 %vm9898_vm0, %v11889_v1  ;;  %8903 = vmatprep.mubr.msk.bf16.mxu0 %vm9898_vm0, %v11889_v1 }
 0x641   : > { %9397 = vmatprep.subr.bf16.mxu1 %v9899_v57  ;;  %9403 = vmatprep.subr.bf16.mxu0 %v9899_v57 }
 0x711   : > { %v3459_v28 = vpop.f32.mrb[44].mxu1  ;;  %v3537_v29 = vpop.f32.mrb[40].mxu0 }
 0x712   : > { %v3463_v40 = vpack.c.bf16 %v3459_v28, %v3459_v28  ;;  %v3541_v45 = vpack.c.bf16 %v3537_v29, %v3537_v29  ;;  %v8894_v47 = vpop.f32.mrb[41].mxu0  ;;  %v8883_v30 = vpop.f32.mrb[45].mxu1  ;;  %v9648_v28 = vld [vmem:[%s11915_s21] sm:$0xff]   ;;  %v9649_v29 = vld [vmem:[%s11915_s21 + $0x28] sm:$0xff]  }
 0x713   : > { %v9652_v47 = vld [vmem:[%s11915_s21 + $0x10] sm:$0xff]   ;;  %v9653_v30 = vld [vmem:[%s11915_s21 + $0x38] sm:$0xff]  }
 0x714   : > { %8898 = vmatmul.mubr.msk.bf16.vlgmr.msra.gmra.mrb[48].mxu1 %vm2764_vm3, %v3541_v45  ;;  %8904 = vmatmul.mubr.msk.bf16.vlgmr.msra.gmra.mrb[44].mxu0 %vm2764_vm3, %v3463_v40  ;;  %v9650_v40 = vld [vmem:[%s11915_s21 + $0x8] sm:$0xff]   ;;  %v9651_v45 = vld [vmem:[%s11915_s21 + $0x30] sm:$0xff]  }
 0x715   : > { %9399 = vmatpush3.bf16.msra.mxu1 %v9386_v24  ;;  %9405 = vmatpush3.bf16.msra.mxu0 %v9386_v24 }
 0x716   : > { %9400 = vmatprep.subr.bf16.mxu1 %v9899_v57  ;;  %9406 = vmatprep.subr.bf16.mxu0 %v9899_v57 }
 0x717   : > { %8915 = vmatprep.mubr.msk.f32.mxu1 %vm9898_vm0, %v11889_v1  ;;  %8932 = vmatprep.mubr.msk.f32.mxu0 %vm9898_vm0, %v11889_v1 }
 0x719   : > { %9402 = vmatpush3.bf16.msra.mxu1 %v9389_v22  ;;  %9408 = vmatpush3.bf16.msra.mxu0 %v9389_v22 }
 0x71a   : > { %8918 = vmatprep.subr.bf16.mxu1 %v11889_v1  ;;  %8935 = vmatprep.subr.bf16.mxu0 %v11889_v1 }
 0x71c   : > { %8916 = vmatmul.mubr.msk.f32.vlgmr.msra.gmra.mrb[46].mxu1 %vm2834_vm4, %v7843_v31  ;;  %8933 = vmatmul.mubr.msk.f32.vlgmr.msra.gmra.mrb[42].mxu0 %vm2834_vm4, %v7849_v32  ;;  %v9654_v31 = vld [vmem:[%s11915_s21 + $0x18] sm:$0xff]  }
 0x71d   : > { %8920 = vmatprep.mubr.msk.bf16.mxu1 %vm9898_vm0, %v11889_v1  ;;  %8937 = vmatprep.mubr.msk.bf16.mxu0 %vm9898_vm0, %v11889_v1 }
 0x71e   : > { %8919 = vmatpush3.bf16.msra.mxu1 %v9645_v33  ;;  %8936 = vmatpush3.bf16.msra.mxu0 %v9646_v34 }
 0x71f   : > { %8953 = vmatprep.subr.bf16.mxu0 %v11889_v1  ;;  %8941 = vmatprep.subr.bf16.mxu1 %v11889_v1 }
 0x7e7   : > { %v3588_v35 = vpop.f32.mrb[48].mxu1  ;;  %v3637_v36 = vpop.f32.mrb[44].mxu0 }
 0x7e8   : > { %v3638_v38 = vadd.f32 %v3637_v36, %v3588_v35  ;;  %v8899_v48 = vpop.f32.mrb[49].mxu1  ;;  %v8905_v49 = vpop.f32.mrb[45].mxu0  ;;  %v7856_v36 = vld [vmem:[%s11920_s6] ss:$0 sm:$0xff] }
 0x7e9   : > { %v3591_v51 = vpop.f32.mrb[50].mxu1  ;;  %v3640_v52 = vpop.f32.mrb[46].mxu0  ;;  %v7857_v48 = vld [vmem:[%s11921_s7] ss:$0 sm:$0xff] }
 0x7ea   : > { %v8900_v59 = vpop.f32.mrb[51].mxu1  ;;  %v8906_v60 = vpop.f32.mrb[47].mxu0  ;;  %v9655_v52 = vld [vmem:[%s11915_s21 + $0x40] sm:$0xff]  }
 0x7eb   : > { %v9656_v60 = vld [vmem:[%s11915_s21 + $0x48] sm:$0xff]  }
 0x7ef   : > { %v3714_v4 = vpop.f32.mrb[46].mxu1  ;;  %v3843_v7 = vpop.f32.mrb[42].mxu0 }
 0x7f0   : > { %v3718_v8 = vpack.c.bf16 %v3714_v4, %v3714_v4  ;;  %v3847_v39 = vpack.c.bf16 %v3843_v7, %v3843_v7  ;;  %v8917_v41 = vpop.f32.mrb[47].mxu1  ;;  %v8934_v42 = vpop.f32.mrb[43].mxu0  ;;  %v9657_v4 = vld [vmem:[%s11915_s21 + $0x50] sm:$0xff]   ;;  %v9658_v7 = vld [vmem:[%s11915_s21 + $0x58] sm:$0xff]  }
 0x7f1   : > { %v9661_v41 = vld [vmem:[%s11915_s21 + $0x70] sm:$0xff]   ;;  %v9662_v42 = vld [vmem:[%s11915_s21 + $0x78] sm:$0xff]  }
 0x7f2   : > { %8921 = vmatmul.mubr.msk.bf16.vlgmr.msra.gmra.mrb[52].mxu1 %vm2764_vm3, %v3718_v8  ;;  %8938 = vmatmul.mubr.msk.bf16.vlgmr.msra.gmra.mrb[48].mxu0 %vm2764_vm3, %v3847_v39  ;;  %v9659_v8 = vld [vmem:[%s11915_s21 + $0x60] sm:$0xff]   ;;  %v9660_v39 = vld [vmem:[%s11915_s21 + $0x68] sm:$0xff]  }
 0x7f3   : > { %8949 = vmatprep.mubr.msk.bf16.mxu1 %vm9898_vm0, %v11889_v1  ;;  %8961 = vmatprep.mubr.msk.bf16.mxu0 %vm9898_vm0, %v11889_v1 }
 0x7f4   : > { %8954 = vmatpush3.bf16.msra.mxu0 %v9647_v37  ;;  %8942 = vmatpush3.bf16.msra.mxu1 %v9648_v28 }
 0x7f5   : > { %8955 = vmatprep.subr.bf16.mxu0 %v11889_v1  ;;  %8943 = vmatprep.subr.bf16.mxu1 %v11889_v1 }
 0x7f8   : > { %8956 = vmatpush3.bf16.msra.mxu0 %v9649_v29  ;;  %8944 = vmatpush3.bf16.msra.mxu1 %v9650_v40 }
 0x7f9   : > { %8957 = vmatprep.subr.bf16.mxu0 %v11889_v1  ;;  %8945 = vmatprep.subr.bf16.mxu1 %v11889_v1 }
 0x7fc   : > { %8958 = vmatpush3.bf16.msra.mxu0 %v9651_v45  ;;  %8946 = vmatpush3.bf16.msra.mxu1 %v9652_v47  ;;  %v10915_v45 = vld [vmem:[%s11869_s14 + $0x28] sm:$0xff] }
 0x7fd   : > { %8959 = vmatprep.subr.bf16.mxu0 %v11889_v1  ;;  %8947 = vmatprep.subr.bf16.mxu1 %v11889_v1 }
 0x800   : > { %8960 = vmatpush3.bf16.msra.mxu0 %v9653_v30  ;;  %8948 = vmatpush3.bf16.msra.mxu1 %v9654_v31 }
 0x801   : > { %8981 = vmatprep.subr.bf16.mxu0 %v11889_v1 }
 0x8c5   : > { %v3765_v43 = vpop.f32.mrb[52].mxu1  ;;  %v3894_v44 = vpop.f32.mrb[48].mxu0 }
 0x8c6   : > { %v3771_v46 = vadd.f32 %v3765_v43, %v3638_v38  ;;  %v8922_v50 = vpop.f32.mrb[53].mxu1  ;;  %v8939_v53 = vpop.f32.mrb[49].mxu0  ;;  %v10835_v43 = vld [vmem:[%s11869_s14 + $0x20] sm:$0xff] }
 0x8c7   : > { %v3768_v55 = vpop.f32.mrb[54].mxu1  ;;  %v3897_v56 = vpop.f32.mrb[50].mxu0  ;;  %v9665_v50 = vld [vmem:[%s11915_s21 + $0xb0] sm:$0xff]   ;;  %v9666_v53 = vld [vmem:[%s11915_s21 + $0xb8] sm:$0xff]  }
 0x8c8   : > { %v3900_v58 = vadd.f32 %v3894_v44, %v3771_v46  ;;  %v8923_v62 = vpop.f32.mrb[55].mxu1  ;;  %v8940_v63 = vpop.f32.mrb[51].mxu0  ;;  %v9663_v44 = vld [vmem:[%s11915_s21 + $0xa0] sm:$0xff]   ;;  %v9664_v46 = vld [vmem:[%s11915_s21 + $0xa8] sm:$0xff]  }
 0x8c9   : > { %v9667_v56 = vld [vmem:[%s11915_s21 + $0xc0] sm:$0xff]   ;;  %v9671_v62 = vld [vmem:[%s11915_s21 + $0xd0] sm:$0xff]   ;;  %v9673_v63 = vld [vmem:[%s11915_s21 + $0xd8] sm:$0xff]  }
 0x8ca   : > { %v3907_v19 = vadd.f32 %v7855_v54, %v3900_v58  ;;  %v664_v54 = vld [vmem:[%s659_s29] sm:$0xff]  ;;  %v9669_v58 = vld [vmem:[%s11915_s21 + $0xc8] sm:$0xff]   ;;  %s7566_s29 = sshll.u32 %s11675_s25, 3 }
 0x8cb   : > { %v10860_v55 = vpack.c.bf16 %v664_v54, %v664_v54 }
 0x8cc   : > { %v3908_v21 = vadd.f32 %v9749_v20, %v3907_v19  ;;  %v9675_v19 = vld [vmem:[%s11915_s21 + $0xe0] sm:$0xff]   ;;  %v9676_v20 = vld [vmem:[%s11915_s21 + $0xe8] sm:$0xff]  }
 0x8ce   : > { %v3909_v22 = vsel %vm713_vm1, %v3908_v21, 0.0 }
 0x8cf   : > { %3910 = vadd.xlane.f32.xlu0 %v3909_v22  ;;  %v9678_v22 = vld [vmem:[%s11915_s21 + $0xf8] sm:$0xff]  }
 0x95c   : > { %v3911_v23 = vpop.xlane.xlu0 %3910 }
 0x95d   : > { %v3913_v24 = vmul.f32 0.015625, %v3911_v23  ;;  %v7873_v23 = vld [vmem:[%s11917_s26 + $0x1] ss:$0 sm:$0xff] }
 0x95f   : > { %v3914_v25 = vsub.f32 %v3908_v21, %v3913_v24  ;;  %v9677_v21 = vld [vmem:[%s11915_s21 + $0xf0] sm:$0xff]   ;;  %v7858_v24 = vld [vmem:[%s11917_s26] ss:$0 sm:$0xff] }
 0x961   : > { %v3915_v26 = vmul.f32 %v3914_v25, %v3914_v25 }
 0x963   : > { %v3916_v27 = vsel %vm713_vm1, %v3915_v26, 0.0 }
 0x964   : > { %3917 = vadd.xlane.f32.xlu1 %v3916_v27 }
 0x9f1   : > { %v3918_v32 = vpop.xlane.xlu1 %3917 }
 0x9f2   : > { %v3919_v33 = vmul.f32 0.015625, %v3918_v32  ;;  %v10920_v32 = vld [vmem:[%s11869_s14 + $0x30] sm:$0xff] }
 0x9f4   : > { %v3920_v34 = vadd.f32 1e-05, %v3919_v33  ;;  %v10929_v33 = vld [vmem:[%s11869_s14 + $0x38] sm:$0xff] }
 0x9f6   : > { %9727 = vrsqrt.f32 %v3920_v34  ;;  %v10934_v34 = vld [vmem:[%s11869_s14] sm:$0xff] }
 0xa00   : > { %v9728_v35 = vpop.eup %9727 }
 0xa01   : > { %v3922_v38 = vmul.f32 %v9728_v35, %v3914_v25  ;;  %v10943_v35 = vld [vmem:[%s11869_s14 + $0x8] sm:$0xff] }
 0xa03   : > { %v3929_v49 = vmul.f32 %v7856_v36, %v3922_v38  ;;  %v10948_v36 = vld [vmem:[%s11869_s14 + $0x10] sm:$0xff]  ;;  %v7900_v38 = vld [vmem:[%s11917_s26 + $0x2] ss:$0 sm:$0xff] }
 0xa05   : > { %v10786_v51 = vadd.f32 %v7857_v48, %v3929_v49  ;;  %v10960_v48 = vld [vmem:[%s11869_s14 + $0x18] sm:$0xff]  ;;  %v10965_v49 = vld [vmem:[%s11869_s14 + $0x40] sm:$0xff] }
 0xa07   : > { %v3937_v59 = vpack.c.bf16 %v10786_v51, %v10786_v51 }
 0xa09   : > { %8950 = vmatmul.mubr.msk.bf16.vlgmr.msra.gmra.mrb[56].mxu1 %vm713_vm1, %v3937_v59  ;;  %8962 = vmatmul.mubr.msk.bf16.vlgmr.msra.gmra.mrb[52].mxu0 %vm713_vm1, %v3937_v59 }
 0xa0a   : > { %8982 = vmatpush3.bf16.msra.mxu0 %v9655_v52  ;;  %8989 = vmatprep.mubr.msk.bf16.mxu0 %vm9898_vm0, %v11889_v1 }
 0xa0b   : > { %8983 = vmatprep.subr.bf16.mxu0 %v11889_v1  ;;  %8967 = vmatprep.mubr.msk.f32.mxu1 %vm847_vm2, %v10835_v43 }
 0xa0e   : > { %8984 = vmatpush3.bf16.msra.mxu0 %v9656_v60 }
 0xa0f   : > { %8985 = vmatprep.subr.bf16.mxu0 %v11889_v1 }
 0xa12   : > { %8986 = vmatpush3.bf16.msra.mxu0 %v9657_v4 }
 0xa13   : > { %8987 = vmatprep.subr.bf16.mxu0 %v11889_v1 }
 0xa16   : > { %8988 = vmatpush3.bf16.msra.mxu0 %v9658_v7  ;;  %v10974_v7 = vld [vmem:[%s11869_s14 + $0x48] sm:$0xff] }
 0xa17   : > { %9001 = vmatprep.subr.bf16.mxu0 %v11889_v1 }
 0xa19   : > { %8990 = vmatmul.mubr.msk.bf16.vlgmr.msra.gmra.mrb[56].mxu0 %vm713_vm1, %v3937_v59 }
 0xa1a   : > { %9002 = vmatpush3.bf16.msra.mxu0 %v9659_v8  ;;  %9009 = vmatprep.mubr.msk.bf16.mxu0 %vm9898_vm0, %v11889_v1 }
 0xa1b   : > { %9003 = vmatprep.subr.bf16.mxu0 %v11889_v1 }
 0xa1e   : > { %9004 = vmatpush3.bf16.msra.mxu0 %v9660_v39  ;;  %v10979_v39 = vld [vmem:[%s11869_s14 + $0x50] sm:$0xff] }
 0xa1f   : > { %9005 = vmatprep.subr.bf16.mxu0 %v11889_v1 }
 0xa22   : > { %9006 = vmatpush3.bf16.msra.mxu0 %v9661_v41  ;;  %v10988_v41 = vld [vmem:[%s11869_s14 + $0x58] sm:$0xff] }
 0xa23   : > { %9007 = vmatprep.subr.bf16.mxu0 %v11889_v1 }
 0xa26   : > { %9008 = vmatpush3.bf16.msra.mxu0 %v9662_v42  ;;  %v10993_v42 = vld [vmem:[%s11869_s14 + $0x60] sm:$0xff] }
 0xa27   : > { %9033 = vmatprep.subr.bf16.mxu0 %v11889_v1 }
 0xa29   : > { %9010 = vmatmul.mubr.msk.bf16.vlgmr.msra.gmra.mrb[60].mxu0 %vm713_vm1, %v3937_v59 }
 0xa2a   : > { %9041 = vmatprep.mubr.msk.bf16.mxu0 %vm9898_vm0, %v11889_v1  ;;  %9034 = vmatpush3.bf16.msra.mxu0 %v9663_v44  ;;  %v7923_v44 = vld [vmem:[%s11917_s26 + $0x3] ss:$0 sm:$0xff] }
 0xa2b   : > { %9035 = vmatprep.subr.bf16.mxu0 %v11889_v1 }
 0xa2e   : > { %9036 = vmatpush3.bf16.msra.mxu0 %v9664_v46 }
 0xa2f   : > { %9037 = vmatprep.subr.bf16.mxu0 %v11889_v1 }
 0xa32   : > { %9038 = vmatpush3.bf16.msra.mxu0 %v9665_v50 }
 0xa33   : > { %9039 = vmatprep.subr.bf16.mxu0 %v11889_v1 }
 0xa36   : > { %9040 = vmatpush3.bf16.msra.mxu0 %v9666_v53 }
 0xa37   : > { %9061 = vmatprep.subr.bf16.mxu0 %v11889_v1 }
 0xa39   : > { %9042 = vmatmul.mubr.msk.bf16.vlgmr.msra.gmra.mrb[64].mxu0 %vm713_vm1, %v10860_v55 }
 0xa3a   : > { %9062 = vmatpush3.bf16.msra.mxu0 %v9667_v56  ;;  %9069 = vmatprep.mubr.msk.bf16.mxu0 %vm9898_vm0, %v11889_v1  ;;  %v11005_v56 = vld [vmem:[%s11869_s14 + $0x68] sm:$0xff] }
 0xa3b   : > { %9063 = vmatprep.subr.bf16.mxu0 %v11889_v1 }
 0xa3e   : > { %9064 = vmatpush3.bf16.msra.mxu0 %v9669_v58  ;;  %v9668_v58 = vld [vmem:[%s11915_s21 + $0x80] sm:$0xff]  }
 0xa3f   : > { %9065 = vmatprep.subr.bf16.mxu0 %v11889_v1 }
 0xa42   : > { %9066 = vmatpush3.bf16.msra.mxu0 %v9671_v62 }
 0xa43   : > { %9067 = vmatprep.subr.bf16.mxu0 %v11889_v1 }
 0xa46   : > { %9068 = vmatpush3.bf16.msra.mxu0 %v9673_v63  ;;  %v11013_v63 = vld [vmem:[%s11869_s14 + $0x70] sm:$0xff] }
 0xa47   : > { %9081 = vmatprep.subr.bf16.mxu0 %v11889_v1 }
 0xa49   : > { %9070 = vmatmul.mubr.msk.bf16.vlgmr.msra.gmra.mrb[68].mxu0 %vm713_vm1, %v10860_v55 }
 0xa4a   : > { %9082 = vmatpush3.bf16.msra.mxu0 %v9675_v19  ;;  %9089 = vmatprep.mubr.msk.bf16.mxu0 %vm9898_vm0, %v11889_v1  ;;  %v11023_v19 = vld [vmem:[%s11869_s14 + $0x78] sm:$0xff] }
 0xa4b   : > { %9083 = vmatprep.subr.bf16.mxu0 %v11889_v1 }
 0xa4e   : > { %9084 = vmatpush3.bf16.msra.mxu0 %v9676_v20  ;;  %v9670_v20 = vld [vmem:[%s11915_s21 + $0x88] sm:$0xff]  }
 0xa4f   : > { %9085 = vmatprep.subr.bf16.mxu0 %v11889_v1 }
 0xa52   : > { %9086 = vmatpush3.bf16.msra.mxu0 %v9677_v21  ;;  %v9672_v21 = vld [vmem:[%s11915_s21 + $0x90] sm:$0xff]  }
 0xa53   : > { %9087 = vmatprep.subr.bf16.mxu0 %v11889_v1 }
 0xa56   : > { %9088 = vmatpush3.bf16.msra.mxu0 %v9678_v22  ;;  %v9674_v22 = vld [vmem:[%s11915_s21 + $0x98] sm:$0xff]  }
 0xa57   : > { %9113 = vmatprep.subr.bf16.mxu0 %v11889_v1 }
 0xa59   : > { %9090 = vmatmul.mubr.msk.bf16.vlgmr.msra.gmra.mrb[72].mxu0 %vm713_vm1, %v10860_v55 }
 0xa5a   : > { %9121 = vmatprep.mubr.msk.bf16.mxu0 %vm9898_vm0, %v11889_v1 }
 0xadc   : > { %v4014_v25 = vpop.f32.mrb[56].mxu1  ;;  %v4097_v26 = vpop.f32.mrb[52].mxu0 }
 0xadd   : > { %v4098_v27 = vadd.f32 %v7873_v23, %v4097_v26  ;;  %v8951_v37 = vpop.f32.mrb[57].mxu1  ;;  %v8963_v28 = vpop.f32.mrb[53].mxu0  ;;  %v4015_v47 = vadd.f32 %v7858_v24, %v4014_v25  ;;  %v7961_v23 = vld [vmem:[%s11917_s26 + $0x5] ss:$0 sm:$0xff] }
 0xade   : > { %v4017_v29 = vpop.f32.mrb[58].mxu1  ;;  %v4100_v40 = vpop.f32.mrb[54].mxu0  ;;  %v9679_v28 = vld [vmem:[%s11915_s21 + $0x120] sm:$0xff]  }
 0xadf   : > { %v8952_v30 = vpop.f32.mrb[59].mxu1  ;;  %v8964_v31 = vpop.f32.mrb[55].mxu0  ;;  %8965 = vmatprep.subr.mxu1 %v4098_v27  ;;  %9114 = vmatpush3.bf16.msra.mxu0 %v9679_v28 }
 0xae0   : > { %8966 = vmatpush3.msra.mxu1 %v4098_v27  ;;  %9115 = vmatprep.subr.bf16.mxu0 %v11889_v1 }
 0xae1   : > { %8973 = vmatprep.subr.mxu1 %v4015_v47  ;;  %8968 = vmatmul.mubr.msk.f32.vlgmr.msra.gmra.mrb[60].mxu1 %vm847_vm2, %v10915_v45 }
 0xae2   : > { %8974 = vmatpush3.msra.mxu1 %v4015_v47  ;;  %8970 = vmatprep.mubr.msk.f32.mxu1 %vm847_vm2, %v10920_v32  ;;  %v9680_v47 = vld [vmem:[%s11915_s21 + $0x128] sm:$0xff]  }
 0xae3   : > { %9116 = vmatpush3.bf16.msra.mxu0 %v9680_v47 }
 0xae4   : > { %9117 = vmatprep.subr.bf16.mxu0 %v11889_v1 }
 0xae5   : > { %8971 = vmatmul.mubr.msk.f32.gmra.mrb[62].mxu1 %vm847_vm2, %v10929_v33 }
 0xae6   : > { %8975 = vmatprep.mubr.msk.f32.mxu1 %vm847_vm2, %v10934_v34 }
 0xae9   : > { %8976 = vmatmul.mubr.msk.f32.vlgmr.msra.gmra.mrb[60].mxu1 %vm847_vm2, %v10943_v35 }
 0xaea   : > { %8978 = vmatprep.mubr.msk.f32.mxu1 %vm847_vm2, %v10948_v36 }
 0xaec   : > { %v4374_v52 = vpop.f32.mrb[56].mxu0 }
 0xaed   : > { %v4375_v59 = vadd.f32 %v7900_v38, %v4374_v52  ;;  %v8991_v60 = vpop.f32.mrb[57].mxu0  ;;  %8979 = vmatmul.mubr.msk.f32.gmra.mrb[62].mxu1 %vm847_vm2, %v10960_v48  ;;  %v9681_v38 = vld [vmem:[%s11915_s21 + $0x130] sm:$0xff]   ;;  %v9682_v52 = vld [vmem:[%s11915_s21 + $0x138] sm:$0xff]  }
 0xaee   : > { %v4377_v4 = vpop.f32.mrb[58].mxu0  ;;  %8995 = vmatprep.mubr.msk.f32.mxu1 %vm847_vm2, %v10965_v49  ;;  %9118 = vmatpush3.bf16.msra.mxu0 %v9681_v38 }
 0xaef   : > { %v8992_v8 = vpop.f32.mrb[59].mxu0  ;;  %8993 = vmatprep.subr.mxu1 %v4375_v59  ;;  %9119 = vmatprep.subr.bf16.mxu0 %v11889_v1 }
 0xaf0   : > { %8994 = vmatpush3.msra.mxu1 %v4375_v59  ;;  %v9683_v59 = vld [vmem:[%s11915_s21 + $0x140] sm:$0xff]   ;;  %v9684_v8 = vld [vmem:[%s11915_s21 + $0x148] sm:$0xff]  }
 0xaf1   : > { %8996 = vmatmul.mubr.msk.f32.vlgmr.msra.gmra.mrb[60].mxu1 %vm847_vm2, %v10974_v7 }
 0xaf2   : > { %8998 = vmatprep.mubr.msk.f32.mxu1 %vm847_vm2, %v10979_v39  ;;  %9120 = vmatpush3.bf16.msra.mxu0 %v9682_v52 }
 0xaf3   : > { %9141 = vmatprep.subr.bf16.mxu0 %v11889_v1 }
 0xaf5   : > { %8999 = vmatmul.mubr.msk.f32.gmra.mrb[62].mxu1 %vm847_vm2, %v10988_v41  ;;  %9122 = vmatmul.mubr.msk.bf16.vlgmr.msra.gmra.mrb[76].mxu0 %vm713_vm1, %v10860_v55 }
 0xaf6   : > { %9015 = vmatprep.mubr.msk.f32.mxu1 %vm847_vm2, %v10993_v42  ;;  %9142 = vmatpush3.bf16.msra.mxu0 %v9683_v59 }
 0xaf7   : > { %9149 = vmatprep.mubr.msk.bf16.mxu0 %vm9898_vm0, %v11889_v1  ;;  %9143 = vmatprep.subr.bf16.mxu0 %v11889_v1 }
 0xafa   : > { %9144 = vmatpush3.bf16.msra.mxu0 %v9684_v8  ;;  %v9691_v8 = vld [vmem:[%s11915_s21 + $0x118] sm:$0xff]  }
 0xafb   : > { %9145 = vmatprep.subr.bf16.mxu0 %v11889_v1 }
 0xafc   : > { %v4558_v46 = vpop.f32.mrb[60].mxu0 }
 0xafd   : > { %v4559_v50 = vadd.f32 %v7923_v44, %v4558_v46  ;;  %v9011_v53 = vpop.f32.mrb[61].mxu0 }
 0xafe   : > { %v4561_v54 = vpop.f32.mrb[62].mxu0  ;;  %v9688_v53 = vld [vmem:[%s11915_s21 + $0x158] sm:$0xff]  }
 0xaff   : > { %v9012_v62 = vpop.f32.mrb[63].mxu0  ;;  %9013 = vmatprep.subr.mxu1 %v4559_v50  ;;  %v9690_v54 = vld [vmem:[%s11915_s21 + $0x160] sm:$0xff]  }
 0xb00   : > { %9014 = vmatpush3.msra.mxu1 %v4559_v50  ;;  %v9686_v50 = vld [vmem:[%s11915_s21 + $0x150] sm:$0xff]  }
 0xb01   : > { %9016 = vmatmul.mubr.msk.f32.vlgmr.msra.gmra.mrb[60].mxu1 %vm847_vm2, %v11005_v56  ;;  %9021 = vmatprep.subr.bf16.mxu1 %v11889_v1  ;;  %v9693_v62 = vld [vmem:[%s11915_s21 + $0x170] sm:$0xff]  }
 0xb02   : > { %9022 = vmatpush3.bf16.msra.mxu1 %v9668_v58  ;;  %9018 = vmatprep.mubr.msk.f32.mxu1 %vm847_vm2, %v11013_v63  ;;  %v9692_v58 = vld [vmem:[%s11915_s21 + $0x168] sm:$0xff]  }
 0xb03   : > { %9023 = vmatprep.subr.bf16.mxu1 %v11889_v1  ;;  %9146 = vmatpush3.bf16.msra.mxu0 %v9686_v50 }
 0xb04   : > { %9147 = vmatprep.subr.bf16.mxu0 %v11889_v1 }
 0xb05   : > { %9019 = vmatmul.mubr.msk.f32.gmra.mrb[62].mxu1 %vm847_vm2, %v11023_v19 }
 0xb06   : > { %9024 = vmatpush3.bf16.msra.mxu1 %v9670_v20  ;;  %9029 = vmatprep.mubr.msk.bf16.mxu1 %vm9898_vm0, %v11889_v1  ;;  %v9694_v20 = vld [vmem:[%s11915_s21 + $0x178] sm:$0xff]  }
 0xb07   : > { %9025 = vmatprep.subr.bf16.mxu1 %v11889_v1  ;;  %9148 = vmatpush3.bf16.msra.mxu0 %v9688_v53 }
 0xb08   : > { %9161 = vmatprep.subr.bf16.mxu0 %v11889_v1 }
 0xb0a   : > { %9026 = vmatpush3.bf16.msra.mxu1 %v9672_v21  ;;  %9150 = vmatmul.mubr.msk.bf16.vlgmr.msra.gmra.mrb[80].mxu0 %vm713_vm1, %v10860_v55 }
 0xb0b   : > { %9027 = vmatprep.subr.bf16.mxu1 %v11889_v1  ;;  %9162 = vmatpush3.bf16.msra.mxu0 %v9690_v54 }
 0xb0c   : > { %v4824_v24 = vpop.f32.mrb[64].mxu0  ;;  %9169 = vmatprep.mubr.msk.bf16.mxu0 %vm9898_vm0, %v11889_v1  ;;  %9163 = vmatprep.subr.bf16.mxu0 %v11889_v1 }
 0xb0d   : > { %v4825_v25 = vadd.f32 %v7961_v23, %v4824_v24  ;;  %v9043_v26 = vpop.f32.mrb[65].mxu0 }
 0xb0e   : > { %9028 = vmatpush3.bf16.msra.mxu1 %v9674_v22  ;;  %v4827_v27 = vpop.f32.mrb[66].mxu0 }
 0xb0f   : > { %v9044_v37 = vpop.f32.mrb[67].mxu0  ;;  %9045 = vmatprep.subr.mxu1 %v4825_v25  ;;  %9164 = vmatpush3.bf16.msra.mxu0 %v9692_v58  ;;  %v7946_v27 = vld [vmem:[%s11917_s26 + $0x4] ss:$0 sm:$0xff] }
 0xb10   : > { %9165 = vmatprep.subr.bf16.mxu0 %v11889_v1  ;;  %v7984_v37 = vld [vmem:[%s11917_s26 + $0x6] ss:$0 sm:$0xff] }
 0xb11   : > { %9030 = vmatmul.mubr.msk.bf16.vlgmr.msra.gmra.mrb[64].mxu1 %vm713_vm1, %v10860_v55 }
 0xb12   : > { %9047 = vmatprep.mubr.msk.f32.mxu1 %vm847_vm2, %v10835_v43  ;;  %9046 = vmatpush3.msra.mxu1 %v4825_v25 }
 0xb13   : > { %9166 = vmatpush3.bf16.msra.mxu0 %v9693_v62 }
 0xb14   : > { %9167 = vmatprep.subr.bf16.mxu0 %v11889_v1 }
 0xb17   : > { %9168 = vmatpush3.bf16.msra.mxu0 %v9694_v20 }
 0xb19   : > { %9048 = vmatmul.mubr.msk.f32.vlgmr.msra.gmra.mrb[68].mxu1 %vm847_vm2, %v10915_v45 }
 0xb1a   : > { %9050 = vmatprep.mubr.msk.f32.mxu1 %vm847_vm2, %v10920_v32  ;;  %9170 = vmatmul.mubr.msk.bf16.vlgmr.msra.gmra.mrb[84].mxu0 %vm713_vm1, %v10860_v55 }
 0xb1c   : > { %v5073_v29 = vpop.f32.mrb[68].mxu0 }
 0xb1d   : > { %9051 = vmatmul.mubr.msk.f32.gmra.mrb[70].mxu1 %vm847_vm2, %v10929_v33  ;;  %v9071_v40 = vpop.f32.mrb[69].mxu0  ;;  %v5074_v38 = vadd.f32 %v7984_v37, %v5073_v29  ;;  %v9685_v29 = vld [vmem:[%s11915_s21 + $0x100] sm:$0xff]  }
 0xb1e   : > { %9055 = vmatprep.mubr.msk.f32.mxu1 %vm847_vm2, %v10934_v34  ;;  %v5076_v30 = vpop.f32.mrb[70].mxu0  ;;  %v8003_v40 = vld [vmem:[%s11917_s26 + $0x7] ss:$0 sm:$0xff] }
 0xb1f   : > { %v9072_v31 = vpop.f32.mrb[71].mxu0 }
 0xb2c   : > { %v5241_v60 = vpop.f32.mrb[72].mxu0 }
 0xb2d   : > { %v9091_v4 = vpop.f32.mrb[73].mxu0  ;;  %v5242_v59 = vadd.f32 %v8003_v40, %v5241_v60  ;;  %v9687_v60 = vld [vmem:[%s11915_s21 + $0x108] sm:$0xff]  }
 0xb2e   : > { %v5244_v44 = vpop.f32.mrb[74].mxu0  ;;  %v9689_v4 = vld [vmem:[%s11915_s21 + $0x110] sm:$0xff]  }
 0xb2f   : > { %v9092_v46 = vpop.f32.mrb[75].mxu0  ;;  %v8037_v44 = vld [vmem:[%s11917_s26 + $0x9] ss:$0 sm:$0xff] }
 0xbc8   : > { %v5488_v46 = vpop.f32.mrb[76].mxu0 }
 0xbc9   : > { %v5489_v50 = vadd.f32 %v8037_v44, %v5488_v46  ;;  %v9123_v53 = vpop.f32.mrb[77].mxu0 }
 0xbca   : > { %v5491_v54 = vpop.f32.mrb[78].mxu0 }
 0xbcb   : > { %v9124_v58 = vpop.f32.mrb[79].mxu0 }
 0xbd4   : > { %v11113_v21 = vpop.f32.mrb[60].mxu1 }
 0xbd5   : > { %v11115_v22 = vpop.f32.mrb[61].mxu1 }
 0xbd6   : > { %v6000_v23 = vpack.c.bf16 %v11113_v21, %v11115_v22 }
 0xbd8   : > { %v11119_v24 = vpop.f32.mrb[62].mxu1 }
 0xbd9   : > { %v11121_v25 = vpop.f32.mrb[63].mxu1 }
 0xbda   : > { %v6001_v26 = vpack.c.bf16 %v11119_v24, %v11121_v25 }
 0xbe4   : > { %v4745_v28 = vpop.f32.mrb[64].mxu1 }
 0xbe5   : > { %v4746_v47 = vadd.f32 %v7946_v27, %v4745_v28  ;;  %v9031_v30 = vpop.f32.mrb[65].mxu1 }
 0xbe6   : > { %v4748_v31 = vpop.f32.mrb[66].mxu1 }
 0xbe7   : > { %v9032_v52 = vpop.f32.mrb[67].mxu1  ;;  %9053 = vmatprep.subr.mxu1 %v4746_v47 }
 0xbe8   : > { %9054 = vmatpush3.msra.mxu1 %v4746_v47 }
 0xbe9   : > { %9056 = vmatmul.mubr.msk.f32.vlgmr.msra.gmra.mrb[68].mxu1 %vm847_vm2, %v10943_v35  ;;  %9073 = vmatprep.subr.mxu1 %v5074_v38 }
 0xbea   : > { %9074 = vmatpush3.msra.mxu1 %v5074_v38  ;;  %9058 = vmatprep.mubr.msk.f32.mxu1 %vm847_vm2, %v10948_v36 }
 0xbeb   : > { %9093 = vmatprep.subr.mxu1 %v5242_v59 }
 0xbed   : > { %9059 = vmatmul.mubr.msk.f32.gmra.mrb[70].mxu1 %vm847_vm2, %v10960_v48 }
 0xbee   : > { %9075 = vmatprep.mubr.msk.f32.mxu1 %vm847_vm2, %v10965_v49 }
 0xbf1   : > { %9076 = vmatmul.mubr.msk.f32.vlgmr.msra.gmra.mrb[68].mxu1 %vm847_vm2, %v10974_v7 }
 0xbf2   : > { %9078 = vmatprep.mubr.msk.f32.mxu1 %vm847_vm2, %v10979_v39  ;;  %9094 = vmatpush3.msra.mxu1 %v5242_v59  ;;  %v8079_v59 = vld [vmem:[%s11917_s26 + $0xb] ss:$0 sm:$0xff] }
 0xbf3   : > { %9101 = vmatprep.subr.bf16.mxu1 %v11889_v1 }
 0xbf5   : > { %9079 = vmatmul.mubr.msk.f32.gmra.mrb[70].mxu1 %vm847_vm2, %v10988_v41 }
 0xbf6   : > { %9095 = vmatprep.mubr.msk.f32.mxu1 %vm847_vm2, %v10993_v42 }
 0xbf9   : > { %9096 = vmatmul.mubr.msk.f32.vlgmr.msra.gmra.mrb[68].mxu1 %vm847_vm2, %v11005_v56 }
 0xbfa   : > { %9102 = vmatpush3.bf16.msra.mxu1 %v9685_v29  ;;  %9098 = vmatprep.mubr.msk.f32.mxu1 %vm847_vm2, %v11013_v63 }
 0xbfb   : > { %9103 = vmatprep.subr.bf16.mxu1 %v11889_v1 }
 0xbfd   : > { %9099 = vmatmul.mubr.msk.f32.gmra.mrb[70].mxu1 %vm847_vm2, %v11023_v19 }
 0xbfe   : > { %9104 = vmatpush3.bf16.msra.mxu1 %v9687_v60  ;;  %9109 = vmatprep.mubr.msk.bf16.mxu1 %vm9898_vm0, %v11889_v1 }
 0xbff   : > { %9105 = vmatprep.subr.bf16.mxu1 %v11889_v1 }
 0xc02   : > { %9106 = vmatpush3.bf16.msra.mxu1 %v9689_v4 }
 0xc03   : > { %9107 = vmatprep.subr.bf16.mxu1 %v11889_v1 }
 0xc06   : > { %9108 = vmatpush3.bf16.msra.mxu1 %v9691_v8 }
 0xc07   : > { %9125 = vmatprep.subr.mxu1 %v5489_v50 }
 0xc09   : > { %9110 = vmatmul.mubr.msk.bf16.vlgmr.msra.gmra.mrb[72].mxu1 %vm713_vm1, %v10860_v55 }
 0xc0a   : > { %9127 = vmatprep.mubr.msk.f32.mxu1 %vm847_vm2, %v10835_v43  ;;  %9126 = vmatpush3.msra.mxu1 %v5489_v50  ;;  %v5737_v43 = vpop.f32.mrb[80].mxu0 }
 0xc0b   : > { %v9151_v55 = vpop.f32.mrb[81].mxu0 }
 0xc0c   : > { %v5740_v62 = vpop.f32.mrb[82].mxu0  ;;  %v9750_v55 = vld [vmem:[%s11872_s17] sm:$0xff] }
 0xc0d   : > { %v9152_v20 = vpop.f32.mrb[83].mxu0 }
 0xc0e   : > { %v5905_v27 = vpop.f32.mrb[84].mxu0 }
 0xc0f   : > { %v9171_v37 = vpop.f32.mrb[85].mxu0  ;;  %v5906_v46 = vadd.f32 %v8079_v59, %v5905_v27  ;;  %v9751_v27 = vld [vmem:[%s11872_s17 + $0x8] sm:$0xff] }
 0xc10   : > { %v5908_v28 = vpop.f32.mrb[86].mxu0 }
 0xc11   : > { %9128 = vmatmul.mubr.msk.f32.vlgmr.msra.gmra.mrb[76].mxu1 %vm847_vm2, %v10915_v45  ;;  %v9172_v40 = vpop.f32.mrb[87].mxu0  ;;  %v9752_v28 = vld [vmem:[%s11872_s17 + $0x10] sm:$0xff] }
 0xc12   : > { %9130 = vmatprep.mubr.msk.f32.mxu1 %vm847_vm2, %v10920_v32 }
 0xc15   : > { %9131 = vmatmul.mubr.msk.f32.gmra.mrb[78].mxu1 %vm847_vm2, %v10929_v33  ;;  %v8022_v33 = vld [vmem:[%s11917_s26 + $0x8] ss:$0 sm:$0xff] }
 0xc16   : > { %9135 = vmatprep.mubr.msk.f32.mxu1 %vm847_vm2, %v10934_v34  ;;  %v8060_v34 = vld [vmem:[%s11917_s26 + $0xa] ss:$0 sm:$0xff] }
 0xc17   : > { %v5738_v8 = vadd.f32 %v8060_v34, %v5737_v43 }
 0xccc   : > { %v9097_v47 = vpop.f32.mrb[68].mxu1 }
 0xccd   : > { %v5313_v30 = vpop.f32.mrb[69].mxu1 }
 0xcce   : > { %v6002_v45 = vpack.c.bf16 %v9097_v47, %v5313_v30  ;;  %v9753_v30 = vld [vmem:[%s11872_s17 + $0x18] sm:$0xff] }
 0xcd0   : > { %v9100_v31 = vpop.f32.mrb[70].mxu1 }
 0xcd1   : > { %v5323_v38 = vpop.f32.mrb[71].mxu1 }
 0xcd2   : > { %v6003_v32 = vpack.c.bf16 %v9100_v31, %v5323_v38 }
 0xcdc   : > { %v5409_v52 = vpop.f32.mrb[72].mxu1 }
 0xcdd   : > { %v5410_v29 = vadd.f32 %v8022_v33, %v5409_v52  ;;  %v9111_v60 = vpop.f32.mrb[73].mxu1 }
 0xcde   : > { %v5412_v4 = vpop.f32.mrb[74].mxu1 }
 0xcdf   : > { %v9112_v44 = vpop.f32.mrb[75].mxu1  ;;  %9133 = vmatprep.subr.mxu1 %v5410_v29 }
 0xce0   : > { %9134 = vmatpush3.msra.mxu1 %v5410_v29 }
 0xce1   : > { %9136 = vmatmul.mubr.msk.f32.vlgmr.msra.gmra.mrb[76].mxu1 %vm847_vm2, %v10943_v35  ;;  %9153 = vmatprep.subr.mxu1 %v5738_v8  ;;  %v6011_v35 = vsel %vm2764_vm3, %v6002_v45, 0 }
 0xce2   : > { %9154 = vmatpush3.msra.mxu1 %v5738_v8  ;;  %9138 = vmatprep.mubr.msk.f32.mxu1 %vm847_vm2, %v10948_v36  ;;  %v11224_v36 = vld [vmem:[%s11871_s16 + $0x40] sm:$0xff] }
 0xce3   : > { %9173 = vmatprep.subr.mxu1 %v5906_v46 }
 0xce5   : > { %9139 = vmatmul.mubr.msk.f32.gmra.mrb[78].mxu1 %vm847_vm2, %v10960_v48  ;;  %v11229_v48 = vld [vmem:[%s11871_s16 + $0x48] sm:$0xff] }
 0xce6   : > { %9155 = vmatprep.mubr.msk.f32.mxu1 %vm847_vm2, %v10965_v49  ;;  %v9425_v49 = vpack.c.bf16 %v11229_v48, %v11224_v36 }
 0xce9   : > { %9156 = vmatmul.mubr.msk.f32.vlgmr.msra.gmra.mrb[76].mxu1 %vm847_vm2, %v10974_v7  ;;  %v6014_v7 = vsel %vm2764_vm3, %v6003_v32, 0 }
 0xcea   : > { %9174 = vmatpush3.msra.mxu1 %v5906_v46  ;;  %9158 = vmatprep.mubr.msk.f32.mxu1 %vm847_vm2, %v10979_v39  ;;  %v11247_v39 = vld [vmem:[%s11871_s16 + $0x50] sm:$0xff] }
 0xceb   : > { %9539 = vmatprep.subr.msk.bf16.mxu1 %vm2764_vm3, %v6002_v45 }
 0xced   : > { %9159 = vmatmul.mubr.msk.f32.gmra.mrb[78].mxu1 %vm847_vm2, %v10988_v41  ;;  %v11252_v41 = vld [vmem:[%s11871_s16 + $0x58] sm:$0xff] }
 0xcee   : > { %9175 = vmatprep.mubr.msk.f32.mxu1 %vm847_vm2, %v10993_v42  ;;  %v9429_v42 = vpack.c.bf16 %v11252_v41, %v11247_v39 }
 0xcf1   : > { %9176 = vmatmul.mubr.msk.f32.vlgmr.msra.gmra.mrb[76].mxu1 %vm847_vm2, %v11005_v56 }
 0xcf2   : > { %9182 = vmatpush3.bf16.xpose.msra.mxu1 %v6011_v35  ;;  %9178 = vmatprep.mubr.msk.f32.mxu1 %vm847_vm2, %v11013_v63 }
 0xcf3   : > { %9540 = vmatprep.subr.msk.bf16.mxu1 %vm2764_vm3, %v6003_v32 }
 0xcf5   : > { %9179 = vmatmul.mubr.msk.f32.gmra.mrb[78].mxu1 %vm847_vm2, %v11023_v19 }
 0xcf6   : > { %9185 = vmatprep.mubr.msk.bf16.mxu1 %vm2764_vm3, %v6000_v23 }
 0xcfa   : > { %9184 = vmatpush3.bf16.xpose.msra.mxu1 %v6014_v7 }
 0xcfb   : > { %9426 = vmatprep.subr.bf16.mxu1 %v9425_v49 }
 0xd01   : > { %9186 = vmatmul.mubr.msk.bf16.vlgmr.msra.gmra.mrb[80].mxu1 %vm2764_vm3, %v6001_v26 }
 0xd02   : > { %9428 = vmatpush3.bf16.msra.mxu1 %v9425_v49 }
 0xd03   : > { %9430 = vmatprep.subr.bf16.mxu1 %v9429_v42 }
 0xd06   : > { %9432 = vmatpush3.bf16.msra.mxu1 %v9429_v42 }
 0xdc4   : > { %v9177_v56 = vpop.f32.mrb[76].mxu1 }
 0xdc5   : > { %v5977_v63 = vpop.f32.mrb[77].mxu1 }
 0xdc6   : > { %v11256_v19 = vpack.c.bf16 %v9177_v56, %v5977_v63 }
 0xdc8   : > { %v9180_v21 = vpop.f32.mrb[78].mxu1  ;;  %9245 = vmatprep.subr.bf16.mxu1 %v11256_v19 }
 0xdc9   : > { %v5987_v22 = vpop.f32.mrb[79].mxu1 }
 0xdca   : > { %v11259_v23 = vpack.c.bf16 %v9180_v21, %v5987_v22 }
 0xdd4   : > { %v9187_v24 = vpop.f32.mrb[80].mxu1 }
 0xdd5   : > { %v6050_v25 = vpop.f32.mrb[81].mxu1  ;;  %v6067_v26 = vmul.f32 0.5, %v9187_v24 }
 0xdd6   : > { %v6065_v50 = vmul.f32 0.5, %v6050_v25  ;;  %v9188_v53 = vpop.f32.mrb[82].mxu1  ;;  %v11284_v25 = vld [vmem:[%s11871_s16] sm:$0xff] }
 0xdd7   : > { %v6053_v54 = vpop.f32.mrb[83].mxu1  ;;  %v6068_v58 = vmul.f32 0.5, %v9188_v53  ;;  %v6071_v40 = vadd.f32 %v9752_v28, %v6067_v26  ;;  %v11289_v26 = vld [vmem:[%s11871_s16 + $0x8] sm:$0xff]  ;;  %v11296_v53 = vld [vmem:[%s11871_s16 + $0x10] sm:$0xff] }
 0xdd8   : > { %v6066_v43 = vmul.f32 0.5, %v6053_v54  ;;  %v6069_v62 = vadd.f32 %v9750_v55, %v6065_v50  ;;  %v9409_v50 = vpack.c.bf16 %v11289_v26, %v11284_v25  ;;  %v11301_v54 = vld [vmem:[%s11871_s16 + $0x18] sm:$0xff]  ;;  %v11313_v55 = vld [vmem:[%s11871_s16 + $0x28] sm:$0xff] }
 0xdd9   : > { %v6072_v45 = vadd.f32 %v9753_v30, %v6068_v58  ;;  %v6079_v31 = vsel %vm2834_vm4, %v6071_v40, -inf  ;;  %v9413_v58 = vpack.c.bf16 %v11301_v54, %v11296_v53  ;;  %v11320_v30 = vld [vmem:[%s11871_s16 + $0x30] sm:$0xff] }
 0xdda   : > { %v6073_v20 = vsel %vm2834_vm4, %v6069_v62, -inf  ;;  %v6070_v37 = vadd.f32 %v9751_v27, %v6066_v43  ;;  %9410 = vmatprep.subr.bf16.mxu0 %v9409_v50  ;;  %v11308_v43 = vld [vmem:[%s11871_s16 + $0x20] sm:$0xff] }
 0xddb   : > { %6074 = vmax.xlane.f32.xlu0 %v6073_v20  ;;  %v6082_v38 = vsel %vm2834_vm4, %v6072_v45, -inf  ;;  %9412 = vmatpush3.bf16.msra.mxu0 %v9409_v50 }
 0xddc   : > { %v6076_v47 = vsel %vm2834_vm4, %v6070_v37, -inf  ;;  %9414 = vmatprep.subr.bf16.mxu0 %v9413_v58 }
 0xddd   : > { %6077 = vmax.xlane.f32.xlu1 %v6076_v47 }
 0xddf   : > { %6080 = vmax.xlane.f32.xlu0 %v6079_v31  ;;  %9416 = vmatpush3.bf16.msra.mxu0 %v9413_v58 }
 0xde1   : > { %6083 = vmax.xlane.f32.xlu1 %v6082_v38 }
 0xe68   : > { %v6075_v32 = vpop.xlane.xlu0 %6074 }
 0xe69   : > { %v6085_v33 = vsub.f32 %v6069_v62, %v6075_v32  ;;  %v9417_v62 = vpack.c.bf16 %v11313_v55, %v11308_v43 }
 0xe6a   : > { %v6078_v34 = vpop.xlane.xlu1 %6077 }
 0xe6b   : > { %v6089_v52 = vmul.f32 1.442695, %v6085_v33  ;;  %v6086_v59 = vsub.f32 %v6070_v37, %v6078_v34  ;;  %9418 = vmatprep.subr.bf16.mxu0 %v9417_v62 }
 0xe6c   : > { %v6081_v29 = vpop.xlane.xlu0 %6080 }
 0xe6d   : > { %9729 = vpow2.f32 %v6089_v52  ;;  %v6091_v60 = vmul.f32 1.442695, %v6086_v59  ;;  %v6087_v4 = vsub.f32 %v6071_v40, %v6081_v29  ;;  %v11336_v52 = vld [vmem:[%s11871_s16 + $0x60] sm:$0xff]  ;;  %v11341_v59 = vld [vmem:[%s11871_s16 + $0x68] sm:$0xff] }
 0xe6e   : > { %v6084_v8 = vpop.xlane.xlu1 %6083 }
 0xe6f   : > { %9731 = vpow2.f32 %v6091_v60  ;;  %v6093_v44 = vmul.f32 1.442695, %v6087_v4  ;;  %v6088_v46 = vsub.f32 %v6072_v45, %v6084_v8  ;;  %v11325_v45 = vld [vmem:[%s11871_s16 + $0x38] sm:$0xff]  ;;  %v9433_v4 = vpack.c.bf16 %v11341_v59, %v11336_v52  ;;  %v11352_v8 = vld [vmem:[%s11871_s16 + $0x70] sm:$0xff] }
 0xe70   : > { %v9421_v33 = vpack.c.bf16 %v11325_v45, %v11320_v30 }
 0xe71   : > { %9733 = vpow2.f32 %v6093_v44  ;;  %v6095_v35 = vmul.f32 1.442695, %v6088_v46 }
 0xe73   : > { %9735 = vpow2.f32 %v6095_v35 }
 0xe77   : > { %v9730_v49 = vpop.eup %9729 }
 0xe78   : > { %v6097_v7 = vsel %vm2834_vm4, %v9730_v49, 0.0 }
 0xe79   : > { %v9732_v42 = vpop.eup %9731  ;;  %6098 = vadd.xlane.f32.xlu0 %v6097_v7 }
 0xe7a   : > { %v6100_v56 = vsel %vm2834_vm4, %v9732_v42, 0.0 }
 0xe7b   : > { %v9734_v63 = vpop.eup %9733  ;;  %6101 = vadd.xlane.f32.xlu1 %v6100_v56 }
 0xe7c   : > { %v6103_v21 = vsel %vm2834_vm4, %v9734_v63, 0.0 }
 0xe7d   : > { %v9736_v22 = vpop.eup %9735  ;;  %6104 = vadd.xlane.f32.xlu0 %v6103_v21 }
 0xe7e   : > { %v6106_v24 = vsel %vm2834_vm4, %v9736_v22, 0.0 }
 0xe7f   : > { %6107 = vadd.xlane.f32.xlu1 %v6106_v24 }
 0xf06   : > { %v6099_v20 = vpop.xlane.xlu0 %6098 }
 0xf07   : > { %9737 = vrcp.f32 %v6099_v20 }
 0xf08   : > { %v6102_v27 = vpop.xlane.xlu1 %6101 }
 0xf09   : > { %9739 = vrcp.f32 %v6102_v27 }
 0xf0a   : > { %v6105_v37 = vpop.xlane.xlu0 %6104 }
 0xf0b   : > { %9741 = vrcp.f32 %v6105_v37 }
 0xf0c   : > { %v6108_v28 = vpop.xlane.xlu1 %6107 }
 0xf0d   : > { %9743 = vrcp.f32 %v6108_v28 }
 0xf11   : > { %v9738_v40 = vpop.eup %9737 }
 0xf12   : > { %v6110_v47 = vmul.f32 %v9738_v40, %v9730_v49 }
 0xf13   : > { %v9740_v31 = vpop.eup %9739 }
 0xf14   : > { %v6112_v38 = vmul.f32 %v9740_v31, %v9732_v42  ;;  %9197 = vmatprep.mubr.msk.f32.mxu0 %vm2834_vm4, %v6110_v47  ;;  %9225 = vmatprep.mubr.msk.f32.mxu1 %vm2834_vm4, %v6110_v47 }
 0xf15   : > { %v9742_v32 = vpop.eup %9741 }
 0xf16   : > { %v6114_v34 = vmul.f32 %v9742_v32, %v9734_v63  ;;  %9198 = vmatmul.mubr.msk.f32.vlgmr.msra.gmra.mrb[88].mxu0 %vm2834_vm4, %v6112_v38  ;;  %9226 = vmatmul.mubr.msk.f32.vlgmr.msra.gmra.mrb[84].mxu1 %vm2834_vm4, %v6112_v38  ;;  %v6565_v44 = vpack.c.bf16 %v6112_v38, %v6110_v47  ;;  %v8122_v32 = vld [vmem:[%s11870_s15 + $0x8] sm:$0xff] }
 0xf17   : > { %v9744_v29 = vpop.eup %9743  ;;  %9246 = vmatpush3.bf16.msra.mxu1 %v11256_v19  ;;  %9420 = vmatpush3.bf16.msra.mxu0 %v9417_v62  ;;  %v11357_v19 = vld [vmem:[%s11871_s16 + $0x78] sm:$0xff] }
 0xf18   : > { %v6116_v60 = vmul.f32 %v9744_v29, %v9736_v22  ;;  %9247 = vmatprep.subr.bf16.mxu1 %v11259_v23  ;;  %9200 = vmatprep.mubr.msk.f32.mxu0 %vm2834_vm4, %v6114_v34  ;;  %v9437_v35 = vpack.c.bf16 %v11357_v19, %v11352_v8 }
 0xf19   : > { %9228 = vmatprep.mubr.msk.f32.mxu1 %vm2834_vm4, %v6114_v34  ;;  %9422 = vmatprep.subr.bf16.mxu0 %v9421_v33 }
 0xf1a   : > { %9201 = vmatmul.mubr.msk.f32.gmra.mrb[90].mxu0 %vm2834_vm4, %v6116_v60  ;;  %9229 = vmatmul.mubr.msk.f32.gmra.mrb[86].mxu1 %vm2834_vm4, %v6116_v60  ;;  %v6566_v46 = vpack.c.bf16 %v6116_v60, %v6114_v34 }
 0xf1b   : > { %9248 = vmatpush3.bf16.msra.mxu1 %v11259_v23  ;;  %9424 = vmatpush3.bf16.msra.mxu0 %v9421_v33  ;;  %v6624_v33 = vld [vmem:[%s11870_s15] sm:$0xff] }
 0xf1c   : > { %9211 = vmatprep.mubr.msk.f32.mxu0 %vm2834_vm4, %v6110_v47  ;;  %9249 = vmatprep.mubr.msk.bf16.mxu1 %vm2834_vm4, %v6565_v44 }
 0xf1d   : > { %9434 = vmatprep.subr.bf16.mxu0 %v9433_v4  ;;  %9447 = vmatprep.subr.bf16.mxu1 %v9899_v57 }
 0xf1e   : > { %9212 = vmatmul.mubr.msk.f32.vlgmr.msra.gmra.mrb[92].mxu0 %vm2834_vm4, %v6112_v38  ;;  %9250 = vmatmul.mubr.msk.bf16.vlgmr.msra.gmra.mrb[88].mxu1 %vm2834_vm4, %v6566_v46 }
 0xf1f   : > { %9214 = vmatprep.mubr.msk.f32.mxu0 %vm2834_vm4, %v6114_v34  ;;  %9436 = vmatpush3.bf16.msra.mxu0 %v9433_v4  ;;  %v9696_v4 = vld [vmem:[%s11918_s27] sm:$0xff]  }
 0xf20   : > { %9438 = vmatprep.subr.bf16.mxu0 %v9437_v35  ;;  %9272 = vmatprep.mubr.msk.f32.mxu1 %vm9898_vm0, %v11889_v1 }
 0xf22   : > { %9215 = vmatmul.mubr.msk.f32.gmra.mrb[94].mxu0 %vm2834_vm4, %v6116_v60 }
 0xf23   : > { %9440 = vmatpush3.bf16.msra.mxu0 %v9437_v35  ;;  %9239 = vmatprep.mubr.msk.f32.mxu0 %vm2834_vm4, %v6110_v47 }
 0xf24   : > { %9441 = vmatprep.subr.bf16.mxu0 %v9899_v57 }
 0xf26   : > { %9240 = vmatmul.mubr.msk.f32.vlgmr.msra.gmra.mrb[96].mxu0 %vm2834_vm4, %v6112_v38 }
 0xf27   : > { %9242 = vmatprep.mubr.msk.f32.mxu0 %vm2834_vm4, %v6114_v34  ;;  %v9695_v34 = vld [vmem:[%s11918_s27 + $0x8] sm:$0xff]  }
 0xf2a   : > { %9243 = vmatmul.mubr.msk.f32.gmra.mrb[98].mxu0 %vm2834_vm4, %v6116_v60 }
 0xf2b   : > { %9261 = vmatprep.mubr.msk.f32.mxu0 %vm9898_vm0, %v11889_v1 }
 0xfe9   : > { %v11380_v23 = vpop.f32.mrb[88].mxu0  ;;  %v11382_v49 = vpop.f32.mrb[84].mxu1 }
 0xfea   : > { %v11384_v7 = vpop.f32.mrb[89].mxu0  ;;  %v11386_v42 = vpop.f32.mrb[85].mxu1 }
 0xfed   : > { %v11388_v56 = vpop.f32.mrb[90].mxu0  ;;  %v11390_v63 = vpop.f32.mrb[86].mxu1 }
 0xfee   : > { %v11392_v21 = vpop.f32.mrb[91].mxu0  ;;  %v11394_v22 = vpop.f32.mrb[87].mxu1 }
 0xff1   : > { %v11396_v24 = vpop.f32.mrb[92].mxu0  ;;  %v9251_v50 = vpop.f32.mrb[88].mxu1 }
 0xff2   : > { %v11398_v58 = vpop.f32.mrb[93].mxu0  ;;  %v6609_v62 = vpop.f32.mrb[89].mxu1 }
 0xff3   : > { %v9252_v20 = vpop.f32.mrb[90].mxu1 }
 0xff4   : > { %v9445_v27 = vpack.c.bf16 %v9252_v20, %v9251_v50  ;;  %v6612_v37 = vpop.f32.mrb[91].mxu1 }
 0xff5   : > { %v9442_v28 = vpack.c.bf16 %v6612_v37, %v6609_v62  ;;  %v11400_v40 = vpop.f32.mrb[94].mxu0  ;;  %v8130_v37 = vld [vmem:[%s11870_s15 + $0x10] sm:$0xff] }
 0xff6   : > { %v11402_v47 = vpop.f32.mrb[95].mxu0 }
 0xff7   : > { %9443 = vmatpush3.bf16.msra.mxu0 %v9442_v28  ;;  %9449 = vmatpush3.bf16.msra.mxu1 %v9442_v28 }
 0xff8   : > { %9444 = vmatprep.subr.bf16.mxu0 %v9899_v57  ;;  %9450 = vmatprep.subr.bf16.mxu1 %v9899_v57 }
 0xff9   : > { %v11406_v31 = vpop.f32.mrb[96].mxu0 }
 0xffa   : > { %v11408_v38 = vpop.f32.mrb[97].mxu0 }
 0xffb   : > { %9446 = vmatpush3.bf16.msra.mxu0 %v9445_v27  ;;  %9452 = vmatpush3.bf16.msra.mxu1 %v9445_v27 }
 0xffc   : > { %9275 = vmatprep.subr.bf16.mxu0 %v11889_v1  ;;  %9281 = vmatprep.subr.bf16.mxu1 %v11889_v1 }
 0xffd   : > { %v11421_v29 = vpop.f32.mrb[98].mxu0 }
 0xffe   : > { %11924 = vst [vmem:[#allocation15_spill] sm:$0xff] %v11421_v29  ;;  %v11423_v60 = vpop.f32.mrb[99].mxu0  ;;  %9273 = vmatmul.mubr.msk.f32.vlgmr.msra.gmra.mrb[92].mxu1 %vm2834_vm4, %v8122_v32  ;;  %9262 = vmatmul.mubr.msk.f32.vlgmr.msra.gmra.mrb[100].mxu0 %vm2834_vm4, %v6624_v33  ;;  %v8136_v32 = vld [vmem:[%s11870_s15 + $0x18] sm:$0xff] }
 0xfff   : > { %9276 = vmatpush3.bf16.msra.mxu0 %v9695_v34  ;;  %9277 = vmatprep.mubr.msk.bf16.mxu0 %vm9898_vm0, %v11889_v1 }
0x1000   : > { %9453 = vmatprep.subr.bf16.mxu0 %v9899_v57  ;;  %9283 = vmatprep.mubr.msk.bf16.mxu1 %vm9898_vm0, %v11889_v1 }
0x1001   : > { %9282 = vmatpush3.bf16.msra.mxu1 %v9696_v4 }
0x1002   : > { %9298 = vmatprep.subr.bf16.mxu1 %v11889_v1 }
0x10d1   : > { %v6771_v44 = vpop.f32.mrb[92].mxu1  ;;  %v6694_v46 = vpop.f32.mrb[100].mxu0 }
0x10d2   : > { %v6775_v35 = vpack.c.bf16 %v6771_v44, %v6771_v44  ;;  %v6698_v50 = vpack.c.bf16 %v6694_v46, %v6694_v46  ;;  %v9274_v62 = vpop.f32.mrb[93].mxu1  ;;  %v9263_v20 = vpop.f32.mrb[101].mxu0 }
0x10d3   : > { %v9698_v20 = vld [vmem:[%s11918_s27 + $0x18] sm:$0xff]  }
0x10d4   : > { %9278 = vmatmul.mubr.msk.bf16.vlgmr.msra.gmra.mrb[104].mxu0 %vm2764_vm3, %v6775_v35  ;;  %9284 = vmatmul.mubr.msk.bf16.vlgmr.msra.gmra.mrb[96].mxu1 %vm2764_vm3, %v6698_v50 }
0x10d5   : > { %9455 = vmatpush3.bf16.msra.mxu0 %v9442_v28  ;;  %9295 = vmatprep.mubr.msk.f32.mxu0 %vm9898_vm0, %v11889_v1 }
0x10d6   : > { %9456 = vmatprep.subr.bf16.mxu0 %v9899_v57  ;;  %9300 = vmatprep.mubr.msk.bf16.mxu1 %vm9898_vm0, %v11889_v1 }
0x10d9   : > { %9458 = vmatpush3.bf16.msra.mxu0 %v9445_v27 }
0x10da   : > { %9459 = vmatprep.subr.bf16.mxu0 %v9899_v57 }
0x10dc   : > { %9296 = vmatmul.mubr.msk.f32.vlgmr.msra.gmra.mrb[102].mxu0 %vm2834_vm4, %v8130_v37 }
0x10dd   : > { %9461 = vmatpush3.bf16.msra.mxu0 %v9442_v28  ;;  %9312 = vmatprep.mubr.msk.f32.mxu0 %vm9898_vm0, %v11889_v1  ;;  %v9697_v28 = vld [vmem:[%s11918_s27 + $0x10] sm:$0xff]  }
0x10de   : > { %9462 = vmatprep.subr.bf16.mxu0 %v9899_v57  ;;  %9299 = vmatpush3.bf16.msra.mxu1 %v9697_v28 }
0x10df   : > { %9315 = vmatprep.subr.bf16.mxu1 %v11889_v1 }
0x10e1   : > { %9464 = vmatpush3.bf16.msra.mxu0 %v9445_v27 }
0x10e2   : > { %9321 = vmatprep.subr.bf16.mxu0 %v11889_v1 }
0x10e4   : > { %9313 = vmatmul.mubr.msk.f32.vlgmr.msra.gmra.mrb[108].mxu0 %vm2834_vm4, %v8136_v32 }
0x10e5   : > { %9329 = vmatprep.mubr.msk.bf16.mxu0 %vm9898_vm0, %v11889_v1 }
0x11a7   : > { %v6821_v57 = vpop.f32.mrb[104].mxu0  ;;  %v6870_v27 = vpop.f32.mrb[96].mxu1 }
0x11a8   : > { %v9279_v33 = vpop.f32.mrb[105].mxu0  ;;  %v6871_v34 = vadd.f32 %v6870_v27, %v6821_v57  ;;  %v9285_v4 = vpop.f32.mrb[97].mxu1 }
0x11a9   : > { %v6824_v44 = vpop.f32.mrb[106].mxu0  ;;  %v6873_v46 = vpop.f32.mrb[98].mxu1 }
0x11aa   : > { %v9280_v35 = vpop.f32.mrb[107].mxu0  ;;  %v9286_v50 = vpop.f32.mrb[99].mxu1 }
0x11af   : > { %v6946_v62 = vpop.f32.mrb[102].mxu0 }
0x11b0   : > { %v6950_v37 = vpack.c.bf16 %v6946_v62, %v6946_v62  ;;  %v9297_v32 = vpop.f32.mrb[103].mxu0 }
0x11b1   : > { %v9754_v32 = vld [vmem:[%s11919_s5] ss:$0 sm:$0xff]  ;;  %s9773_s5 = scalar_lea.vmem %s11715_s3, 512 }
0x11b2   : > { %9301 = vmatmul.mubr.msk.bf16.vlgmr.msra.gmra.mrb[100].mxu1 %vm2764_vm3, %v6950_v37  ;;  %p9774_p11 = scmp.ne.s32.totalorder %s11715_s3, %s9773_s5 }
0x11b3   : > { %9316 = vmatpush3.bf16.msra.mxu1 %v9698_v20  ;;  %9317 = vmatprep.mubr.msk.bf16.mxu1 %vm9898_vm0, %v11889_v1 }
0x11b4   : > { %9333 = vmatprep.subr.bf16.mxu1 %v11889_v1  ;;  %p9775_p12 = pnand %p9774_p11, %p10050_p5 }
0x11b6   : > { %p9776_p13 = pneg %p9775_p12 }
0x11b7   : > { %v7073_v28 = vpop.f32.mrb[108].mxu0 }
0x11b8   : > { %v7077_v57 = vpack.c.bf16 %v7073_v28, %v7073_v28  ;;  %v9314_v27 = vpop.f32.mrb[109].mxu0 }
0x11ba   : > { %9318 = vmatmul.mubr.msk.bf16.vlgmr.msra.gmra.mrb[104].mxu1 %vm2764_vm3, %v7077_v57 }
0x11bb   : > { %9349 = vmatprep.mubr.msk.bf16.mxu1 %vm9898_vm0, %v11889_v1 }
0x1285   : > { %v6996_v33 = vpop.f32.mrb[100].mxu1 }
0x1286   : > { %v7002_v4 = vadd.f32 %v6996_v33, %v6871_v34  ;;  %v9302_v44 = vpop.f32.mrb[101].mxu1 }
0x1287   : > { %v6999_v46 = vpop.f32.mrb[102].mxu1 }
0x1288   : > { %v9303_v35 = vpop.f32.mrb[103].mxu1  ;;  %v9755_v46 = vld [vmem:[%s11871_s16 + $0x8] sm:$0xff] }
0x1289   : > { %v2886_v35 = vsel %vm847_vm2, %v9755_v46, 0.0 }
0x128d   : > { %v7123_v50 = vpop.f32.mrb[104].mxu1 }
0x128e   : > { %v7129_v62 = vadd.f32 %v7123_v50, %v7002_v4  ;;  %v9319_v20 = vpop.f32.mrb[105].mxu1 }
0x128f   : > { %v7126_v37 = vpop.f32.mrb[106].mxu1 }
0x1290   : > { %v7130_v28 = vadd.f32 %v9754_v32, %v7129_v62  ;;  %v9320_v27 = vpop.f32.mrb[107].mxu1  ;;  %v9758_v62 = vld [vmem:[%s11871_s16 + $0x38] sm:$0xff]  ;;  %v6124_v37 = vsel %vm847_vm2, %v11289_v26, 0.0  ;;  %v6130_v32 = vsel %vm847_vm2, %v11301_v54, 0.0  ;;  %v6247_v26 = vsel %vm847_vm2, %v11325_v45, 0.0  ;;  %v9701_v54 = vld [vmem:[%s11925_s8 + $0x10] sm:$0xff]  }
0x1291   : > { %v3010_v20 = vsel %vm847_vm2, %v9758_v62, 0.0  ;;  %v11926_v27 = vmov 0.0   ;;  %v9760_v45 = vld [vmem:[%s11871_s16 + $0x58] sm:$0xff]  ;;  %v9708_v62 = vld [vmem:[%s11927_s10 + $0x28] sm:$0xff]  }
0x1292   : > { %v7131_v57 = vadd.f32 %v7130_v28, %v10786_v51  ;;  %v9756_v51 = vld [vmem:[%s11871_s16 + $0x18] sm:$0xff]  ;;  %v9699_v28 = vld [vmem:[%s11925_s8] sm:$0xff]   ;;  %v3120_v46 = vsel %vm847_vm2, %v9760_v45, 0.0 }
0x1293   : > { %9322 = vmatpush3.bf16.msra.mxu0 %v9699_v28 }
0x1294   : > { %v7132_v29 = vsel %vm713_vm1, %v7131_v57, 0.0  ;;  %9323 = vmatprep.subr.bf16.mxu0 %v11926_v27 }
0x1295   : > { %7133 = vadd.xlane.f32.xlu0 %v7132_v29  ;;  %v9757_v29 = vld [vmem:[%s11871_s16 + $0x28] sm:$0xff] }
0x1296   : > { %v3004_v50 = vsel %vm847_vm2, %v9757_v29, 0.0  ;;  %v9705_v29 = vld [vmem:[%s11927_s10 + $0x10] sm:$0xff]  }
0x1322   : > { %v7134_v1 = vpop.xlane.xlu0 %7133 }
0x1323   : > { %v7135_v34 = vmul.f32 0.015625, %v7134_v1  ;;  %v2892_v1 = vsel %vm847_vm2, %v9756_v51, 0.0  ;;  %v9703_v51 = vld [vmem:[%s11927_s10] sm:$0xff]  }
0x1324   : > { %9334 = vmatpush3.bf16.msra.mxu1 %v9703_v51  ;;  %v9761_v51 = vld [vmem:[%s11920_s6] ss:$0 sm:$0xff]  ;;  %s9900_s6 = smov [#allocation4]  }
0x1325   : > { %v11477_v33 = vsub.f32 %v7131_v57, %v7135_v34  ;;  %v6241_v57 = vsel %vm847_vm2, %v11313_v55, 0.0  ;;  %v9700_v34 = vld [vmem:[%s11925_s8 + $0x8] sm:$0xff]   ;;  %9335 = vmatprep.subr.bf16.mxu1 %v11926_v27 }
0x1326   : > { %9324 = vmatpush3.bf16.msra.mxu0 %v9700_v34  ;;  %v9759_v55 = vld [vmem:[%s11871_s16 + $0x48] sm:$0xff] }
0x1327   : > { %v7137_v4 = vmul.f32 %v11477_v33, %v11477_v33  ;;  %9325 = vmatprep.subr.bf16.mxu0 %v11926_v27 }
0x1329   : > { %v7138_v44 = vsel %vm713_vm1, %v7137_v4, 0.0  ;;  %v3114_v4 = vsel %vm847_vm2, %v9759_v55, 0.0 }
0x132a   : > { %7139 = vadd.xlane.f32.xlu1 %v7138_v44  ;;  %9326 = vmatpush3.bf16.msra.mxu0 %v9701_v54  ;;  %v9702_v44 = vld [vmem:[%s11925_s8 + $0x18] sm:$0xff]  }
0x132b   : > { %9327 = vmatprep.subr.bf16.mxu0 %v11926_v27 }
0x132e   : > { %2887 = vadd.xlane.f32.xlu1 %v2886_v35  ;;  %9328 = vmatpush3.bf16.msra.mxu0 %v9702_v44  ;;  %v6350_v35 = vsel %vm847_vm2, %v11229_v48, 0.0  ;;  %v9706_v48 = vld [vmem:[%s11927_s10 + $0x18] sm:$0xff]  }
0x1332   : > { %2893 = vadd.xlane.f32.xlu1 %v2892_v1  ;;  %v9704_v1 = vld [vmem:[%s11927_s10 + $0x8] sm:$0xff]  }
0x1333   : > { %9336 = vmatpush3.bf16.msra.mxu1 %v9704_v1 }
0x1334   : > { %9337 = vmatprep.subr.bf16.mxu1 %v11926_v27 }
0x1336   : > { %3005 = vadd.xlane.f32.xlu1 %v3004_v50  ;;  %v9707_v50 = vld [vmem:[%s11927_s10 + $0x20] sm:$0xff]  }
0x1337   : > { %9338 = vmatpush3.bf16.msra.mxu1 %v9705_v29 }
0x1338   : > { %9339 = vmatprep.subr.bf16.mxu1 %v11926_v27 }
0x133a   : > { %3011 = vadd.xlane.f32.xlu1 %v3010_v20 }
0x133b   : > { %9340 = vmatpush3.bf16.msra.mxu1 %v9706_v48 }
0x133c   : > { %9341 = vmatprep.subr.bf16.mxu1 %v11926_v27 }
0x133e   : > { %6125 = vadd.xlane.f32.xlu1 %v6124_v37 }
0x133f   : > { %9342 = vmatpush3.bf16.msra.mxu1 %v9707_v50 }
0x1340   : > { %9343 = vmatprep.subr.bf16.mxu1 %v11926_v27 }
0x1342   : > { %6131 = vadd.xlane.f32.xlu1 %v6130_v32 }
0x1343   : > { %9344 = vmatpush3.bf16.msra.mxu1 %v9708_v62 }
0x1344   : > { %9345 = vmatprep.subr.bf16.mxu1 %v11926_v27 }
0x1346   : > { %6242 = vadd.xlane.f32.xlu1 %v6241_v57 }
0x134a   : > { %6248 = vadd.xlane.f32.xlu1 %v6247_v26 }
0x134e   : > { %3115 = vadd.xlane.f32.xlu1 %v3114_v4 }
0x1352   : > { %3121 = vadd.xlane.f32.xlu1 %v3120_v46 }
0x1356   : > { %6351 = vadd.xlane.f32.xlu1 %v6350_v35 }
0x13b7   : > { %v7140_v20 = vpop.xlane.xlu1 %7139 }
0x13b8   : > { %v7141_v37 = vmul.f32 0.015625, %v7140_v20 }
0x13ba   : > { %v7142_v32 = vadd.f32 1e-05, %v7141_v37 }
0x13bb   : > { %v2888_v28 = vpop.xlane.xlu1 %2887 }
0x13bc   : > { %9745 = vrsqrt.f32 %v7142_v32  ;;  %v2993_v26 = vmul.f32 %v10651_v0, %v2888_v28  ;;  %v9762_v0 = vld [vmem:[%s11921_s7] ss:$0 sm:$0xff]  ;;  %s11729_s7 = scalar_lea.vmem [#allocation2], %s7566_s29 }
0x13bd   : > { %s7398_s8 = sshll.u32 %s11729_s7, 4  ;;  %s11770_s8 = int_to_ptr.vmem [resolvable:$true] %s7398_s8 }
0x13bf   : > { %v2894_v57 = vpop.xlane.xlu1 %2893 }
0x13c0   : > { %v2995_v46 = vmul.f32 %v10659_v5, %v2894_v57 }
0x13c3   : > { %v3006_v34 = vpop.xlane.xlu1 %3005 }
0x13c4   : > { %v3099_v54 = vmul.f32 %v10653_v2, %v3006_v34 }
0x13c6   : > { %v9746_v55 = vpop.eup %9745  ;;  %v3103_v4 = vadd.f32 %v3099_v54, %v2993_v26 }
0x13c7   : > { %v7144_v44 = vmul.f32 %v9746_v55, %v11477_v33  ;;  %v3012_v45 = vpop.xlane.xlu1 %3011 }
0x13c8   : > { %v3101_v35 = vmul.f32 %v10661_v6, %v3012_v45 }
0x13c9   : > { %v7145_v1 = vmul.f32 %v9761_v51, %v7144_v44 }
0x13ca   : > { %v3105_v29 = vadd.f32 %v3101_v35, %v2995_v46 }
0x13cb   : > { %v6126_v48 = vpop.xlane.xlu1 %6125  ;;  %v7146_v2 = vadd.f32 %v9762_v0, %v7145_v1 }
0x13cc   : > { %v6231_v5 = vmul.f32 %v11380_v23, %v6126_v48 }
0x13cd   : > { %v7147_v50 = vpack.c.bf16 %v7146_v2, %v7146_v2 }
0x13cf   : > { %9330 = vmatmul.mubr.msk.bf16.vlgmr.msra.gmra.mrb[112].mxu0 %vm713_vm1, %v7147_v50  ;;  %v6132_v33 = vpop.xlane.xlu1 %6131 }
0x13d0   : > { %v6233_v32 = vmul.f32 %v11388_v56, %v6132_v33  ;;  %v9709_v56 = vld [vmem:[%s11927_s10 + $0x30] sm:$0xff]  }
0x13d1   : > { %9346 = vmatpush3.bf16.msra.mxu1 %v9709_v56  ;;  %v6244_v56 = vsel %vm847_vm2, %v11320_v30, 0.0  ;;  %v6353_v30 = vsel %vm847_vm2, %v11247_v39, 0.0  ;;  %v6462_v39 = vsel %vm847_vm2, %v11352_v8, 0.0 }
0x13d2   : > { %9347 = vmatprep.subr.bf16.mxu1 %v11926_v27  ;;  %v8148_v27 = vld [vmem:[%s11929_s11] ss:$0 sm:$0xff] }
0x13d3   : > { %v6243_v62 = vpop.xlane.xlu1 %6242 }
0x13d4   : > { %v6336_v6 = vmul.f32 %v11396_v24, %v6243_v62 }
0x13d6   : > { %v6340_v20 = vadd.f32 %v6336_v6, %v6231_v5 }
0x13d7   : > { %v6249_v37 = vpop.xlane.xlu1 %6248 }
0x13d8   : > { %v6338_v28 = vmul.f32 %v11400_v40, %v6249_v37 }
0x13da   : > { %v11571_v57 = vadd.f32 %v6338_v28, %v6233_v32  ;;  %v9764_v32 = vld [vmem:[%s11871_s16 + $0x10] sm:$0xff] }
0x13db   : > { %v3116_v34 = vpop.xlane.xlu1 %3115  ;;  %v2889_v28 = vsel %vm847_vm2, %v9764_v32, 0.0 }
0x13dc   : > { %v3209_v26 = vmul.f32 %v10667_v12, %v3116_v34  ;;  %v9710_v12 = vld [vmem:[%s11927_s10 + $0x38] sm:$0xff]  }
0x13dd   : > { %9348 = vmatpush3.bf16.msra.mxu1 %v9710_v12  ;;  %v9767_v12 = vld [vmem:[%s11871_s16 + $0x40] sm:$0xff] }
0x13de   : > { %v11574_v54 = vadd.f32 %v3209_v26, %v3103_v4  ;;  %v9766_v26 = vld [vmem:[%s11871_s16 + $0x30] sm:$0xff] }
0x13df   : > { %v3122_v55 = vpop.xlane.xlu1 %3121 }
0x13e0   : > { %v3211_v44 = vmul.f32 %v10675_v16, %v3122_v55  ;;  %v8142_v16 = vld [vmem:[%s11928_s9] ss:$0 sm:$0xff]  ;;  %v3007_v55 = vsel %vm847_vm2, %v9766_v26, 0.0  ;;  %s11732_s9 = scalar_lea.sflag [#allocation5], %s7379_s28 }
0x13e2   : > { %v11577_v45 = vadd.f32 %v3211_v44, %v3105_v29  ;;  %v6121_v44 = vsel %vm847_vm2, %v11284_v25, 0.0  ;;  %v9768_v25 = vld [vmem:[%s11871_s16 + $0x50] sm:$0xff] }
0x13e3   : > { %v6352_v23 = vpop.xlane.xlu1 %6351 }
0x13e4   : > { %v6445_v24 = vmul.f32 %v11382_v49, %v6352_v23  ;;  %v6127_v23 = vsel %vm847_vm2, %v11296_v53, 0.0  ;;  %v3117_v53 = vsel %vm847_vm2, %v9768_v25, 0.0 }
0x13e6   : > { %v11580_v46 = vadd.f32 %v6445_v24, %v6340_v20  ;;  %v9763_v20 = vld [vmem:[%s11871_s16] sm:$0xff]  ;;  %v6238_v24 = vsel %vm847_vm2, %v11308_v43, 0.0  ;;  %v6347_v43 = vsel %vm847_vm2, %v11224_v36, 0.0  ;;  %v6456_v36 = vsel %vm847_vm2, %v11336_v52, 0.0 }
0x13e7   : > { %v2883_v37 = vsel %vm847_vm2, %v9763_v20, 0.0  ;;  %v6356_v52 = vsel %vm847_vm2, %v11252_v41, 0.0  ;;  %v9772_v41 = vld [vmem:[%s11871_s16 + $0x78] sm:$0xff] }
0x14a2   : > { %v7224_v40 = vpop.f32.mrb[112].mxu0 }
0x14a3   : > { %v7225_v49 = vadd.f32 %v8142_v16, %v7224_v40  ;;  %v9331_v4 = vpop.f32.mrb[113].mxu0  ;;  %v3111_v16 = vsel %vm847_vm2, %v9767_v12, 0.0  ;;  %v9769_v40 = vld [vmem:[%s11871_s16 + $0x60] sm:$0xff] }
0x14a4   : > { %v7227_v35 = vpop.f32.mrb[114].mxu0  ;;  %v9770_v4 = vld [vmem:[%s11871_s16 + $0x70] sm:$0xff] }
0x14a5   : > { %v7230_v51 = vmax.f32 %v7225_v49, 0.0  ;;  %v9332_v1 = vpop.f32.mrb[115].mxu0  ;;  %v3221_v49 = vsel %vm847_vm2, %v9769_v40, 0.0  ;;  %v3227_v35 = vsel %vm847_vm2, %v9770_v4, 0.0 }
0x14a7   : > { %v7231_v29 = vpack.c.bf16 %v7230_v51, %v7230_v51 }
0x14a9   : > { %9350 = vmatmul.mubr.bf16.vlgmr.msra.gmra.mrb[108].mxu1 %v7231_v29 }
0x157c   : > { %v7337_v48 = vpop.f32.mrb[108].mxu1 }
0x157d   : > { %v7338_v0 = vadd.f32 %v8148_v27, %v7337_v48  ;;  %v9351_v50 = vpop.f32.mrb[109].mxu1 }
0x157e   : > { %v7340_v33 = vpop.f32.mrb[110].mxu1 }
0x157f   : > { %v9352_v62 = vpop.f32.mrb[111].mxu1  ;;  %v7343_v5 = vadd.f32 %v7338_v0, %v7146_v2  ;;  %v9765_v2 = vld [vmem:[%s11871_s16 + $0x20] sm:$0xff] }
0x1580   : > { %v3001_v34 = vsel %vm847_vm2, %v9765_v2, 0.0 }
0x1581   : > { %v7346_v6 = vsel %vm713_vm1, %v7343_v5, 0.0 }
0x1582   : > { %7347 = vadd.xlane.f32.xlu0 %v7346_v6 }
0x1586   : > { %2884 = vadd.xlane.f32.xlu0 %v2883_v37 }
0x158a   : > { %2890 = vadd.xlane.f32.xlu0 %v2889_v28 }
0x158e   : > { %3002 = vadd.xlane.f32.xlu0 %v3001_v34  ;;  %v6459_v34 = vsel %vm847_vm2, %v11341_v59, 0.0 }
0x1592   : > { %3008 = vadd.xlane.f32.xlu0 %v3007_v55  ;;  %v6465_v55 = vsel %vm847_vm2, %v11357_v19, 0.0 }
0x1596   : > { %6122 = vadd.xlane.f32.xlu0 %v6121_v44 }
0x159a   : > { %6128 = vadd.xlane.f32.xlu0 %v6127_v23 }
0x159e   : > { %6239 = vadd.xlane.f32.xlu0 %v6238_v24 }
0x15a2   : > { %6245 = vadd.xlane.f32.xlu0 %v6244_v56 }
0x15a6   : > { %3112 = vadd.xlane.f32.xlu0 %v3111_v16 }
0x15aa   : > { %3118 = vadd.xlane.f32.xlu0 %v3117_v53 }
0x15ae   : > { %6348 = vadd.xlane.f32.xlu0 %v6347_v43 }
0x15b2   : > { %6354 = vadd.xlane.f32.xlu0 %v6353_v30 }
0x15b6   : > { %3222 = vadd.xlane.f32.xlu0 %v3221_v49 }
0x15ba   : > { %3228 = vadd.xlane.f32.xlu0 %v3227_v35 }
0x15be   : > { %6457 = vadd.xlane.f32.xlu0 %v6456_v36 }
0x15c2   : > { %6463 = vadd.xlane.f32.xlu0 %v6462_v39 }
0x160f   : > { %v7348_v51 = vpop.xlane.xlu0 %7347 }
0x1610   : > { %v7349_v1 = vmul.f32 0.015625, %v7348_v51 }
0x1612   : > { %v11644_v29 = vsub.f32 %v7343_v5, %v7349_v1  ;;  %v9771_v5 = vld [vmem:[%s11871_s16 + $0x68] sm:$0xff] }
0x1613   : > { %v2885_v27 = vpop.xlane.xlu0 %2884  ;;  %v3224_v6 = vsel %vm847_vm2, %v9771_v5, 0.0 }
0x1614   : > { %v7351_v48 = vmul.f32 %v11644_v29, %v11644_v29  ;;  %v2992_v8 = vmul.f32 %v10655_v61, %v2885_v27  ;;  %v3230_v61 = vsel %vm847_vm2, %v9772_v41, 0.0 }
0x1616   : > { %v7352_v0 = vsel %vm713_vm1, %v7351_v48, 0.0 }
0x1617   : > { %7353 = vadd.xlane.f32.xlu1 %v7352_v0  ;;  %v2891_v50 = vpop.xlane.xlu0 %2890 }
0x1618   : > { %v2994_v32 = vmul.f32 %v10663_v10, %v2891_v50 }
0x161b   : > { %6357 = vadd.xlane.f32.xlu1 %v6356_v52  ;;  %v3003_v33 = vpop.xlane.xlu0 %3002 }
0x161c   : > { %v3098_v62 = vmul.f32 %v10657_v3, %v3003_v33 }
0x161e   : > { %v3102_v20 = vadd.f32 %v3098_v62, %v2992_v8 }
0x161f   : > { %3225 = vadd.xlane.f32.xlu1 %v3224_v6  ;;  %v3009_v37 = vpop.xlane.xlu0 %3008 }
0x1620   : > { %v3100_v28 = vmul.f32 %v10665_v11, %v3009_v37 }
0x1622   : > { %v3104_v3 = vadd.f32 %v3100_v28, %v2994_v32 }
0x1623   : > { %3231 = vadd.xlane.f32.xlu1 %v3230_v61  ;;  %v6123_v2 = vpop.xlane.xlu0 %6122 }
0x1624   : > { %v6230_v11 = vmul.f32 %v11384_v7, %v6123_v2 }
0x1627   : > { %6460 = vadd.xlane.f32.xlu1 %v6459_v34  ;;  %v6129_v26 = vpop.xlane.xlu0 %6128 }
0x1628   : > { %v6232_v56 = vmul.f32 %v11392_v21, %v6129_v26 }
0x162b   : > { %6466 = vadd.xlane.f32.xlu1 %v6465_v55  ;;  %v6240_v10 = vpop.xlane.xlu0 %6239 }
0x162c   : > { %v6335_v44 = vmul.f32 %v11398_v58, %v6240_v10 }
0x162e   : > { %v6339_v23 = vadd.f32 %v6335_v44, %v6230_v11 }
0x162f   : > { %v6246_v24 = vpop.xlane.xlu0 %6245 }
0x1630   : > { %v6337_v12 = vmul.f32 %v11402_v47, %v6246_v24 }
0x1632   : > { %v6341_v16 = vadd.f32 %v6337_v12, %v6232_v56 }
0x1633   : > { %v3113_v59 = vpop.xlane.xlu0 %3112 }
0x1634   : > { %v3208_v25 = vmul.f32 %v10671_v14, %v3113_v59 }
0x1636   : > { %v3212_v53 = vadd.f32 %v3208_v25, %v3102_v20  ;;  %v8158_v20 = vld [vmem:[%s11868_s13] ss:$0 sm:$0xff] }
0x1637   : > { %v3119_v43 = vpop.xlane.xlu0 %3118 }
0x1638   : > { %v3210_v19 = vmul.f32 %v10679_v18, %v3119_v43 }
0x163a   : > { %v3214_v30 = vadd.f32 %v3210_v19, %v3104_v3 }
0x163b   : > { %v6349_v40 = vpop.xlane.xlu0 %6348 }
0x163c   : > { %v6444_v7 = vmul.f32 %v11386_v42, %v6349_v40 }
0x163e   : > { %v6448_v58 = vadd.f32 %v6444_v7, %v6339_v23 }
0x163f   : > { %v6355_v49 = vpop.xlane.xlu0 %6354 }
0x1640   : > { %v6446_v21 = vmul.f32 %v11394_v22, %v6355_v49 }
0x1642   : > { %v6450_v47 = vadd.f32 %v6446_v21, %v6341_v16 }
0x1643   : > { %v3223_v4 = vpop.xlane.xlu0 %3222 }
0x1644   : > { %v3318_v14 = vmul.f32 %v10673_v15, %v3223_v4 }
0x1646   : > { %v3322_v35 = vadd.f32 %v3318_v14, %v3212_v53 }
0x1647   : > { %v3229_v36 = vpop.xlane.xlu0 %3228 }
0x1648   : > { %3326 = vst.msk [vmem:[%s11680_s20] sm:$0xff] %vm847_vm2, %v3322_v35  ;;  %v3320_v18 = vmul.f32 %v10681_v9, %v3229_v36 }
0x164a   : > { %v3324_v42 = vadd.f32 %v3320_v18, %v3214_v30 }
0x164b   : > { %v6458_v39 = vpop.xlane.xlu0 %6457 }
0x164c   : > { %3328 = vst.msk [vmem:[%s11680_s20 + $0x10] sm:$0xff] %vm847_vm2, %v3324_v42  ;;  %v6553_v22 = vmul.f32 %v11408_v38, %v6458_v39 }
0x164e   : > { %v6557_v51 = vadd.f32 %v6553_v22, %v6448_v58 }
0x164f   : > { %v6464_v1 = vpop.xlane.xlu0 %6463 }
0x1650   : > { %6561 = vst.msk [vmem:[%s11688_s23] sm:$0xff] %vm847_vm2, %v6557_v51  ;;  %v6555_v15 = vmul.f32 %v11423_v60, %v6464_v1 }
0x1652   : > { %v6559_v9 = vadd.f32 %v6555_v15, %v6450_v47 }
0x1654   : > { %6563 = vst.msk [vmem:[%s11688_s23 + $0x10] sm:$0xff] %vm847_vm2, %v6559_v9 }
0x16a4   : > { %v7354_v27 = vpop.xlane.xlu1 %7353 }
0x16a5   : > { %v7355_v38 = vmul.f32 0.015625, %v7354_v27 }
0x16a7   : > { %v7356_v48 = vadd.f32 1e-05, %v7355_v38 }
0x16a8   : > { %v6358_v0 = vpop.xlane.xlu1 %6357 }
0x16a9   : > { %9747 = vrsqrt.f32 %v7356_v48  ;;  %v6447_v50 = vmul.f32 %v11390_v63, %v6358_v0 }
0x16ab   : > { %v11697_v52 = vadd.f32 %v6447_v50, %v11571_v57  ;;  %v8157_v57 = vld [vmem:[%s11867_s12] ss:$0 sm:$0xff] }
0x16ac   : > { %v3226_v33 = vpop.xlane.xlu1 %3225 }
0x16ad   : > { %v3319_v8 = vmul.f32 %v10669_v13, %v3226_v33 }
0x16af   : > { %v3323_v60 = vadd.f32 %v3319_v8, %v11574_v54 }
0x16b0   : > { %v3232_v62 = vpop.xlane.xlu1 %3231 }
0x16b1   : > { %3327 = vst.msk [vmem:[%s11680_s20 + $0x8] sm:$0xff] %vm847_vm2, %v3323_v60  ;;  %v3321_v5 = vmul.f32 %v10677_v17, %v3232_v62 }
0x16b3   : > { %v9748_v13 = vpop.eup %9747  ;;  %v3325_v63 = vadd.f32 %v3321_v5, %v11577_v45 }
0x16b4   : > { %v6461_v17 = vpop.xlane.xlu1 %6460  ;;  %v7358_v54 = vmul.f32 %v9748_v13, %v11644_v29 }
0x16b5   : > { %3329 = vst.msk [vmem:[%s11680_s20 + $0x18] sm:$0xff] %vm847_vm2, %v3325_v63  ;;  %v6554_v6 = vmul.f32 %v11406_v31, %v6461_v17  ;;  %s9777_s20 = sshll.u32 %s9900_s6, 4  ;;  %s9778_s20 = int_to_ptr.vmem [resolvable:$false] %s9777_s20 }
0x16b6   : > { %s9779_s10 = scalar_lea.vmem %s9778_s20, 1024  ;;  %p9780_p0 = scmp.lt.s32.totalorder %s11715_s3, %s9778_s20 }
0x16b7   : > { %p9781_p1 = scmp.lt.s32.totalorder %s9779_s10, %s9773_s5 }
0x16b9   : > { %p9782_p2 = por %p9781_p1, %p9780_p0 }
0x16bb   : > { %p9783_p3 = pnand %p9782_p2, %p9776_p13 }
0x16bd   : > { %9786 = shalt.err (!%p9783_p3)
}
0x16be   : > { %s9787_s28 = scalar_lea.hbm %s11713_s0, 512  ;;  %s9791_s30 = scalar_lea.hbm %s11874_s19, 1024 }
0x16bf   : > { %p9788_p4 = scmp.ne.s32.totalorder %s11713_s0, %s9787_s28  ;;  %p9792_p9 = scmp.lt.u32.totalorder %s11713_s0, %s11874_s19 }
0x16c0   : > { %p9793_p10 = scmp.lt.u32.totalorder %s9791_s30, %s9787_s28  ;;  %p9795_p12 = scmp.lt.u32.totalorder %s9787_s28, %s11713_s0 }
0x16c1   : > { %p9789_p7 = pnand %p9788_p4, %p10050_p5 }
0x16c2   : > { %p9794_p11 = por %p9793_p10, %p9792_p9 }
0x16c3   : > { %p9790_p8 = pneg %p9789_p7 }
0x16c4   : > { %p9796_p13 = por %p9795_p12, %p9794_p11 }
0x16c6   : > { %p9797_p0 = pnand %p9796_p13, %p9790_p8 }
0x16c8   : > { %9800 = shalt.err (!%p9797_p0)
}
0x16c9   : > { %s11892_s10 = smov 128   ;;  %s11893_s5 = smov 8   ;;  %v7365_v31 = vmul.f32 %v8157_v57, %v7358_v54  ;;  %v6558_v45 = vadd.f32 %v6554_v6, %v11580_v46  ;;  %v6467_v29 = vpop.xlane.xlu1 %6466  ;;  %v11930_v32 = vld [vmem:[#allocation15_spill] sm:$0xff] }
0x16ca   : > { %9542 = dma.vmem_to_hbm [thread:$0]  (%p10050_p5), %s11715_s3, 512, %s11713_s0, %s11732_s9, %s11892_s10, %s11892_s10, %s11893_s5   ;;  %v6556_v28 = vmul.f32 %v11930_v32, %v6467_v29 }
0x16cb   : > { %s7427_s28 = sshll.u32 %s11688_s23, 4  ;;  %v7372_v37 = vadd.f32 %v8158_v20, %v7365_v31  ;;  %s11766_s30 = scalar_lea.hbm %s11873_s18, %s8162_s1  ;;  %6562 = vst.msk [vmem:[%s11688_s23 + $0x8] sm:$0xff] %vm847_vm2, %v6558_v45  ;;  %s11775_s28 = int_to_ptr.vmem [resolvable:$true] %s7427_s28 }
0x16cc   : > { %s11931_s3 = sshll.u32 %s10031_s2, 9  ;;  %s11932_s20 = sld [smem:[#allocation28_spill]]  ;;  %v6560_v46 = vadd.f32 %v6556_v28, %v11697_v52 }
0x16cd   : > { %7373 = vst.msk [vmem:[%s11729_s7] sm:$0xff] %vm713_vm1, %v7372_v37  ;;  %s7375_s1 = scalar_lea.sflag [#allocation3], %s11675_s25  ;;  %s9801_s29 = scalar_lea.vmem %s11770_s8, 128 }
0x16ce   : > { %p9802_p1 = scmp.ne.s32.totalorder %s11770_s8, %s9801_s29  ;;  %s9903_s24 = smov [#allocation2]  }
0x16cf   : > { %s9805_s5 = sshll.u32 %s9903_s24, 4  ;;  %s9806_s5 = int_to_ptr.vmem [resolvable:$false] %s9805_s5 }
0x16d0   : > { %p9803_p2 = pnand %p9802_p1, %p10050_p5  ;;  %s9807_s11 = scalar_lea.vmem %s9806_s5, 256 }
0x16d1   : > { %p9808_p4 = scmp.lt.s32.totalorder %s11770_s8, %s9806_s5  ;;  %p9809_p7 = scmp.lt.s32.totalorder %s9807_s11, %s9801_s29 }
0x16d2   : > { %s11782_s10 = scalar_lea.hbm %s11932_s20, %s11931_s3  ;;  %p9804_p3 = pneg %p9803_p2 }
0x16d3   : > { %p9810_p8 = por %p9809_p7, %p9808_p4 }
0x16d5   : > { %p9811_p9 = pnand %p9810_p8, %p9804_p3 }
0x16d7   : > { %9814 = shalt.err (!%p9811_p9)
}
0x16d8   : > { %s9815_s7 = scalar_lea.hbm %s11766_s30, 128  ;;  %s9819_s3 = scalar_lea.hbm %s11873_s18, 256 }
0x16d9   : > { %p9816_p10 = scmp.ne.s32.totalorder %s11766_s30, %s9815_s7  ;;  %p9820_p13 = scmp.lt.u32.totalorder %s11766_s30, %s11873_s18 }
0x16da   : > { %p9821_p0 = scmp.lt.u32.totalorder %s9819_s3, %s9815_s7  ;;  %p9823_p2 = scmp.lt.u32.totalorder %s9815_s7, %s11766_s30 }
0x16db   : > { %p9817_p11 = pnand %p9816_p10, %p10050_p5 }
0x16dc   : > { %p9822_p1 = por %p9821_p0, %p9820_p13 }
0x16dd   : > { %p9818_p12 = pneg %p9817_p11 }
0x16de   : > { %p9824_p3 = por %p9823_p2, %p9822_p1 }
0x16e0   : > { %p9825_p4 = pnand %p9824_p3, %p9818_p12 }
0x16e2   : > { %9828 = shalt.err (!%p9825_p4)
}
0x16e3   : > { %9541 = dma.vmem_to_hbm [thread:$0]  (%p10050_p5), %s11770_s8, 128, %s11766_s30, %s7375_s1   ;;  %6564 = vst.msk [vmem:[%s11688_s23 + $0x18] sm:$0xff] %vm847_vm2, %v6560_v46 }
0x16e4   : > { %s9829_s11 = scalar_lea.vmem %s11775_s28, 512  ;;  %s9904_s6 = smov [#allocation6]  }
0x16e5   : > { %p9830_p7 = scmp.ne.s32.totalorder %s11775_s28, %s9829_s11  ;;  %s9833_s29 = sshll.u32 %s9904_s6, 4  ;;  %s9834_s29 = int_to_ptr.vmem [resolvable:$false] %s9833_s29 }
0x16e6   : > { %s9835_s24 = scalar_lea.vmem %s9834_s29, 1024  ;;  %p9836_p10 = scmp.lt.s32.totalorder %s11775_s28, %s9834_s29 }
0x16e7   : > { %p9831_p8 = pnand %p9830_p7, %p10050_p5  ;;  %p9837_p11 = scmp.lt.s32.totalorder %s9835_s24, %s9829_s11 }
0x16e9   : > { %p9832_p9 = pneg %p9831_p8  ;;  %p9838_p12 = por %p9837_p11, %p9836_p10 }
0x16eb   : > { %p9839_p13 = pnand %p9838_p12, %p9832_p9 }
0x16ed   : > { %9842 = shalt.err (!%p9839_p13)
}
0x16ee   : > { %s9843_s8 = scalar_lea.hbm %s11782_s10, 512  ;;  %s9847_s1 = scalar_lea.hbm %s11932_s20, 1024 }
0x16ef   : > { %p9844_p0 = scmp.ne.s32.totalorder %s11782_s10, %s9843_s8  ;;  %p9848_p3 = scmp.lt.u32.totalorder %s11782_s10, %s11932_s20 }
0x16f0   : > { %p9849_p4 = scmp.lt.u32.totalorder %s9847_s1, %s9843_s8  ;;  %p9851_p8 = scmp.lt.u32.totalorder %s9843_s8, %s11782_s10 }
0x16f1   : > { %p9845_p1 = pnand %p9844_p0, %p10050_p5 }
0x16f2   : > { %p9850_p7 = por %p9849_p4, %p9848_p3 }
0x16f3   : > { %p9846_p2 = pneg %p9845_p1 }
0x16f4   : > { %p9852_p9 = por %p9851_p8, %p9850_p7 }
0x16f6   : > { %p9853_p10 = pnand %p9852_p9, %p9846_p2 }
0x16f8   : > { %9856 = shalt.err (!%p9853_p10)
}
0x16f9   : > { %s11933_s25 = smov 8   ;;  %s11934_s3 = smov 128  }
0x16fa   : > { %9543 = dma.vmem_to_hbm [thread:$0]  (%p10050_p5), %s11775_s28, 512, %s11782_s10, %s11732_s9, %s11934_s3, %s11934_s3, %s11933_s25  }
0x16fb PF: > { %s11935_s0 = sld [smem:[#allocation11_spill]]  ;;  %s11936_s5 = sld [smem:[#allocation9_spill]] }
0x1701   : > { %p9557_p11 = scmp.ge.s32.totalorder %s11935_s0, 2  ;;  %s7442_s6 = sand.u32 1, %s11936_s5  }
0x1702   : > { %s7443_s29 = scalar_lea.sflag [#allocation3], %s7442_s6 }
0x1703   : > { %p9548_p12 = pnand %p9557_p11, %p10054_p6 }
0x1705   : > { %9874 = dma.done.wait (!%p9548_p12), %s7443_s29, 128  }
0x1706   : > { %9876 = vsyncadd (!%p9548_p12), %s7443_s29, 4294967168  ;;  %s11938_s4 = sadd.s32 4294967294, %s11935_s0  }
0x1707   : > { %s7451_s24 = sand.u32 1, %s11938_s4  }
0x1708   : > { %s7452_s8 = scalar_lea.sflag [#allocation5], %s7451_s24 }
0x1709   : > { %9878 = dma.done.wait (!%p9548_p12), %s7452_s8, 1024  }
0x170a   : > { %9880 = vsyncadd (!%p9548_p12), %s7452_s8, 4294966272  ;;  %s11939_s24 = sld [smem:[#allocation12_spill]]  ;;  %s11940_s9 = sld [smem:[#allocation10_spill]] }
0x170b   : > { %s11941_s23 = sld [smem:[#allocation13_spill]]  ;;  %s11942_s1 = smov %s9887_s22 }
0x1710   : > { %p34_p5 = scmp.ge.s32.totalorder %s11939_s24, 4   ;;  %s11943_s22 = smov %s11940_s9 }
0x1712   :  { %36 = sbr.rel (!%p34_p5) target bundleno = 19 (0x13), region = 196 }
0x1719   :  { %7466 = vsyncpa [#allocation3], 1 }
0x171a   :  { %7468 = vsyncpa [#allocation3 + $0x1], 1 }
0x171b   :  { %7469 = vsyncpa [#allocation5], 1 }
0x171c   :  { %7471 = vsyncpa [#allocation5 + $0x1], 1 }

</bundles_post_ra>
